<compile_context>
chip_gen: v6e
topology: v6e:2x2x1
jax: 0.10.0
libtpu: 0.0.40
codegen_flags: <defaults>
</compile_context>

<pallas_src>
import functools

import jax
import jax.numpy as jnp
from jax import lax
from jax.experimental import pallas as pl
from jax.experimental.pallas import tpu as pltpu


# ------------------------------ Pallas kernel -------------------------------

def _spp_kernel(x_ref, w1_ref, b1_ref, w2_ref, b2_ref, o_ref, acc_ref,
                *, H, W, c_):
    HW = H * W
    NEG = float("-inf")                    # Python literal: no captured consts

    def silu(y):
        # exp + approximate reciprocal both map to the EUP slot.
        return y * pl.reciprocal(1.0 + jnp.exp(-y), approx=True)

    # ---------------- cv1: folded 1x1 Conv + BN, then SiLU ------------------
    # [c_, c1]bf16 @ [c1, HW]bf16 -> [c_, HW]f32 (lane axis = HW, dense)
    y1 = jnp.dot(w1_ref[...], x_ref[0], preferred_element_type=jnp.float32)
    y1 = silu(y1 + b1_ref[...])

    # ------- constants for the pools, hoisted once per grid step ------------
    col = lax.broadcasted_iota(jnp.int32, (c_, HW), 1) % W     # in-row coord
    wmask = {d: jnp.logical_and(col + d >= 0, col + d <= W - 1)
             for d in (-2, -1, 1, 2)}
    neg_tile = jnp.full((c_, HW), NEG, jnp.float32)
    pad_w = jnp.full((c_, 2), NEG, jnp.float32)        # 2 guard lanes (W pass)
    pad_h = jnp.full((c_, 2 * W), NEG, jnp.float32)    # 2 guard rows (H pass)

    def pool5(t):
        """5x5 max pool, stride 1, pad 2, on a [c_, H*W] lane-dense slab."""
        # W pass: lane shifts of the -inf padded slab; mask row crossings.
        tp = jnp.concatenate([pad_w, t, pad_w], axis=1)          # [c_, HW+4]
        r = t
        for d in (-2, -1, 1, 2):
            tap = tp[:, 2 + d: 2 + d + HW]                       # t[:, l+d]
            r = jnp.maximum(r, jnp.where(wmask[d], tap, neg_tile))
        # H pass: shifts by whole rows; the -inf pad supplies the border,
        # so no mask is needed at all.
        rp = jnp.concatenate([pad_h, r, pad_h], axis=1)          # [c_, HW+4W]
        out = r
        for d in (-2, -1, 1, 2):
            out = jnp.maximum(out, rp[:, 2 * W + d * W: 2 * W + d * W + HW])
        return out

    # ---- cv2 on cat([y1, m5, m9, m13]) interleaved with the pool chain -----
    def cv2_acc(k, slab, first=False):
        contrib = jnp.dot(w2_ref[k], slab.astype(jnp.bfloat16),
                          preferred_element_type=jnp.float32)    # [c2, HW]
        if first:
            acc_ref[...] = contrib
        else:
            acc_ref[...] += contrib

    cv2_acc(0, y1, first=True)
    m5 = pool5(y1)            # SPP(5,9,13) == chained 5x5 pools (SPPF identity)
    cv2_acc(1, m5)
    m9 = pool5(m5)
    cv2_acc(2, m9)
    m13 = pool5(m9)
    cv2_acc(3, m13)

    y2 = silu(acc_ref[...] + b2_ref[...])
    o_ref[0] = y2.astype(o_ref.dtype)                            # lane-dense store


# ------------------------------ wrapper (glue) -------------------------------

def _fold_bn(p, eps=1e-5):
    """Fold eval-mode BatchNorm2d into the preceding bias-free 1x1 conv."""
    scale = p["bn_gamma"] / jnp.sqrt(p["bn_var"] + eps)
    return p["w"] * scale[:, None], p["bn_beta"] - p["bn_mean"] * scale


@jax.jit
def spp_forward(x_nchw, params):
    B, C1, H, W = x_nchw.shape
    c_ = C1 // 2
    c2 = params["cv2"]["w"].shape[0]
    HW = H * W

    w1, b1 = _fold_bn(params["cv1"])            # [c_, c1], [c_]
    w2, b2 = _fold_bn(params["cv2"])            # [c2, 4*c_], [c2]

    # NCHW is already the [C, HW] layout the kernel wants — just flatten.
    x_flat = x_nchw.reshape(B, C1, HW).astype(jnp.bfloat16)
    w1_bf = w1.astype(jnp.bfloat16)                              # [c_, c1]
    # cv2 weight as a [4, c2, c_] stack so the kernel ref-slices per slab.
    w2_stk = jnp.transpose(w2.reshape(c2, 4, c_), (1, 0, 2)).astype(jnp.bfloat16)
    b1_col = b1.reshape(c_, 1)
    b2_col = b2.reshape(c2, 1)

    out = pl.pallas_call(
        functools.partial(_spp_kernel, H=H, W=W, c_=c_),
        out_shape=jax.ShapeDtypeStruct((B, c2, HW), x_nchw.dtype),
        grid_spec=pltpu.PrefetchScalarGridSpec(
            num_scalar_prefetch=0,
            grid=(B,),
            in_specs=[
                pl.BlockSpec((1, C1, HW), lambda b: (b, 0, 0)),   # x
                pl.BlockSpec((c_, C1), lambda b: (0, 0)),         # w1
                pl.BlockSpec((c_, 1), lambda b: (0, 0)),          # b1
                pl.BlockSpec((4, c2, c_), lambda b: (0, 0, 0)),   # w2 stack
                pl.BlockSpec((c2, 1), lambda b: (0, 0)),          # b2
            ],
            out_specs=pl.BlockSpec((1, c2, HW), lambda b: (b, 0, 0)),
            scratch_shapes=[pltpu.VMEM((c2, HW), jnp.float32)],   # cv2 accumulator
        ),
        compiler_params=pltpu.CompilerParams(
            dimension_semantics=("parallel",),        # batch feeds both TCs (B>=2)
            vmem_limit_bytes=32 * 1024 * 1024),
    )(x_flat, w1_bf, b1_col, w2_stk, b2_col)

    return out.reshape(B, c2, H, W)                   # [B, c2, HW] is NCHW already


# -------------------------------- reference ---------------------------------

def reference_forward(x, params, ks=(5, 9, 13)):
    """Pure-JAX/XLA reference for the exact SPP forward (eval-mode BN)."""
    def conv_bn_silu(t, p):
        w, b = _fold_bn(p)
        y = jnp.einsum("bchw,oc->bohw", t, w,
                       precision=lax.Precision.HIGHEST) + b[None, :, None, None]
        return y * jax.nn.sigmoid(y)

    y = conv_bn_silu(x, params["cv1"])
    pools = [y]
    for k in ks:
        p = k // 2
        pools.append(lax.reduce_window(
            y, -jnp.inf, lax.max,
            window_dimensions=(1, 1, k, k),
            window_strides=(1, 1, 1, 1),
            padding=((0, 0), (0, 0), (p, p), (p, p))))
    return conv_bn_silu(jnp.concatenate(pools, axis=1), params["cv2"])


# ------------------------------- param init ---------------------------------

def init_params(key, c1, c2):
    c_ = c1 // 2

    def conv_bn(k, cout, cin, w_scale):
        kw, kg, kb, km, kv = jax.random.split(k, 5)
        return {
            "w": w_scale * jax.random.normal(kw, (cout, cin), jnp.float32),
            "bn_gamma": 1.0 + 0.1 * jax.random.normal(kg, (cout,), jnp.float32),
            "bn_beta": 0.1 * jax.random.normal(kb, (cout,), jnp.float32),
            "bn_mean": 0.1 * jax.random.normal(km, (cout,), jnp.float32),
            "bn_var": 1.0 + 0.1 * jnp.abs(jax.random.normal(kv, (cout,), jnp.float32)),
        }

    k1, k2 = jax.random.split(key)
    return {"cv1": conv_bn(k1, c_, c1, 0.10),
            "cv2": conv_bn(k2, c2, 4 * c_, 0.08)}


# ----------------------------------- main ------------------------------------

if __name__ == "__main__":
    # Small but lane-friendly shapes: c_ = 32, HW = 256 lanes, c2 = 128.
    B, C1, H, W = 2, 64, 16, 16
    C2 = 128

    key = jax.random.PRNGKey(0)
    kx, kp = jax.random.split(key)
    x = jax.random.normal(kx, (B, C1, H, W), dtype=jnp.float32)
    params = init_params(kp, C1, C2)

    out = jax.block_until_ready(spp_forward(x, params))
    assert out.shape == (B, C2, H, W), out.shape

    ref = reference_forward(x, params)
    # bf16 MXU operands + approx reciprocal -> compare with a mixed abs/rel
    # tolerance (real layout/indexing bugs produce O(1) relative errors).
    err = float(jnp.max(jnp.abs(out - ref) / (1.0 + jnp.abs(ref))))
    assert err < 5e-2, f"mismatch vs reference: {err}"

    print("KERNEL_OK")
</pallas_src>

<mosaic_0001>
module attributes {stable_mosaic.version = 11 : i64} {
  func.func @_spp_kernel(%arg0: i32, %arg1: memref<1x64x256xbf16, #tpu.memory_space<vmem>>, %arg2: memref<32x64xbf16, #tpu.memory_space<vmem>>, %arg3: memref<32x1xf32, #tpu.memory_space<vmem>>, %arg4: memref<4x128x32xbf16, #tpu.memory_space<vmem>>, %arg5: memref<128x1xf32, #tpu.memory_space<vmem>>, %arg6: memref<1x128x256xf32, #tpu.memory_space<vmem>>, %arg7: memref<128x256xf32, #tpu.memory_space<vmem>>) attributes {dimension_semantics = [#tpu.dimension_semantics<parallel>], iteration_bounds = array<i64: 2>, scalar_prefetch = 0 : i64, scratch_operands = 1 : i64, tpu.core_type = #tpu.core_type<tc>, window_params = [{transform_indices = @transform_0, window_bounds = array<i64: 1, 64, 256>}, {pipeline_mode = #tpu.pipeline_mode<synchronous>, transform_indices = @transform_1, window_bounds = array<i64: 32, 64>}, {pipeline_mode = #tpu.pipeline_mode<synchronous>, transform_indices = @transform_2, window_bounds = array<i64: 32, 1>}, {pipeline_mode = #tpu.pipeline_mode<synchronous>, transform_indices = @transform_3, window_bounds = array<i64: 4, 128, 32>}, {pipeline_mode = #tpu.pipeline_mode<synchronous>, transform_indices = @transform_4, window_bounds = array<i64: 128, 1>}, {transform_indices = @transform_5, window_bounds = array<i64: 1, 128, 256>}]} {
    %c0 = arith.constant 0 : index
    %c0_0 = arith.constant 0 : index
    %0 = vector.load %arg2[%c0, %c0_0] : memref<32x64xbf16, #tpu.memory_space<vmem>>, vector<32x64xbf16>
    %c0_1 = arith.constant 0 : index
    %c0_2 = arith.constant 0 : index
    %c0_3 = arith.constant 0 : index
    %1 = vector.load %arg1[%c0_1, %c0_2, %c0_3] : memref<1x64x256xbf16, #tpu.memory_space<vmem>>, vector<1x64x256xbf16>
    %2 = vector.shape_cast %1 : vector<1x64x256xbf16> to vector<64x256xbf16>
    %cst = arith.constant dense<0.000000e+00> : vector<32x256xf32>
    %3 = tpu.matmul %0, %2, %cst {dimension_numbers = #tpu.dot_dimension_numbers<[1], [0], [0], [1], [0, 0, 1, 1], [], []>} : vector<32x64xbf16>, vector<64x256xbf16>, vector<32x256xf32> -> vector<32x256xf32>
    %c0_4 = arith.constant 0 : index
    %c0_5 = arith.constant 0 : index
    %4 = vector.load %arg3[%c0_4, %c0_5] : memref<32x1xf32, #tpu.memory_space<vmem>>, vector<32x1xf32>
    %5 = vector.broadcast %4 : vector<32x1xf32> to vector<32x256xf32>
    %6 = arith.addf %3, %5 : vector<32x256xf32>
    %cst_6 = arith.constant 0.000000e+00 : f32
    %7 = vector.broadcast %cst_6 : f32 to vector<32x256xf32>
    %8 = arith.subf %7, %6 : vector<32x256xf32>
    %9 = math.exp %8 : vector<32x256xf32>
    %cst_7 = arith.constant 1.000000e+00 : f32
    %10 = vector.broadcast %cst_7 : f32 to vector<32x256xf32>
    %11 = arith.addf %10, %9 : vector<32x256xf32>
    %12 = tpu.reciprocal %11 {approx = true} : vector<32x256xf32> -> vector<32x256xf32>
    %13 = arith.mulf %6, %12 : vector<32x256xf32>
    %14 = tpu.iota {dimensions = array<i32: 1>} : vector<32x256xi32>
    %c16_i32 = arith.constant 16 : i32
    %c0_i32 = arith.constant 0 : i32
    %15 = arith.cmpi eq, %c16_i32, %c0_i32 : i32
    %c1_i32 = arith.constant 1 : i32
    %16 = arith.select %15, %c1_i32, %c16_i32 : i32
    %17 = vector.broadcast %16 : i32 to vector<32x256xi32>
    %18 = arith.remsi %14, %17 : vector<32x256xi32>
    %c0_i32_8 = arith.constant 0 : i32
    %19 = vector.broadcast %c0_i32_8 : i32 to vector<32x256xi32>
    %20 = arith.cmpi ne, %18, %19 : vector<32x256xi32>
    %c0_i32_9 = arith.constant 0 : i32
    %21 = vector.broadcast %c0_i32_9 : i32 to vector<32x256xi32>
    %22 = arith.cmpi slt, %18, %21 : vector<32x256xi32>
    %c0_i32_10 = arith.constant 0 : i32
    %23 = arith.cmpi slt, %16, %c0_i32_10 : i32
    %24 = vector.broadcast %23 : i1 to vector<32x256xi1>
    %25 = vector.broadcast %24 : vector<32x256xi1> to vector<32x256xi1>
    %26 = arith.xori %22, %25 : vector<32x256xi1>
    %27 = arith.andi %26, %20 : vector<32x256xi1>
    %28 = vector.broadcast %16 : i32 to vector<32x256xi32>
    %29 = arith.addi %18, %28 : vector<32x256xi32>
    %30 = arith.select %27, %29, %18 : vector<32x256xi1>, vector<32x256xi32>
    %c-2_i32 = arith.constant -2 : i32
    %31 = vector.broadcast %c-2_i32 : i32 to vector<32x256xi32>
    %32 = arith.addi %30, %31 : vector<32x256xi32>
    %c0_i32_11 = arith.constant 0 : i32
    %33 = vector.broadcast %c0_i32_11 : i32 to vector<32x256xi32>
    %34 = arith.cmpi sge, %32, %33 : vector<32x256xi32>
    %c-2_i32_12 = arith.constant -2 : i32
    %35 = vector.broadcast %c-2_i32_12 : i32 to vector<32x256xi32>
    %36 = arith.addi %30, %35 : vector<32x256xi32>
    %c15_i32 = arith.constant 15 : i32
    %37 = vector.broadcast %c15_i32 : i32 to vector<32x256xi32>
    %38 = arith.cmpi sle, %36, %37 : vector<32x256xi32>
    %39 = arith.andi %34, %38 : vector<32x256xi1>
    %c-1_i32 = arith.constant -1 : i32
    %40 = vector.broadcast %c-1_i32 : i32 to vector<32x256xi32>
    %41 = arith.addi %30, %40 : vector<32x256xi32>
    %c0_i32_13 = arith.constant 0 : i32
    %42 = vector.broadcast %c0_i32_13 : i32 to vector<32x256xi32>
    %43 = arith.cmpi sge, %41, %42 : vector<32x256xi32>
    %c-1_i32_14 = arith.constant -1 : i32
    %44 = vector.broadcast %c-1_i32_14 : i32 to vector<32x256xi32>
    %45 = arith.addi %30, %44 : vector<32x256xi32>
    %c15_i32_15 = arith.constant 15 : i32
    %46 = vector.broadcast %c15_i32_15 : i32 to vector<32x256xi32>
    %47 = arith.cmpi sle, %45, %46 : vector<32x256xi32>
    %48 = arith.andi %43, %47 : vector<32x256xi1>
    %c1_i32_16 = arith.constant 1 : i32
    %49 = vector.broadcast %c1_i32_16 : i32 to vector<32x256xi32>
    %50 = arith.addi %30, %49 : vector<32x256xi32>
    %c0_i32_17 = arith.constant 0 : i32
    %51 = vector.broadcast %c0_i32_17 : i32 to vector<32x256xi32>
    %52 = arith.cmpi sge, %50, %51 : vector<32x256xi32>
    %c1_i32_18 = arith.constant 1 : i32
    %53 = vector.broadcast %c1_i32_18 : i32 to vector<32x256xi32>
    %54 = arith.addi %30, %53 : vector<32x256xi32>
    %c15_i32_19 = arith.constant 15 : i32
    %55 = vector.broadcast %c15_i32_19 : i32 to vector<32x256xi32>
    %56 = arith.cmpi sle, %54, %55 : vector<32x256xi32>
    %57 = arith.andi %52, %56 : vector<32x256xi1>
    %c2_i32 = arith.constant 2 : i32
    %58 = vector.broadcast %c2_i32 : i32 to vector<32x256xi32>
    %59 = arith.addi %30, %58 : vector<32x256xi32>
    %c0_i32_20 = arith.constant 0 : i32
    %60 = vector.broadcast %c0_i32_20 : i32 to vector<32x256xi32>
    %61 = arith.cmpi sge, %59, %60 : vector<32x256xi32>
    %c2_i32_21 = arith.constant 2 : i32
    %62 = vector.broadcast %c2_i32_21 : i32 to vector<32x256xi32>
    %63 = arith.addi %30, %62 : vector<32x256xi32>
    %c15_i32_22 = arith.constant 15 : i32
    %64 = vector.broadcast %c15_i32_22 : i32 to vector<32x256xi32>
    %65 = arith.cmpi sle, %63, %64 : vector<32x256xi32>
    %66 = arith.andi %61, %65 : vector<32x256xi1>
    %cst_23 = arith.constant 0xFF800000 : f32
    %67 = vector.broadcast %cst_23 : f32 to vector<32x256xf32>
    %cst_24 = arith.constant 0xFF800000 : f32
    %68 = vector.broadcast %cst_24 : f32 to vector<32x2xf32>
    %cst_25 = arith.constant 0xFF800000 : f32
    %69 = vector.broadcast %cst_25 : f32 to vector<32x32xf32>
    %c0_26 = arith.constant 0 : index
    %c0_27 = arith.constant 0 : index
    %c0_28 = arith.constant 0 : index
    %70 = vector.load %arg4[%c0_26, %c0_27, %c0_28] : memref<4x128x32xbf16, #tpu.memory_space<vmem>>, vector<1x128x32xbf16>
    %71 = vector.shape_cast %70 : vector<1x128x32xbf16> to vector<128x32xbf16>
    %72 = arith.truncf %13 : vector<32x256xf32> to vector<32x256xbf16>
    %cst_29 = arith.constant dense<0.000000e+00> : vector<128x256xf32>
    %73 = tpu.matmul %71, %72, %cst_29 {dimension_numbers = #tpu.dot_dimension_numbers<[1], [0], [0], [1], [0, 0, 1, 1], [], []>} : vector<128x32xbf16>, vector<32x256xbf16>, vector<128x256xf32> -> vector<128x256xf32>
    %c0_30 = arith.constant 0 : index
    %c0_31 = arith.constant 0 : index
    %74 = vector.load %arg7[%c0_30, %c0_31] : memref<128x256xf32, #tpu.memory_space<vmem>>, vector<128x256xf32>
    tpu.vector_store %arg7[%c0_30, %c0_31], %73 {strides = array<i32>} : memref<128x256xf32, #tpu.memory_space<vmem>>, vector<128x256xf32>,
    %75 = tpu.concatenate %68, %13, %68 in 1 : vector<32x2xf32>, vector<32x256xf32>, vector<32x2xf32> -> vector<32x260xf32>
    %76 = vector.extract_strided_slice %75 {offsets = [0, 0], sizes = [32, 256], strides = [1, 1]} : vector<32x260xf32> to vector<32x256xf32>
    %77 = arith.select %39, %76, %67 : vector<32x256xi1>, vector<32x256xf32>
    %78 = arith.maximumf %13, %77 : vector<32x256xf32>
    %79 = vector.extract_strided_slice %75 {offsets = [0, 1], sizes = [32, 256], strides = [1, 1]} : vector<32x260xf32> to vector<32x256xf32>
    %80 = arith.select %48, %79, %67 : vector<32x256xi1>, vector<32x256xf32>
    %81 = arith.maximumf %78, %80 : vector<32x256xf32>
    %82 = vector.extract_strided_slice %75 {offsets = [0, 3], sizes = [32, 256], strides = [1, 1]} : vector<32x260xf32> to vector<32x256xf32>
    %83 = arith.select %57, %82, %67 : vector<32x256xi1>, vector<32x256xf32>
    %84 = arith.maximumf %81, %83 : vector<32x256xf32>
    %85 = vector.extract_strided_slice %75 {offsets = [0, 4], sizes = [32, 256], strides = [1, 1]} : vector<32x260xf32> to vector<32x256xf32>
    %86 = arith.select %66, %85, %67 : vector<32x256xi1>, vector<32x256xf32>
    %87 = arith.maximumf %84, %86 : vector<32x256xf32>
    %88 = tpu.concatenate %69, %87, %69 in 1 : vector<32x32xf32>, vector<32x256xf32>, vector<32x32xf32> -> vector<32x320xf32>
    %89 = vector.extract_strided_slice %88 {offsets = [0, 0], sizes = [32, 256], strides = [1, 1]} : vector<32x320xf32> to vector<32x256xf32>
    %90 = arith.maximumf %87, %89 : vector<32x256xf32>
    %91 = vector.extract_strided_slice %88 {offsets = [0, 16], sizes = [32, 256], strides = [1, 1]} : vector<32x320xf32> to vector<32x256xf32>
    %92 = arith.maximumf %90, %91 : vector<32x256xf32>
    %93 = vector.extract_strided_slice %88 {offsets = [0, 48], sizes = [32, 256], strides = [1, 1]} : vector<32x320xf32> to vector<32x256xf32>
    %94 = arith.maximumf %92, %93 : vector<32x256xf32>
    %95 = vector.extract_strided_slice %88 {offsets = [0, 64], sizes = [32, 256], strides = [1, 1]} : vector<32x320xf32> to vector<32x256xf32>
    %96 = arith.maximumf %94, %95 : vector<32x256xf32>
    %c1 = arith.constant 1 : index
    %c0_32 = arith.constant 0 : index
    %c0_33 = arith.constant 0 : index
    %97 = vector.load %arg4[%c1, %c0_32, %c0_33] : memref<4x128x32xbf16, #tpu.memory_space<vmem>>, vector<1x128x32xbf16>
    %98 = vector.shape_cast %97 : vector<1x128x32xbf16> to vector<128x32xbf16>
    %99 = arith.truncf %96 : vector<32x256xf32> to vector<32x256xbf16>
    %cst_34 = arith.constant dense<0.000000e+00> : vector<128x256xf32>
    %100 = tpu.matmul %98, %99, %cst_34 {dimension_numbers = #tpu.dot_dimension_numbers<[1], [0], [0], [1], [0, 0, 1, 1], [], []>} : vector<128x32xbf16>, vector<32x256xbf16>, vector<128x256xf32> -> vector<128x256xf32>
    %c0_35 = arith.constant 0 : index
    %c0_36 = arith.constant 0 : index
    %101 = vector.load %arg7[%c0_35, %c0_36] : memref<128x256xf32, #tpu.memory_space<vmem>>, vector<128x256xf32>
    %102 = arith.addf %101, %100 : vector<128x256xf32>
    %c0_37 = arith.constant 0 : index
    %c0_38 = arith.constant 0 : index
    %103 = vector.load %arg7[%c0_37, %c0_38] : memref<128x256xf32, #tpu.memory_space<vmem>>, vector<128x256xf32>
    tpu.vector_store %arg7[%c0_37, %c0_38], %102 {strides = array<i32>} : memref<128x256xf32, #tpu.memory_space<vmem>>, vector<128x256xf32>,
    %104 = tpu.concatenate %68, %96, %68 in 1 : vector<32x2xf32>, vector<32x256xf32>, vector<32x2xf32> -> vector<32x260xf32>
    %105 = vector.extract_strided_slice %104 {offsets = [0, 0], sizes = [32, 256], strides = [1, 1]} : vector<32x260xf32> to vector<32x256xf32>
    %106 = arith.select %39, %105, %67 : vector<32x256xi1>, vector<32x256xf32>
    %107 = arith.maximumf %96, %106 : vector<32x256xf32>
    %108 = vector.extract_strided_slice %104 {offsets = [0, 1], sizes = [32, 256], strides = [1, 1]} : vector<32x260xf32> to vector<32x256xf32>
    %109 = arith.select %48, %108, %67 : vector<32x256xi1>, vector<32x256xf32>
    %110 = arith.maximumf %107, %109 : vector<32x256xf32>
    %111 = vector.extract_strided_slice %104 {offsets = [0, 3], sizes = [32, 256], strides = [1, 1]} : vector<32x260xf32> to vector<32x256xf32>
    %112 = arith.select %57, %111, %67 : vector<32x256xi1>, vector<32x256xf32>
    %113 = arith.maximumf %110, %112 : vector<32x256xf32>
    %114 = vector.extract_strided_slice %104 {offsets = [0, 4], sizes = [32, 256], strides = [1, 1]} : vector<32x260xf32> to vector<32x256xf32>
    %115 = arith.select %66, %114, %67 : vector<32x256xi1>, vector<32x256xf32>
    %116 = arith.maximumf %113, %115 : vector<32x256xf32>
    %117 = tpu.concatenate %69, %116, %69 in 1 : vector<32x32xf32>, vector<32x256xf32>, vector<32x32xf32> -> vector<32x320xf32>
    %118 = vector.extract_strided_slice %117 {offsets = [0, 0], sizes = [32, 256], strides = [1, 1]} : vector<32x320xf32> to vector<32x256xf32>
    %119 = arith.maximumf %116, %118 : vector<32x256xf32>
    %120 = vector.extract_strided_slice %117 {offsets = [0, 16], sizes = [32, 256], strides = [1, 1]} : vector<32x320xf32> to vector<32x256xf32>
    %121 = arith.maximumf %119, %120 : vector<32x256xf32>
    %122 = vector.extract_strided_slice %117 {offsets = [0, 48], sizes = [32, 256], strides = [1, 1]} : vector<32x320xf32> to vector<32x256xf32>
    %123 = arith.maximumf %121, %122 : vector<32x256xf32>
    %124 = vector.extract_strided_slice %117 {offsets = [0, 64], sizes = [32, 256], strides = [1, 1]} : vector<32x320xf32> to vector<32x256xf32>
    %125 = arith.maximumf %123, %124 : vector<32x256xf32>
    %c2 = arith.constant 2 : index
    %c0_39 = arith.constant 0 : index
    %c0_40 = arith.constant 0 : index
    %126 = vector.load %arg4[%c2, %c0_39, %c0_40] : memref<4x128x32xbf16, #tpu.memory_space<vmem>>, vector<1x128x32xbf16>
    %127 = vector.shape_cast %126 : vector<1x128x32xbf16> to vector<128x32xbf16>
    %128 = arith.truncf %125 : vector<32x256xf32> to vector<32x256xbf16>
    %cst_41 = arith.constant dense<0.000000e+00> : vector<128x256xf32>
    %129 = tpu.matmul %127, %128, %cst_41 {dimension_numbers = #tpu.dot_dimension_numbers<[1], [0], [0], [1], [0, 0, 1, 1], [], []>} : vector<128x32xbf16>, vector<32x256xbf16>, vector<128x256xf32> -> vector<128x256xf32>
    %c0_42 = arith.constant 0 : index
    %c0_43 = arith.constant 0 : index
    %130 = vector.load %arg7[%c0_42, %c0_43] : memref<128x256xf32, #tpu.memory_space<vmem>>, vector<128x256xf32>
    %131 = arith.addf %130, %129 : vector<128x256xf32>
    %c0_44 = arith.constant 0 : index
    %c0_45 = arith.constant 0 : index
    %132 = vector.load %arg7[%c0_44, %c0_45] : memref<128x256xf32, #tpu.memory_space<vmem>>, vector<128x256xf32>
    tpu.vector_store %arg7[%c0_44, %c0_45], %131 {strides = array<i32>} : memref<128x256xf32, #tpu.memory_space<vmem>>, vector<128x256xf32>,
    %133 = tpu.concatenate %68, %125, %68 in 1 : vector<32x2xf32>, vector<32x256xf32>, vector<32x2xf32> -> vector<32x260xf32>
    %134 = vector.extract_strided_slice %133 {offsets = [0, 0], sizes = [32, 256], strides = [1, 1]} : vector<32x260xf32> to vector<32x256xf32>
    %135 = arith.select %39, %134, %67 : vector<32x256xi1>, vector<32x256xf32>
    %136 = arith.maximumf %125, %135 : vector<32x256xf32>
    %137 = vector.extract_strided_slice %133 {offsets = [0, 1], sizes = [32, 256], strides = [1, 1]} : vector<32x260xf32> to vector<32x256xf32>
    %138 = arith.select %48, %137, %67 : vector<32x256xi1>, vector<32x256xf32>
    %139 = arith.maximumf %136, %138 : vector<32x256xf32>
    %140 = vector.extract_strided_slice %133 {offsets = [0, 3], sizes = [32, 256], strides = [1, 1]} : vector<32x260xf32> to vector<32x256xf32>
    %141 = arith.select %57, %140, %67 : vector<32x256xi1>, vector<32x256xf32>
    %142 = arith.maximumf %139, %141 : vector<32x256xf32>
    %143 = vector.extract_strided_slice %133 {offsets = [0, 4], sizes = [32, 256], strides = [1, 1]} : vector<32x260xf32> to vector<32x256xf32>
    %144 = arith.select %66, %143, %67 : vector<32x256xi1>, vector<32x256xf32>
    %145 = arith.maximumf %142, %144 : vector<32x256xf32>
    %146 = tpu.concatenate %69, %145, %69 in 1 : vector<32x32xf32>, vector<32x256xf32>, vector<32x32xf32> -> vector<32x320xf32>
    %147 = vector.extract_strided_slice %146 {offsets = [0, 0], sizes = [32, 256], strides = [1, 1]} : vector<32x320xf32> to vector<32x256xf32>
    %148 = arith.maximumf %145, %147 : vector<32x256xf32>
    %149 = vector.extract_strided_slice %146 {offsets = [0, 16], sizes = [32, 256], strides = [1, 1]} : vector<32x320xf32> to vector<32x256xf32>
    %150 = arith.maximumf %148, %149 : vector<32x256xf32>
    %151 = vector.extract_strided_slice %146 {offsets = [0, 48], sizes = [32, 256], strides = [1, 1]} : vector<32x320xf32> to vector<32x256xf32>
    %152 = arith.maximumf %150, %151 : vector<32x256xf32>
    %153 = vector.extract_strided_slice %146 {offsets = [0, 64], sizes = [32, 256], strides = [1, 1]} : vector<32x320xf32> to vector<32x256xf32>
    %154 = arith.maximumf %152, %153 : vector<32x256xf32>
    %c3 = arith.constant 3 : index
    %c0_46 = arith.constant 0 : index
    %c0_47 = arith.constant 0 : index
    %155 = vector.load %arg4[%c3, %c0_46, %c0_47] : memref<4x128x32xbf16, #tpu.memory_space<vmem>>, vector<1x128x32xbf16>
    %156 = vector.shape_cast %155 : vector<1x128x32xbf16> to vector<128x32xbf16>
    %157 = arith.truncf %154 : vector<32x256xf32> to vector<32x256xbf16>
    %cst_48 = arith.constant dense<0.000000e+00> : vector<128x256xf32>
    %158 = tpu.matmul %156, %157, %cst_48 {dimension_numbers = #tpu.dot_dimension_numbers<[1], [0], [0], [1], [0, 0, 1, 1], [], []>} : vector<128x32xbf16>, vector<32x256xbf16>, vector<128x256xf32> -> vector<128x256xf32>
    %c0_49 = arith.constant 0 : index
    %c0_50 = arith.constant 0 : index
    %159 = vector.load %arg7[%c0_49, %c0_50] : memref<128x256xf32, #tpu.memory_space<vmem>>, vector<128x256xf32>
    %160 = arith.addf %159, %158 : vector<128x256xf32>
    %c0_51 = arith.constant 0 : index
    %c0_52 = arith.constant 0 : index
    %161 = vector.load %arg7[%c0_51, %c0_52] : memref<128x256xf32, #tpu.memory_space<vmem>>, vector<128x256xf32>
    tpu.vector_store %arg7[%c0_51, %c0_52], %160 {strides = array<i32>} : memref<128x256xf32, #tpu.memory_space<vmem>>, vector<128x256xf32>,
    %c0_53 = arith.constant 0 : index
    %c0_54 = arith.constant 0 : index
    %162 = vector.load %arg7[%c0_53, %c0_54] : memref<128x256xf32, #tpu.memory_space<vmem>>, vector<128x256xf32>
    %c0_55 = arith.constant 0 : index
    %c0_56 = arith.constant 0 : index
    %163 = vector.load %arg5[%c0_55, %c0_56] : memref<128x1xf32, #tpu.memory_space<vmem>>, vector<128x1xf32>
    %164 = vector.broadcast %163 : vector<128x1xf32> to vector<128x256xf32>
    %165 = arith.addf %162, %164 : vector<128x256xf32>
    %cst_57 = arith.constant 0.000000e+00 : f32
    %166 = vector.broadcast %cst_57 : f32 to vector<128x256xf32>
    %167 = arith.subf %166, %165 : vector<128x256xf32>
    %168 = math.exp %167 : vector<128x256xf32>
    %cst_58 = arith.constant 1.000000e+00 : f32
    %169 = vector.broadcast %cst_58 : f32 to vector<128x256xf32>
    %170 = arith.addf %169, %168 : vector<128x256xf32>
    %171 = tpu.reciprocal %170 {approx = true} : vector<128x256xf32> -> vector<128x256xf32>
    %172 = arith.mulf %165, %171 : vector<128x256xf32>
    %c0_59 = arith.constant 0 : index
    %c0_60 = arith.constant 0 : index
    %c0_61 = arith.constant 0 : index
    %173 = vector.load %arg6[%c0_59, %c0_60, %c0_61] : memref<1x128x256xf32, #tpu.memory_space<vmem>>, vector<1x128x256xf32>
    %174 = vector.shape_cast %173 : vector<1x128x256xf32> to vector<128x256xf32>
    %175 = vector.shape_cast %172 : vector<128x256xf32> to vector<1x128x256xf32>
    tpu.vector_store %arg6[%c0_59, %c0_60, %c0_61], %175 {strides = array<i32>} : memref<1x128x256xf32, #tpu.memory_space<vmem>>, vector<1x128x256xf32>,
    return
  }
  func.func @transform_0(%arg0: i32) -> (i32, i32, i32) {
    %c0_i32 = arith.constant 0 : i32
    %c0_i32_0 = arith.constant 0 : i32
    %c0_i32_1 = arith.constant 0 : i32
    return %arg0, %c0_i32, %c0_i32_0 : i32, i32, i32
  }
  func.func @transform_1(%arg0: i32) -> (i32, i32) {
    %c0_i32 = arith.constant 0 : i32
    %c0_i32_0 = arith.constant 0 : i32
    %c0_i32_1 = arith.constant 0 : i32
    return %c0_i32, %c0_i32_0 : i32, i32
  }
  func.func @transform_2(%arg0: i32) -> (i32, i32) {
    %c0_i32 = arith.constant 0 : i32
    %c0_i32_0 = arith.constant 0 : i32
    %c0_i32_1 = arith.constant 0 : i32
    return %c0_i32, %c0_i32_0 : i32, i32
  }
  func.func @transform_3(%arg0: i32) -> (i32, i32, i32) {
    %c0_i32 = arith.constant 0 : i32
    %c0_i32_0 = arith.constant 0 : i32
    %c0_i32_1 = arith.constant 0 : i32
    %c0_i32_2 = arith.constant 0 : i32
    return %c0_i32, %c0_i32_0, %c0_i32_1 : i32, i32, i32
  }
  func.func @transform_4(%arg0: i32) -> (i32, i32) {
    %c0_i32 = arith.constant 0 : i32
    %c0_i32_0 = arith.constant 0 : i32
    %c0_i32_1 = arith.constant 0 : i32
    return %c0_i32, %c0_i32_0 : i32, i32
  }
  func.func @transform_5(%arg0: i32) -> (i32, i32, i32) {
    %c0_i32 = arith.constant 0 : i32
    %c0_i32_0 = arith.constant 0 : i32
    %c0_i32_1 = arith.constant 0 : i32
    return %arg0, %c0_i32, %c0_i32_0 : i32, i32, i32
  }
}

</mosaic_0001>

<bundles_post_ra>
// kernel: spp_forward.1
= control target key start
LH: loop header
LB: loop body
LE: loop exit
PB: predicated region body
PF: predicated region fallthrough
CT: control target
= control target key end

     0   :  { %s4457_s18 = smov 0   ;;  %s6355_s0 = inlined_call_operand.vmem [shape: bf16[2,64,256], index: 0, kind: input, shape index: {}]   ;;  %s6356_s1 = inlined_call_operand.vmem [shape: bf16[32,64], index: 1, kind: input, shape index: {}]   ;;  %s6357_s2 = inlined_call_operand.vmem [shape: f32[32,1], index: 2, kind: input, shape index: {}]   ;;  %s6358_s3 = inlined_call_operand.vmem [shape: bf16[4,128,32], index: 3, kind: input, shape index: {}]   ;;  %s6359_s4 = inlined_call_operand.vmem [shape: f32[128,1], index: 4, kind: input, shape index: {}]   ;;  %s6360_s5 = inlined_call_operand.vmem [shape: f32[2,128,256], index: 5, kind: output, shape index: {}]  }
   0x1 LB: > { %s3380_s19 = sadd.s32 4294967295, %s4416_s18   ;;  %p3384_p0 = scmp.ge.s32.totalorder %s4416_s18, 1  ;;  %s4416_s18 = sphi %s4457_s18, %s15_s18  }
   0x2   : > { %p187_p1 = scmp.lt.s32.totalorder %s4416_s18, 3 }
   0x4   : > { %p188_p2 = pnand %p3384_p0, %p187_p1 }
   0x6   : > { %191 = sbr.rel (%p188_p2) target bundleno = 2201 (0x899), region = 40 }
   0xb   : > { %p215_p3 = scmp.lt.s32.totalorder %s3380_s19, 1  ;;  %v4418_v0 = vmov 0   ;;  %v240_v1 = vld [vmem:[%s6357_s2 + $0x10] sm:$0xff]  ;;  %v238_v2 = vld [vmem:[%s6357_s2] sm:$0xff]  ;;  %v241_v3 = vld [vmem:[%s6357_s2 + $0x18] sm:$0xff]  ;;  %vm312_vm0 = vcmask 523264  }
   0xc   : > { %351 = vmatprep.mubr.bf16.mxu0 %v4418_v0  ;;  %361 = vmatprep.mubr.bf16.mxu1 %v4418_v0  ;;  %v239_v4 = vld [vmem:[%s6357_s2 + $0x8] sm:$0xff]  ;;  %v4216_v13 = vld [vmem:[%s6356_s1] sm:$0xff]   ;;  %s4419_s11 = smov 2   ;;  %vm733_vm1 = vcmask 15360   ;;  %s4420_s12 = smov 125   ;;  %vm806_vm2 = vcmask 1039360  }
   0xd   : > { %s6414_s19 = smov (!%p215_p3, %s3380_s19), 1  ;;  %3542 = vset.pattern.permute.xlu0 %v4418_v0  ;;  %3543 = vset.pattern.permute.xlu1 %v4418_v0  ;;  %v4217_v14 = vld [vmem:[%s6356_s1 + $0x8] sm:$0xff]   ;;  %s4421_s13 = smov 127   ;;  %vm863_vm6 = vcmask 1022976   ;;  %vm920_vm9 = vcmask 1014784   ;;  %vm539_vm13 = vcmask 261120  }
   0xe   : > { %254 = vperm.xlu0 %3542, %v240_v1   ;;  %244 = vperm.xlu1 %3543, %v238_v2   ;;  %s3515_s26 = sshll.u32 %s6414_s19, 6  ;;  %s4422_s14 = smov 124   ;;  %vm1041_vm14 = vcmask 916480   ;;  %vm1090_vm15 = vcmask 654336  }
   0xf   : > { %s219_s6 = scalar_lea.vmem %s6355_s0, %s3515_s26  ;;  %s4423_s15 = smov 32  }
  0x10   : > { %v4204_v5 = vld [vmem:[%s219_s6 + $0x34] ss:$8 sps:$4 sm:$0xff]   ;;  %v4206_v6 = vld [vmem:[%s219_s6 + $0x30] ss:$8 sps:$4 sm:$0xff]   ;;  %v4207_v7 = vld [vmem:[%s219_s6 + $0x24] ss:$8 sps:$4 sm:$0xff]  }
  0x11   : > { %327 = vmatprep.subr.bf16.mxu0 %v4204_v5  ;;  %3517 = vmatprep.subr.bf16.mxu1 %v4204_v5  ;;  %v4209_v8 = vld [vmem:[%s219_s6 + $0x20] ss:$8 sps:$4 sm:$0xff]   ;;  %v4210_v9 = vld [vmem:[%s219_s6 + $0x14] ss:$8 sps:$4 sm:$0xff]   ;;  %v4212_v10 = vld [vmem:[%s219_s6 + $0x10] ss:$8 sps:$4 sm:$0xff]  }
  0x12   : > { %259 = vperm.xlu0 %3542, %v241_v3   ;;  %249 = vperm.xlu1 %3543, %v239_v4   ;;  %v4213_v11 = vld [vmem:[%s219_s6 + $0x4] ss:$8 sps:$4 sm:$0xff]   ;;  %v4215_v12 = vld [vmem:[%s219_s6] ss:$8 sps:$4 sm:$0xff]   ;;  %s4424_s16 = smov 80   ;;  %s4425_s17 = smov 112  }
  0x13   : > { %328 = vmatpush1.bf16.msra.mxu0 %v4206_v6  ;;  %3521 = vmatpush1.bf16.msra.mxu1 %v4206_v6  ;;  %s4426_s20 = smov 64   ;;  %s3516_s6 = sshll.u32 %s6414_s19, 8 }
  0x14   : > { %329 = vmatprep.subr.bf16.mxu0 %v4207_v7  ;;  %3518 = vmatprep.subr.bf16.mxu1 %v4207_v7  ;;  %s6223_s8 = scalar_lea.vmem %s6360_s5, %s3516_s6 }
  0x17   : > { %330 = vmatpush1.bf16.msra.mxu0 %v4209_v8  ;;  %3522 = vmatpush1.bf16.msra.mxu1 %v4209_v8 }
  0x18   : > { %331 = vmatprep.subr.bf16.mxu0 %v4210_v9  ;;  %3519 = vmatprep.subr.bf16.mxu1 %v4210_v9 }
  0x1b   : > { %332 = vmatpush1.bf16.msra.mxu0 %v4212_v10  ;;  %3523 = vmatpush1.bf16.msra.mxu1 %v4212_v10 }
  0x1c   : > { %333 = vmatprep.subr.bf16.mxu0 %v4213_v11  ;;  %3520 = vmatprep.subr.bf16.mxu1 %v4213_v11 }
  0x1f   : > { %334 = vmatpush1.bf16.msra.mxu0 %v4215_v12  ;;  %3524 = vmatpush1.bf16.msra.mxu1 %v4215_v12 }
  0x22   : > { %3399 = vmatmul.mubr.msk.bf16.vlgmr.msra.gmra.mxu0 %vm312_vm0, %v4216_v13  ;;  %3400 = vmatmul.mubr.msk.bf16.vlgmr.msra.gmra.mxu1 %vm312_vm0, %v4217_v14 }
  0x23   : > { %596 = vmatprep.mubr.bf16.mxu1 %v4418_v0  ;;  %1280 = vmatprep.mubr.bf16.mxu0 %v4418_v0 }
  0x89   : > { %v245_v15 = vpop.permute.xlu1 %244  ;;  %v255_v16 = vpop.permute.xlu0 %254 }
  0x8d   : > { %v250_v27 = vpop.permute.xlu1 %249  ;;  %v260_v32 = vpop.permute.xlu0 %259 }
  0xe2   : > { %v353_v17 = vpop.f32.mrf.mxu0  ;;  %v363_v18 = vpop.f32.mrf.mxu1 }
  0xe3   : > { %v4497_v19 = vadd.f32 %v353_v17, %v245_v15  ;;  %v4499_v20 = vadd.f32 %v363_v18, %v255_v16 }
  0xe4   : > { %v355_v21 = vpop.f32.mrf.mxu0  ;;  %v365_v22 = vpop.f32.mrf.mxu1 }
  0xe5   : > { %v372_v23 = vsub.f32 0.0, %v4497_v19  ;;  %v376_v24 = vsub.f32 0.0, %v4499_v20  ;;  %v4503_v25 = vadd.f32 %v355_v21, %v245_v15  ;;  %v366_v26 = vadd.f32 %v365_v22, %v255_v16 }
  0xe6   : > { %v357_v28 = vpop.f32.mrf.mxu0  ;;  %v367_v29 = vpop.f32.mrf.mxu1 }
  0xe7   : > { %v380_v30 = vmul.f32 1.442695, %v372_v23  ;;  %v388_v31 = vmul.f32 1.442695, %v376_v24  ;;  %v373_v33 = vsub.f32 0.0, %v4503_v25  ;;  %v377_v34 = vsub.f32 0.0, %v366_v26 }
  0xe8   : > { %v4506_v35 = vadd.f32 %v357_v28, %v250_v27  ;;  %v368_v36 = vadd.f32 %v367_v29, %v260_v32  ;;  %v359_v37 = vpop.f32.mrf.mxu0  ;;  %v369_v38 = vpop.f32.mrf.mxu1 }
  0xe9   : > { %4250 = vpow2.f32 %v380_v30  ;;  %v382_v39 = vmul.f32 1.442695, %v373_v33  ;;  %v390_v40 = vmul.f32 1.442695, %v377_v34  ;;  %v360_v41 = vadd.f32 %v359_v37, %v250_v27 }
  0xea   : > { %4252 = vpow2.f32 %v388_v31  ;;  %v374_v42 = vsub.f32 0.0, %v4506_v35  ;;  %v378_v43 = vsub.f32 0.0, %v368_v36  ;;  %v370_v44 = vadd.f32 %v369_v38, %v260_v32 }
  0xeb   : > { %4254 = vpow2.f32 %v382_v39  ;;  %v375_v45 = vsub.f32 0.0, %v360_v41 }
  0xec   : > { %4256 = vpow2.f32 %v390_v40  ;;  %v384_v46 = vmul.f32 1.442695, %v374_v42  ;;  %v392_v47 = vmul.f32 1.442695, %v378_v43  ;;  %v379_v48 = vsub.f32 0.0, %v370_v44 }
  0xed   : > { %v386_v49 = vmul.f32 1.442695, %v375_v45 }
  0xee   : > { %4258 = vpow2.f32 %v384_v46  ;;  %v394_v50 = vmul.f32 1.442695, %v379_v48 }
  0xef   : > { %4260 = vpow2.f32 %v392_v47 }
  0xf0   : > { %4262 = vpow2.f32 %v386_v49 }
  0xf1   : > { %4264 = vpow2.f32 %v394_v50 }
  0xf6   : > { %v4251_v51 = vpop.eup %4250 }
  0xf7   : > { %v4253_v52 = vpop.eup %4252  ;;  %v396_v57 = vadd.f32 1.0, %v4251_v51 }
  0xf8   : > { %v4255_v53 = vpop.eup %4254  ;;  %v400_v54 = vadd.f32 1.0, %v4253_v52 }
  0xf9   : > { %v4257_v55 = vpop.eup %4256  ;;  %v397_v56 = vadd.f32 1.0, %v4255_v53 }
  0xfa   : > { %4266 = vrcp.f32 %v400_v54  ;;  %v401_v58 = vadd.f32 1.0, %v4257_v55 }
  0xfb   : > { %v4259_v59 = vpop.eup %4258  ;;  %4268 = vrcp.f32 %v397_v56 }
  0xfc   : > { %v4261_v60 = vpop.eup %4260  ;;  %4270 = vrcp.f32 %v401_v58  ;;  %v398_v1 = vadd.f32 1.0, %v4259_v59  ;;  %v420_v58 = vlaneseq }
  0xfd   : > { %v4263_v61 = vpop.eup %4262  ;;  %v402_v62 = vadd.f32 1.0, %v4261_v60  ;;  %4272 = vrcp.f32 %v396_v57 }
  0xfe   : > { %v4265_v63 = vpop.eup %4264  ;;  %v399_v2 = vadd.f32 1.0, %v4263_v61  ;;  %v421_v59 = vand.u32 127, %v420_v58 }
  0xff   : > { %4274 = vrcp.f32 %v402_v62  ;;  %v403_v3 = vadd.f32 1.0, %v4265_v63 }
 0x100   : > { %4276 = vrcp.f32 %v399_v2  ;;  %v422_v60 = vadd.s32 128, %v421_v59  ;;  %v427_v61 = vand.u32 15, %v421_v59 }
 0x101   : > { %4278 = vrcp.f32 %v403_v3 }
 0x102   : > { %4280 = vrcp.f32 %v398_v1  ;;  %v434_v62 = vand.u32 15, %v422_v60  ;;  %v4594_v63 = vadd.s32 4294967294, %v427_v61  ;;  %v4598_v2 = vadd.s32 4294967295, %v427_v61 }
 0x104   : > { %v4596_v1 = vadd.s32 4294967294, %v434_v62  ;;  %vm449_vm3 = vcmp.ge.s32.totalorder %v4594_v63, 0  ;;  %vm457_vm5 = vcmp.ge.s32.totalorder %v4598_v2, 0 }
 0x106   : > { %vm450_vm4 = vcmp.ge.s32.totalorder %v4596_v1, 0 }
 0x107   : > { %v4267_v4 = vpop.eup %4266 }
 0x108   : > { %v4269_v5 = vpop.eup %4268  ;;  %v4510_v7 = vmul.f32 %v4267_v4, %v4499_v20 }
 0x109   : > { %v4271_v6 = vpop.eup %4270  ;;  %v4515_v11 = vmul.f32 %v4269_v5, %v4503_v25 }
 0x10a   : > { %v4512_v8 = vmul.f32 %v4271_v6, %v366_v26  ;;  %v4273_v9 = vpop.eup %4272 }
 0x10b   : > { %v4520_v15 = vmul.f32 %v4273_v9, %v4497_v19 }
 0x10c   : > { %v4275_v10 = vpop.eup %4274  ;;  %v3544_v12 = vpack.i.bf16 %v4512_v8, %v4510_v7 }
 0x10d   : > { %v4277_v13 = vpop.eup %4276  ;;  %v4522_v16 = vmul.f32 %v4275_v10, %v368_v36  ;;  %v3549_v21 = vpack.i.bf16 %v4515_v11, %v4520_v15 }
 0x10e   : > { %v4279_v14 = vpop.eup %4278  ;;  %3545 = vrot.lane.b32.xlu0 %v3544_v12, %s4419_s11  ;;  %v4525_v18 = vmul.f32 %v4277_v13, %v360_v41  ;;  %v4610_v13 = vadd.s32 4294967295, %v434_v62 }
 0x10f   : > { %v4281_v17 = vpop.eup %4280  ;;  %v4527_v20 = vmul.f32 %v4279_v14, %v370_v44  ;;  %v497_v24 = vpack.c.bf16 %v4522_v16, %v4510_v7  ;;  %v4612_v14 = vadd.s32 1, %v427_v61 }
 0x110   : > { %v4536_v23 = vmul.f32 %v4281_v17, %v4506_v35  ;;  %v496_v25 = vpack.c.bf16 %v4525_v18, %v4515_v11  ;;  %vm458_vm7 = vcmp.ge.s32.totalorder %v4610_v13, 0 }
 0x111   : > { %v3554_v22 = vpack.i.bf16 %v4527_v20, %v4522_v16  ;;  %v498_v19 = vpack.c.bf16 %v4527_v20, %v4512_v8  ;;  %vm467_vm8 = vcmp.le.s32.totalorder %v4612_v14, 15 }
 0x112   : > { %3550 = vrot.lane.b32.xlu0 %v3549_v21, %s4419_s11  ;;  %v3559_v26 = vpack.i.bf16 %v4525_v18, %v4536_v23  ;;  %v495_v27 = vpack.c.bf16 %v4536_v23, %v4520_v15 }
 0x113   : > { %3555 = vrot.lane.b32.xlu1 %v3554_v22, %s4419_s11  ;;  %576 = vmatprep.subr.bf16.mxu1 %v498_v19  ;;  %v4622_v19 = vadd.s32 2, %v427_v61 }
 0x114   : > { %577 = vmatpush1.bf16.msra.mxu1 %v497_v24 }
 0x115   : > { %578 = vmatprep.subr.bf16.mxu1 %v496_v25  ;;  %vm475_vm10 = vcmp.le.s32.totalorder %v4622_v19, 15 }
 0x117   : > { %3560 = vrot.lane.b32.xlu1 %v3559_v26, %s4419_s11 }
 0x118   : > { %579 = vmatpush1.bf16.msra.mxu1 %v495_v27 }
 0x180   : > { %v3546_v28 = vpop.permute.xlu0 %3545 }
 0x181   : > { %v3548_v29 = vunpack.i.h.bf16 %v3546_v28  ;;  %v3547_v30 = vunpack.i.l.bf16 %v3546_v28 }
 0x183   : > { %v4550_v31 = vsel %vm733_vm1, -inf, %v3547_v30  ;;  %v4553_v32 = vsel %vm733_vm1, %v3547_v30, %v3548_v29  ;;  %v756_v45 = vsel %vm733_vm1, %v3548_v29, -inf }
 0x184   : > { %v3551_v33 = vpop.permute.xlu0 %3550  ;;  %v3569_v34 = vpack.i.bf16 %v4553_v32, %v4550_v31  ;;  %v762_v17 = vsel %vm449_vm3, %v4550_v31, -inf  ;;  %v763_v22 = vsel %vm450_vm4, %v4553_v32, -inf }
 0x185   : > { %v3556_v35 = vpop.permute.xlu1 %3555  ;;  %v3553_v36 = vunpack.i.h.bf16 %v3551_v33  ;;  %v3552_v37 = vunpack.i.l.bf16 %v3551_v33  ;;  %v770_v32 = vmax.f32 %v4510_v7, %v762_v17  ;;  %v771_v7 = vmax.f32 %v4512_v8, %v763_v22 }
 0x186   : > { %3570 = vrot.lane.b32.xlu1 %v3569_v34, %s4420_s12  ;;  %3565 = vrot.lane.b32.xlu0 %v3569_v34, %s4421_s13  ;;  %v3557_v41 = vunpack.i.l.bf16 %v3556_v35  ;;  %v3558_v47 = vunpack.i.h.bf16 %v3556_v35 }
 0x187   : > { %v750_v38 = vsel %vm733_vm1, -inf, %v3552_v37  ;;  %v4561_v39 = vsel %vm733_vm1, %v3552_v37, %v3553_v36  ;;  %v754_v49 = vsel %vm733_vm1, %v3553_v36, -inf }
 0x188   : > { %v3574_v40 = vpack.i.bf16 %v4561_v39, %v750_v38  ;;  %v753_v43 = vsel %vm733_vm1, -inf, %v3557_v41  ;;  %v757_v51 = vsel %vm733_vm1, %v3558_v47, -inf  ;;  %v737_v53 = vsel %vm733_vm1, %v3557_v41, %v3558_v47 }
 0x189   : > { %v3561_v42 = vpop.permute.xlu1 %3560  ;;  %v3594_v46 = vpack.i.bf16 %v753_v43, %v756_v45  ;;  %v3619_v54 = vpack.i.bf16 %v757_v51, %v737_v53  ;;  %v758_v21 = vsel %vm449_vm3, %v750_v38, -inf  ;;  %v4626_v24 = vsel %vm449_vm3, %v753_v43, -inf }
 0x18a   : > { %3580 = vrot.lane.b32.xlu1 %v3569_v34, %s4422_s14  ;;  %3575 = vrot.lane.b32.xlu0 %v3574_v40, %s4421_s13  ;;  %v3562_v44 = vunpack.i.l.bf16 %v3561_v42  ;;  %v3563_v52 = vunpack.i.h.bf16 %v3561_v42  ;;  %v772_v35 = vmax.f32 %v4522_v16, %v4626_v24  ;;  %v766_v36 = vmax.f32 %v4520_v15, %v758_v21 }
 0x18b   : > { %v4649_v37 = vsel %vm450_vm4, %v4561_v39, -inf  ;;  %v4654_v38 = vsel %vm450_vm4, %v737_v53, -inf  ;;  %v4657_v41 = vadd.s32 1, %v434_v62  ;;  %v4674_v51 = vadd.s32 2, %v434_v62 }
 0x18c   : > { %v4571_v48 = vsel %vm733_vm1, -inf, %v3562_v44  ;;  %v755_v55 = vsel %vm733_vm1, %v3563_v52, -inf  ;;  %v4583_v56 = vsel %vm733_vm1, %v3562_v44, %v3563_v52  ;;  %v773_v60 = vmax.f32 %v4527_v20, %v4654_v38 }
 0x18d   : > { %v3604_v50 = vpack.i.bf16 %v4571_v48, %v754_v49  ;;  %v3629_v57 = vpack.i.bf16 %v755_v55, %v4583_v56  ;;  %v4662_v15 = vsel %vm449_vm3, %v4571_v48, -inf  ;;  %vm468_vm11 = vcmp.le.s32.totalorder %v4657_v41, 15 }
 0x18e   : > { %3590 = vrot.lane.b32.xlu1 %v3574_v40, %s4422_s14  ;;  %3585 = vrot.lane.b32.xlu0 %v3574_v40, %s4420_s12  ;;  %v768_v53 = vmax.f32 %v4536_v23, %v4662_v15  ;;  %vm476_vm12 = vcmp.le.s32.totalorder %v4674_v51, 15  ;;  %v767_v17 = vmax.f32 %v4515_v11, %v4649_v37  ;;  %v4219_v51 = vld [vmem:[%s6358_s3 + $0x8] sm:$0xff]  }
 0x192   : > { %3595 = vrot.lane.b32.xlu1 %v3594_v46, %s4421_s13  ;;  %3600 = vrot.lane.b32.xlu0 %v3594_v46, %s4420_s12 }
 0x196   : > { %3605 = vrot.lane.b32.xlu1 %v3604_v50, %s4421_s13  ;;  %3610 = vrot.lane.b32.xlu0 %v3594_v46, %s4422_s14 }
 0x19a   : > { %3615 = vrot.lane.b32.xlu1 %v3604_v50, %s4420_s12  ;;  %3620 = vrot.lane.b32.xlu0 %v3619_v54, %s4421_s13 }
 0x19e   : > { %3625 = vrot.lane.b32.xlu1 %v3619_v54, %s4420_s12  ;;  %3630 = vrot.lane.b32.xlu0 %v3629_v57, %s4421_s13 }
 0x1a2   : > { %3635 = vrot.lane.b32.xlu1 %v3619_v54, %s4422_s14  ;;  %3640 = vrot.lane.b32.xlu0 %v3629_v57, %s4420_s12  ;;  %v4683_v54 = vsel %vm450_vm4, %v4583_v56, -inf }
 0x1a3   : > { %v769_v20 = vmax.f32 %v4525_v18, %v4683_v54 }
 0x1a6   : > { %3650 = vrot.lane.b32.xlu1 %v3629_v57, %s4422_s14  ;;  %3645 = vrot.lane.b32.xlu0 %v3604_v50, %s4422_s14 }
 0x1f8   : > { %v4600_v3 = vpop.permute.xlu1 %3570  ;;  %v3566_v4 = vpop.permute.xlu0 %3565 }
 0x1f9   : > { %v3568_v5 = vunpack.i.h.bf16 %v3566_v4  ;;  %v3567_v6 = vunpack.i.l.bf16 %v3566_v4  ;;  %v3573_v25 = vunpack.i.h.bf16 %v4600_v3  ;;  %v3572_v26 = vunpack.i.l.bf16 %v4600_v3 }
 0x1fb   : > { %v811_v9 = vsel %vm806_vm2, %v3567_v6, %v3568_v5  ;;  %v868_v40 = vsel %vm863_vm6, %v3572_v26, %v3573_v25 }
 0x1fc   : > { %v4606_v10 = vpop.permute.xlu1 %3580  ;;  %v4608_v12 = vpop.permute.xlu0 %3575  ;;  %v827_v27 = vsel %vm457_vm5, %v811_v9, -inf  ;;  %v884_v52 = vsel %vm467_vm8, %v868_v40, -inf }
 0x1fd   : > { %v3583_v28 = vunpack.i.h.bf16 %v4606_v10  ;;  %v3582_v29 = vunpack.i.l.bf16 %v4606_v10  ;;  %v3578_v30 = vunpack.i.h.bf16 %v4608_v12  ;;  %v3577_v31 = vunpack.i.l.bf16 %v4608_v12 }
 0x1fe   : > { %v835_v42 = vmax.f32 %v770_v32, %v827_v27 }
 0x1ff   : > { %v807_v43 = vsel %vm806_vm2, %v3577_v31, %v3578_v30  ;;  %v925_v8 = vsel %vm920_vm9, %v3582_v29, %v3583_v28 }
 0x200   : > { %v4637_v33 = vpop.permute.xlu1 %3590  ;;  %v4639_v34 = vpop.permute.xlu0 %3585  ;;  %v892_v55 = vmax.f32 %v835_v42, %v884_v52  ;;  %v823_v57 = vsel %vm457_vm5, %v807_v43, -inf  ;;  %v941_v59 = vsel %vm475_vm10, %v925_v8, -inf }
 0x201   : > { %v3593_v39 = vunpack.i.h.bf16 %v4637_v33  ;;  %v3592_v44 = vunpack.i.l.bf16 %v4637_v33  ;;  %v3588_v45 = vunpack.i.h.bf16 %v4639_v34  ;;  %v3587_v46 = vunpack.i.l.bf16 %v4639_v34 }
 0x202   : > { %v4706_v12 = vmax.f32 %v892_v55, %v941_v59  ;;  %v4710_v21 = vmax.f32 %v766_v36, %v823_v57 }
 0x203   : > { %v864_v61 = vsel %vm863_vm6, %v3587_v46, %v3588_v45 }
 0x204   : > { %v3596_v47 = vpop.permute.xlu1 %3595  ;;  %v4671_v49 = vpop.permute.xlu0 %3600  ;;  %v4717_v26 = vsel %vm467_vm8, %v864_v61, -inf }
 0x205   : > { %v3597_v50 = vunpack.i.l.bf16 %v3596_v47  ;;  %v3602_v48 = vunpack.i.l.bf16 %v4671_v49  ;;  %v3598_v27 = vunpack.i.h.bf16 %v3596_v47  ;;  %v3603_v36 = vunpack.i.h.bf16 %v4671_v49 }
 0x206   : > { %v888_v43 = vmax.f32 %v4710_v21, %v4717_v26 }
 0x207   : > { %v812_v58 = vsel %vm806_vm2, %v3568_v5, %v3597_v50  ;;  %v869_v62 = vsel %vm863_vm6, %v3573_v25, %v3602_v48  ;;  %v921_v5 = vsel %vm920_vm9, %v3592_v44, %v3593_v39 }
 0x208   : > { %v828_v56 = vsel %vm458_vm7, %v812_v58, -inf  ;;  %v3606_v3 = vpop.permute.xlu1 %3605  ;;  %v4697_v4 = vpop.permute.xlu0 %3610  ;;  %v885_v22 = vsel %vm468_vm11, %v869_v62, -inf  ;;  %v4721_v18 = vsel %vm475_vm10, %v921_v5, -inf }
 0x209   : > { %v3607_v6 = vunpack.i.l.bf16 %v3606_v3  ;;  %v3612_v9 = vunpack.i.l.bf16 %v4697_v4  ;;  %v836_v10 = vmax.f32 %v771_v7, %v828_v56  ;;  %v3608_v38 = vunpack.i.h.bf16 %v3606_v3 }
 0x20a   : > { %v3613_v40 = vunpack.i.h.bf16 %v4697_v4  ;;  %v4801_v33 = vmax.f32 %v888_v43, %v4721_v18 }
 0x20b   : > { %v926_v25 = vsel %vm920_vm9, %v3583_v28, %v3612_v9  ;;  %v808_v29 = vsel %vm806_vm2, %v3578_v30, %v3607_v6  ;;  %v893_v32 = vmax.f32 %v836_v10, %v885_v22 }
 0x20c   : > { %v3616_v31 = vpop.permute.xlu1 %3615  ;;  %v3621_v11 = vpop.permute.xlu0 %3620  ;;  %v942_v34 = vsel %vm476_vm12, %v926_v25, -inf  ;;  %v824_v30 = vsel %vm458_vm7, %v808_v29, -inf }
 0x20d   : > { %v3617_v28 = vunpack.i.l.bf16 %v3616_v31  ;;  %v3623_v37 = vunpack.i.h.bf16 %v3621_v11  ;;  %v3622_v7 = vunpack.i.l.bf16 %v3621_v11  ;;  %v4728_v42 = vmax.f32 %v893_v32, %v942_v34 }
 0x20e   : > { %v3618_v47 = vunpack.i.h.bf16 %v3616_v31  ;;  %v832_v56 = vmax.f32 %v767_v17, %v824_v30 }
 0x20f   : > { %v865_v8 = vsel %vm863_vm6, %v3588_v45, %v3617_v28  ;;  %v813_v44 = vsel %vm806_vm2, %v3598_v27, %v3622_v7  ;;  %v814_v46 = vsel %vm806_vm2, %v3622_v7, %v3623_v37  ;;  %v3654_v54 = vpack.i.bf16 %v4728_v42, %v4706_v12 }
 0x210   : > { %v829_v49 = vsel %vm457_vm5, %v813_v44, -inf  ;;  %v830_v50 = vsel %vm458_vm7, %v814_v46, -inf  ;;  %v3626_v48 = vpop.permute.xlu1 %3625  ;;  %v3631_v52 = vpop.permute.xlu0 %3630  ;;  %v881_v62 = vsel %vm468_vm11, %v865_v8, -inf }
 0x211   : > { %v3628_v55 = vunpack.i.h.bf16 %v3626_v48  ;;  %v3627_v57 = vunpack.i.l.bf16 %v3626_v48  ;;  %v3633_v58 = vunpack.i.h.bf16 %v3631_v52  ;;  %v3632_v45 = vunpack.i.l.bf16 %v3631_v52  ;;  %3655 = vrot.lane.b32.xlu0 %v3654_v54, %s4423_s15 }
 0x212   : > { %v837_v59 = vmax.f32 %v772_v35, %v829_v49  ;;  %v838_v61 = vmax.f32 %v773_v60, %v830_v50  ;;  %v889_v50 = vmax.f32 %v832_v56, %v881_v62 }
 0x213   : > { %v870_v3 = vsel %vm863_vm6, %v3603_v36, %v3627_v57  ;;  %v871_v4 = vsel %vm863_vm6, %v3627_v57, %v3628_v55  ;;  %v809_v5 = vsel %vm806_vm2, %v3608_v38, %v3632_v45  ;;  %v810_v6 = vsel %vm806_vm2, %v3632_v45, %v3633_v58 }
 0x214   : > { %v825_v9 = vsel %vm457_vm5, %v809_v5, -inf  ;;  %v826_v16 = vsel %vm458_vm7, %v810_v6, -inf  ;;  %v3636_v24 = vpop.permute.xlu1 %3635  ;;  %v3641_v35 = vpop.permute.xlu0 %3640  ;;  %v886_v60 = vsel %vm467_vm8, %v870_v3, -inf  ;;  %v887_v10 = vsel %vm468_vm11, %v871_v4, -inf }
 0x215   : > { %v3638_v17 = vunpack.i.h.bf16 %v3636_v24  ;;  %v3637_v22 = vunpack.i.l.bf16 %v3636_v24  ;;  %v3643_v25 = vunpack.i.h.bf16 %v3641_v35  ;;  %v3642_v27 = vunpack.i.l.bf16 %v3641_v35 }
 0x216   : > { %v894_v29 = vmax.f32 %v837_v59, %v886_v60  ;;  %v895_v31 = vmax.f32 %v838_v61, %v887_v10  ;;  %v833_v11 = vmax.f32 %v768_v53, %v825_v9  ;;  %v834_v32 = vmax.f32 %v769_v20, %v826_v16 }
 0x217   : > { %v866_v34 = vsel %vm863_vm6, %v3618_v47, %v3642_v27  ;;  %v867_v36 = vsel %vm863_vm6, %v3642_v27, %v3643_v25  ;;  %v927_v28 = vsel %vm920_vm9, %v3613_v40, %v3637_v22  ;;  %v928_v37 = vsel %vm920_vm9, %v3637_v22, %v3638_v17 }
 0x218   : > { %v3651_v7 = vpop.permute.xlu1 %3650  ;;  %v3646_v38 = vpop.permute.xlu0 %3645  ;;  %v943_v30 = vsel %vm475_vm10, %v927_v28, -inf  ;;  %v944_v8 = vsel %vm476_vm12, %v928_v37, -inf  ;;  %v882_v23 = vsel %vm467_vm8, %v866_v34, -inf  ;;  %v883_v15 = vsel %vm468_vm11, %v867_v36, -inf }
 0x219   : > { %v3653_v53 = vunpack.i.h.bf16 %v3651_v7  ;;  %v3652_v20 = vunpack.i.l.bf16 %v3651_v7  ;;  %v3648_v44 = vunpack.i.h.bf16 %v3646_v38  ;;  %v3647_v40 = vunpack.i.l.bf16 %v3646_v38 }
 0x21a   : > { %v4776_v46 = vmax.f32 %v894_v29, %v943_v30  ;;  %v4778_v47 = vmax.f32 %v895_v31, %v944_v8  ;;  %v890_v49 = vmax.f32 %v833_v11, %v882_v23  ;;  %v891_v48 = vmax.f32 %v834_v32, %v883_v15 }
 0x21b   : > { %v923_v52 = vsel %vm920_vm9, %v3648_v44, %v3652_v20  ;;  %v924_v54 = vsel %vm920_vm9, %v3652_v20, %v3653_v53  ;;  %v922_v55 = vsel %vm920_vm9, %v3593_v39, %v3647_v40 }
 0x21c   : > { %v3664_v57 = vpack.i.bf16 %v4778_v47, %v4776_v46  ;;  %v939_v58 = vsel %vm475_vm10, %v923_v52, -inf  ;;  %v940_v45 = vsel %vm476_vm12, %v924_v54, -inf  ;;  %v938_v59 = vsel %vm476_vm12, %v922_v55, -inf }
 0x21d   : > { %v4793_v61 = vmax.f32 %v890_v49, %v939_v58  ;;  %v4795_v56 = vmax.f32 %v891_v48, %v940_v45  ;;  %v4803_v39 = vmax.f32 %v889_v50, %v938_v59 }
 0x21e   : > { %3665 = vrot.lane.b32.xlu1 %v3664_v57, %s4423_s15 }
 0x21f   : > { %v3669_v62 = vpack.i.bf16 %v4795_v56, %v4793_v61  ;;  %v3659_v3 = vpack.i.bf16 %v4803_v39, %v4801_v33 }
 0x221   : > { %3660 = vrot.lane.b32.xlu0 %v3659_v3, %s4423_s15 }
 0x222   : > { %3670 = vrot.lane.b32.xlu1 %v3669_v62, %s4423_s15 }
 0x283   : > { %v3656_v4 = vpop.permute.xlu0 %3655 }
 0x284   : > { %v3658_v5 = vunpack.i.h.bf16 %v3656_v4  ;;  %v3657_v21 = vunpack.i.l.bf16 %v3656_v4 }
 0x286   : > { %v4813_v26 = vsel %vm539_vm13, -inf, %v3657_v21  ;;  %v4816_v18 = vsel %vm539_vm13, %v3657_v21, %v3658_v5  ;;  %v999_v29 = vsel %vm539_vm13, %v3658_v5, -inf }
 0x287   : > { %v3679_v43 = vpack.i.bf16 %v4816_v18, %v4813_v26  ;;  %v1005_v52 = vmax.f32 %v4706_v12, %v4813_v26 }
 0x289   : > { %3680 = vrot.lane.b32.xlu1 %v3679_v43, %s4424_s16  ;;  %3675 = vrot.lane.b32.xlu0 %v3679_v43, %s4425_s17 }
 0x28d   : > { %3690 = vrot.lane.b32.xlu1 %v3679_v43, %s4426_s20 }
 0x290   : > { %v3666_v6 = vpop.permute.xlu1 %3665 }
 0x291   : > { %v3667_v16 = vunpack.i.l.bf16 %v3666_v6  ;;  %v3668_v22 = vunpack.i.h.bf16 %v3666_v6 }
 0x293   : > { %v3661_v9 = vpop.permute.xlu0 %3660  ;;  %v4832_v25 = vsel %vm539_vm13, -inf, %v3667_v16  ;;  %v1000_v11 = vsel %vm539_vm13, %v3668_v22, -inf  ;;  %v4840_v34 = vsel %vm539_vm13, %v3667_v16, %v3668_v22 }
 0x294   : > { %v3663_v24 = vunpack.i.h.bf16 %v3661_v9  ;;  %v3662_v35 = vunpack.i.l.bf16 %v3661_v9  ;;  %v3671_v27 = vpop.permute.xlu1 %3670  ;;  %v3704_v31 = vpack.i.bf16 %v4832_v25, %v999_v29  ;;  %v3719_v36 = vpack.i.bf16 %v1000_v11, %v4840_v34 }
 0x295   : > { %v3672_v32 = vunpack.i.l.bf16 %v3671_v27  ;;  %v3673_v7 = vunpack.i.h.bf16 %v3671_v27  ;;  %v1006_v27 = vmax.f32 %v4728_v42, %v4816_v18 }
 0x296   : > { %v4824_v60 = vsel %vm539_vm13, -inf, %v3662_v35  ;;  %v4827_v10 = vsel %vm539_vm13, %v3662_v35, %v3663_v24  ;;  %v997_v37 = vsel %vm539_vm13, %v3663_v24, -inf  ;;  %v1007_v35 = vmax.f32 %v4776_v46, %v4832_v25 }
 0x297   : > { %v3699_v17 = vpack.i.bf16 %v4827_v10, %v4824_v60  ;;  %v4846_v28 = vsel %vm539_vm13, -inf, %v3672_v32  ;;  %v998_v30 = vsel %vm539_vm13, %v3673_v7, -inf  ;;  %v4855_v8 = vsel %vm539_vm13, %v3672_v32, %v3673_v7 }
 0x298   : > { %v3724_v38 = vpack.i.bf16 %v4846_v28, %v997_v37  ;;  %v3729_v23 = vpack.i.bf16 %v998_v30, %v4855_v8  ;;  %v1001_v22 = vmax.f32 %v4801_v33, %v4824_v60  ;;  %v1002_v11 = vmax.f32 %v4803_v39, %v4827_v10 }
 0x299   : > { %3700 = vrot.lane.b32.xlu1 %v3699_v17, %s4426_s20  ;;  %3685 = vrot.lane.b32.xlu0 %v3699_v17, %s4425_s17  ;;  %v1004_v32 = vmax.f32 %v4795_v56, %v4855_v8 }
 0x29d   : > { %3705 = vrot.lane.b32.xlu1 %v3704_v31, %s4425_s17  ;;  %3695 = vrot.lane.b32.xlu0 %v3699_v17, %s4424_s16  ;;  %v1003_v17 = vmax.f32 %v4793_v61, %v4846_v28 }
 0x2a1   : > { %3720 = vrot.lane.b32.xlu1 %v3719_v36, %s4424_s16  ;;  %3710 = vrot.lane.b32.xlu0 %v3719_v36, %s4425_s17 }
 0x2a5   : > { %3725 = vrot.lane.b32.xlu1 %v3724_v38, %s4425_s17  ;;  %3715 = vrot.lane.b32.xlu0 %v3704_v31, %s4424_s16 }
 0x2a9   : > { %3740 = vrot.lane.b32.xlu1 %v3719_v36, %s4426_s20  ;;  %3730 = vrot.lane.b32.xlu0 %v3729_v23, %s4425_s17 }
 0x2ad   : > { %3745 = vrot.lane.b32.xlu1 %v3724_v38, %s4424_s16  ;;  %3735 = vrot.lane.b32.xlu0 %v3704_v31, %s4426_s20  ;;  %v1008_v31 = vmax.f32 %v4778_v47, %v4840_v34 }
 0x2b1   : > { %3760 = vrot.lane.b32.xlu1 %v3729_v23, %s4426_s20  ;;  %3750 = vrot.lane.b32.xlu0 %v3729_v23, %s4424_s16 }
 0x2b5   : > { %3755 = vrot.lane.b32.xlu0 %v3724_v38, %s4426_s20 }
 0x2fb   : > { %v4866_v15 = vpop.permute.xlu1 %3680  ;;  %v3676_v53 = vpop.permute.xlu0 %3675 }
 0x2fc   : > { %v3678_v44 = vunpack.i.h.bf16 %v3676_v53  ;;  %v3677_v40 = vunpack.i.l.bf16 %v3676_v53  ;;  %v3683_v55 = vunpack.i.h.bf16 %v4866_v15  ;;  %v3682_v57 = vunpack.i.l.bf16 %v4866_v15 }
 0x2fe   : > { %v1046_v48 = vsel %vm1041_vm14, %v3677_v40, %v3678_v44  ;;  %v1095_v4 = vsel %vm1090_vm15, %v3682_v57, %v3683_v55 }
 0x2ff   : > { %v4868_v20 = vpop.permute.xlu1 %3690  ;;  %v1062_v45 = vmax.f32 %v1005_v52, %v1046_v48 }
 0x300   : > { %v3693_v59 = vunpack.i.h.bf16 %v4868_v20  ;;  %v3692_v62 = vunpack.i.l.bf16 %v4868_v20 }
 0x301   : > { %v1111_v21 = vmax.f32 %v1062_v45, %v1095_v4 }
 0x302   : > { %v1143_v12 = vsel %vm312_vm0, %v3692_v62, %v3693_v59 }
 0x303   : > { %v4903_v46 = vmax.f32 %v1111_v21, %v1143_v12 }
 0x30b   : > { %v4870_v49 = vpop.permute.xlu1 %3700  ;;  %v4872_v50 = vpop.permute.xlu0 %3685 }
 0x30c   : > { %v3688_v26 = vunpack.i.h.bf16 %v4872_v50  ;;  %v3687_v43 = vunpack.i.l.bf16 %v4872_v50  ;;  %v3703_v23 = vunpack.i.h.bf16 %v4870_v49  ;;  %v3702_v50 = vunpack.i.l.bf16 %v4870_v49 }
 0x30e   : > { %v1042_v25 = vsel %vm1041_vm14, %v3687_v43, %v3688_v26  ;;  %v1139_v39 = vsel %vm312_vm0, %v3702_v50, %v3703_v23 }
 0x30f   : > { %v3706_v54 = vpop.permute.xlu1 %3705  ;;  %v4879_v58 = vpop.permute.xlu0 %3695  ;;  %v1058_v48 = vmax.f32 %v1001_v22, %v1042_v25 }
 0x310   : > { %v3707_v6 = vunpack.i.l.bf16 %v3706_v54  ;;  %v3708_v36 = vunpack.i.h.bf16 %v3706_v54  ;;  %v3698_v33 = vunpack.i.h.bf16 %v4879_v58  ;;  %v3697_v60 = vunpack.i.l.bf16 %v4879_v58 }
 0x312   : > { %v1047_v42 = vsel %vm1041_vm14, %v3678_v44, %v3707_v6  ;;  %v1091_v54 = vsel %vm1090_vm15, %v3697_v60, %v3698_v33 }
 0x313   : > { %v3721_v3 = vpop.permute.xlu1 %3720  ;;  %v3711_v5 = vpop.permute.xlu0 %3710  ;;  %v1063_v44 = vmax.f32 %v1006_v27, %v1047_v42  ;;  %v1107_v22 = vmax.f32 %v1058_v48, %v1091_v54 }
 0x314   : > { %v3713_v9 = vunpack.i.h.bf16 %v3711_v5  ;;  %v3712_v16 = vunpack.i.l.bf16 %v3711_v5  ;;  %v3723_v7 = vunpack.i.h.bf16 %v3721_v3  ;;  %v3722_v38 = vunpack.i.l.bf16 %v3721_v3 }
 0x316   : > { %v1049_v18 = vsel %vm1041_vm14, %v3712_v16, %v3713_v9  ;;  %v1048_v15 = vsel %vm1041_vm14, %v3708_v36, %v3712_v16  ;;  %v1098_v3 = vsel %vm1090_vm15, %v3722_v38, %v3723_v7 }
 0x317   : > { %v3726_v24 = vpop.permute.xlu1 %3725  ;;  %v3716_v29 = vpop.permute.xlu0 %3715  ;;  %v1065_v52 = vmax.f32 %v1008_v31, %v1049_v18  ;;  %v1064_v4 = vmax.f32 %v1007_v35, %v1048_v15 }
 0x318   : > { %v3718_v47 = vunpack.i.h.bf16 %v3716_v29  ;;  %v3717_v34 = vunpack.i.l.bf16 %v3716_v29  ;;  %v3727_v57 = vunpack.i.l.bf16 %v3726_v24  ;;  %v3728_v5 = vunpack.i.h.bf16 %v3726_v24 }
 0x319   : > { %v1114_v31 = vmax.f32 %v1065_v52, %v1098_v3 }
 0x31a   : > { %v1097_v58 = vsel %vm1090_vm15, %v3718_v47, %v3722_v38  ;;  %v1096_v45 = vsel %vm1090_vm15, %v3683_v55, %v3717_v34  ;;  %v1043_v25 = vsel %vm1041_vm14, %v3688_v26, %v3727_v57 }
 0x31b   : > { %v3741_v37 = vpop.permute.xlu1 %3740  ;;  %v3731_v8 = vpop.permute.xlu0 %3730  ;;  %v1112_v27 = vmax.f32 %v1063_v44, %v1096_v45  ;;  %v1113_v29 = vmax.f32 %v1064_v4, %v1097_v58  ;;  %v4962_v45 = vmax.f32 %v1107_v22, %v1139_v39 }
 0x31c   : > { %v3743_v30 = vunpack.i.h.bf16 %v3741_v37  ;;  %v3742_v56 = vunpack.i.l.bf16 %v3741_v37  ;;  %v3733_v53 = vunpack.i.h.bf16 %v3731_v8  ;;  %v3732_v40 = vunpack.i.l.bf16 %v3731_v8 }
 0x31e   : > { %v1146_v21 = vsel %vm312_vm0, %v3742_v56, %v3743_v30  ;;  %v1045_v43 = vsel %vm1041_vm14, %v3732_v40, %v3733_v53  ;;  %v1044_v55 = vsel %vm1041_vm14, %v3728_v5, %v3732_v40  ;;  %v1059_v53 = vmax.f32 %v1002_v11, %v1043_v25 }
 0x31f   : > { %v3746_v62 = vpop.permute.xlu1 %3745  ;;  %v3736_v12 = vpop.permute.xlu0 %3735  ;;  %v1061_v60 = vmax.f32 %v1004_v32, %v1045_v43  ;;  %v4927_v47 = vmax.f32 %v1114_v31, %v1146_v21  ;;  %v1060_v40 = vmax.f32 %v1003_v17, %v1044_v55 }
 0x320   : > { %v3747_v6 = vunpack.i.l.bf16 %v3746_v62  ;;  %v3738_v9 = vunpack.i.h.bf16 %v3736_v12  ;;  %v3737_v16 = vunpack.i.l.bf16 %v3736_v12  ;;  %v3748_v37 = vunpack.i.h.bf16 %v3746_v62 }
 0x322   : > { %v1145_v36 = vsel %vm312_vm0, %v3738_v9, %v3742_v56  ;;  %v1144_v24 = vsel %vm312_vm0, %v3693_v59, %v3737_v16  ;;  %v1092_v26 = vsel %vm1090_vm15, %v3698_v33, %v3747_v6 }
 0x323   : > { %v3761_v35 = vpop.permute.xlu1 %3760  ;;  %v3751_v42 = vpop.permute.xlu0 %3750  ;;  %v4925_v18 = vmax.f32 %v1112_v27, %v1144_v24  ;;  %v4929_v34 = vmax.f32 %v1113_v29, %v1145_v36  ;;  %v1108_v57 = vmax.f32 %v1059_v53, %v1092_v26 }
 0x324   : > { %v3753_v7 = vunpack.i.h.bf16 %v3751_v42  ;;  %v3752_v38 = vunpack.i.l.bf16 %v3751_v42  ;;  %v3763_v30 = vunpack.i.h.bf16 %v3761_v35  ;;  %v3762_v56 = vunpack.i.l.bf16 %v3761_v35 }
 0x325   : > { %v3764_v20 = vpack.i.bf16 %v4925_v18, %v4903_v46  ;;  %v1183_v59 = vpack.c.bf16 %v4927_v47, %v4925_v18  ;;  %v3774_v32 = vpack.i.bf16 %v4927_v47, %v4929_v34  ;;  %v1182_v33 = vpack.c.bf16 %v4929_v34, %v4903_v46 }
 0x326   : > { %v1093_v8 = vsel %vm1090_vm15, %v3748_v37, %v3752_v38  ;;  %v1094_v15 = vsel %vm1090_vm15, %v3752_v38, %v3753_v7  ;;  %v1142_v10 = vsel %vm312_vm0, %v3762_v56, %v3763_v30 }
 0x327   : > { %v1110_v48 = vmax.f32 %v1061_v60, %v1094_v15  ;;  %v3756_v44 = vpop.permute.xlu0 %3755  ;;  %3765 = vrot.lane.b32.xlu0 %v3764_v20, %s4419_s11  ;;  %1260 = vmatprep.subr.bf16.mxu0 %v1183_v59  ;;  %v1109_v58 = vmax.f32 %v1060_v40, %v1093_v8 }
 0x328   : > { %v3758_v52 = vunpack.i.h.bf16 %v3756_v44  ;;  %v3757_v54 = vunpack.i.l.bf16 %v3756_v44  ;;  %3775 = vrot.lane.b32.xlu1 %v3774_v32, %s4419_s11  ;;  %1261 = vmatpush1.bf16.msra.mxu0 %v1182_v33 }
 0x329   : > { %v4960_v11 = vmax.f32 %v1110_v48, %v1142_v10 }
 0x32a   : > { %v1141_v61 = vsel %vm312_vm0, %v3758_v52, %v3762_v56  ;;  %v1140_v28 = vsel %vm312_vm0, %v3703_v23, %v3757_v54 }
 0x32b   : > { %v4958_v17 = vmax.f32 %v1109_v58, %v1141_v61  ;;  %v4964_v62 = vmax.f32 %v1108_v57, %v1140_v28 }
 0x32d   : > { %v3779_v3 = vpack.i.bf16 %v4960_v11, %v4958_v17  ;;  %v3769_v50 = vpack.i.bf16 %v4964_v62, %v4962_v45  ;;  %v1181_v4 = vpack.c.bf16 %v4960_v11, %v4964_v62  ;;  %v1180_v49 = vpack.c.bf16 %v4958_v17, %v4962_v45 }
 0x32f   : > { %3780 = vrot.lane.b32.xlu1 %v3779_v3, %s4419_s11  ;;  %3770 = vrot.lane.b32.xlu0 %v3769_v50, %s4419_s11 }
 0x330   : > { %1262 = vmatprep.subr.bf16.mxu0 %v1181_v4 }
 0x331   : > { %1263 = vmatpush1.bf16.msra.mxu0 %v1180_v49 }
 0x399   : > { %v3766_v23 = vpop.permute.xlu0 %3765 }
 0x39a   : > { %v3768_v5 = vunpack.i.h.bf16 %v3766_v23  ;;  %v3767_v21 = vunpack.i.l.bf16 %v3766_v23  ;;  %v3776_v9 = vpop.permute.xlu1 %3775 }
 0x39b   : > { %v3777_v29 = vunpack.i.l.bf16 %v3776_v9  ;;  %v3778_v24 = vunpack.i.h.bf16 %v3776_v9 }
 0x39c   : > { %v1499_v12 = vsel %vm733_vm1, -inf, %v3767_v21  ;;  %v1483_v43 = vsel %vm733_vm1, %v3767_v21, %v3768_v5  ;;  %v1503_v36 = vsel %vm733_vm1, %v3768_v5, -inf }
 0x39d   : > { %v3789_v6 = vpack.i.bf16 %v1483_v43, %v1499_v12  ;;  %v1500_v35 = vsel %vm733_vm1, -inf, %v3777_v29  ;;  %v1504_v37 = vsel %vm733_vm1, %v3778_v24, -inf  ;;  %v1484_v7 = vsel %vm733_vm1, %v3777_v29, %v3778_v24 }
 0x39e   : > { %v3814_v42 = vpack.i.bf16 %v1500_v35, %v1503_v36  ;;  %v3829_v38 = vpack.i.bf16 %v1504_v37, %v1484_v7  ;;  %v1509_v52 = vsel %vm449_vm3, %v1499_v12, -inf  ;;  %v5026_v4 = vsel %vm450_vm4, %v1483_v43, -inf }
 0x39f   : > { %3790 = vrot.lane.b32.xlu1 %v3789_v6, %s4420_s12  ;;  %3785 = vrot.lane.b32.xlu0 %v3789_v6, %s4421_s13  ;;  %v1517_v39 = vmax.f32 %v4903_v46, %v1509_v52  ;;  %v5030_v49 = vsel %vm449_vm3, %v1500_v35, -inf  ;;  %v1512_v12 = vsel %vm450_vm4, %v1484_v7, -inf  ;;  %v1518_v9 = vmax.f32 %v4925_v18, %v5026_v4 }
 0x3a1   : > { %v3771_v16 = vpop.permute.xlu0 %3770  ;;  %v3781_v60 = vpop.permute.xlu1 %3780 }
 0x3a2   : > { %v3773_v22 = vunpack.i.h.bf16 %v3771_v16  ;;  %v3772_v27 = vunpack.i.l.bf16 %v3771_v16  ;;  %v3782_v26 = vunpack.i.l.bf16 %v3781_v60  ;;  %v3783_v30 = vunpack.i.h.bf16 %v3781_v60 }
 0x3a3   : > { %3800 = vrot.lane.b32.xlu1 %v3789_v6, %s4422_s14 }
 0x3a4   : > { %v1497_v31 = vsel %vm733_vm1, -inf, %v3772_v27  ;;  %v1481_v25 = vsel %vm733_vm1, %v3772_v27, %v3773_v22  ;;  %v1498_v20 = vsel %vm733_vm1, -inf, %v3782_v26  ;;  %v1501_v59 = vsel %vm733_vm1, %v3773_v22, -inf }
 0x3a5   : > { %v3809_v55 = vpack.i.bf16 %v1481_v25, %v1497_v31  ;;  %v3834_v32 = vpack.i.bf16 %v1498_v20, %v1501_v59  ;;  %v1502_v56 = vsel %vm733_vm1, %v3783_v30, -inf  ;;  %v1482_v8 = vsel %vm733_vm1, %v3782_v26, %v3783_v30 }
 0x3a6   : > { %v3839_v15 = vpack.i.bf16 %v1502_v56, %v1482_v8  ;;  %v1505_v6 = vsel %vm449_vm3, %v1497_v31, -inf  ;;  %v5045_v16 = vsel %vm450_vm4, %v1481_v25, -inf  ;;  %v5049_v27 = vsel %vm449_vm3, %v1498_v20, -inf }
 0x3a7   : > { %3810 = vrot.lane.b32.xlu1 %v3809_v55, %s4422_s14  ;;  %3795 = vrot.lane.b32.xlu0 %v3809_v55, %s4421_s13  ;;  %v1519_v31 = vmax.f32 %v4929_v34, %v5030_v49  ;;  %v1513_v18 = vmax.f32 %v4962_v45, %v1505_v6  ;;  %v5061_v60 = vsel %vm450_vm4, %v1482_v8, -inf  ;;  %v1514_v34 = vmax.f32 %v4964_v62, %v5045_v16 }
 0x3ab   : > { %3815 = vrot.lane.b32.xlu1 %v3814_v42, %s4421_s13  ;;  %3805 = vrot.lane.b32.xlu0 %v3809_v55, %s4420_s12  ;;  %v1520_v55 = vmax.f32 %v4927_v47, %v1512_v12 }
 0x3af   : > { %3830 = vrot.lane.b32.xlu1 %v3829_v38, %s4420_s12  ;;  %3820 = vrot.lane.b32.xlu0 %v3829_v38, %s4421_s13 }
 0x3b3   : > { %3835 = vrot.lane.b32.xlu1 %v3834_v32, %s4421_s13  ;;  %3825 = vrot.lane.b32.xlu0 %v3814_v42, %s4420_s12 }
 0x3b7   : > { %3850 = vrot.lane.b32.xlu1 %v3829_v38, %s4422_s14  ;;  %3840 = vrot.lane.b32.xlu0 %v3839_v15, %s4421_s13 }
 0x3bb   : > { %3855 = vrot.lane.b32.xlu1 %v3834_v32, %s4420_s12  ;;  %3845 = vrot.lane.b32.xlu0 %v3814_v42, %s4422_s14 }
 0x3bf   : > { %3870 = vrot.lane.b32.xlu1 %v3839_v15, %s4422_s14  ;;  %3860 = vrot.lane.b32.xlu0 %v3839_v15, %s4420_s12 }
 0x3c3   : > { %3865 = vrot.lane.b32.xlu0 %v3834_v32, %s4422_s14 }
 0x411   : > { %v5006_v33 = vpop.permute.xlu1 %3790  ;;  %v3786_v53 = vpop.permute.xlu0 %3785 }
 0x412   : > { %v3788_v48 = vunpack.i.h.bf16 %v3786_v53  ;;  %v3787_v44 = vunpack.i.l.bf16 %v3786_v53  ;;  %v3793_v10 = vunpack.i.h.bf16 %v5006_v33  ;;  %v3792_v61 = vunpack.i.l.bf16 %v5006_v33 }
 0x414   : > { %v1557_v54 = vsel %vm806_vm2, %v3787_v44, %v3788_v48  ;;  %v1613_v43 = vsel %vm863_vm6, %v3792_v61, %v3793_v10 }
 0x415   : > { %v5008_v40 = vpop.permute.xlu1 %3800  ;;  %v1573_v28 = vsel %vm457_vm5, %v1557_v54, -inf  ;;  %v1629_v47 = vsel %vm467_vm8, %v1613_v43, -inf  ;;  %v1515_v54 = vmax.f32 %v4958_v17, %v5049_v27 }
 0x416   : > { %v3803_v3 = vunpack.i.h.bf16 %v5008_v40  ;;  %v3802_v50 = vunpack.i.l.bf16 %v5008_v40  ;;  %v1581_v22 = vmax.f32 %v1517_v39, %v1573_v28 }
 0x418   : > { %v1669_v29 = vsel %vm920_vm9, %v3802_v50, %v3803_v3  ;;  %v1637_v7 = vmax.f32 %v1581_v22, %v1629_v47 }
 0x419   : > { %v5013_v57 = vpop.permute.xlu1 %3810  ;;  %v5015_v58 = vpop.permute.xlu0 %3795  ;;  %v1685_v38 = vsel %vm475_vm10, %v1669_v29, -inf }
 0x41a   : > { %v3798_v46 = vunpack.i.h.bf16 %v5015_v58  ;;  %v3797_v23 = vunpack.i.l.bf16 %v5015_v58  ;;  %v3813_v30 = vunpack.i.h.bf16 %v5013_v57  ;;  %v3812_v20 = vunpack.i.l.bf16 %v5013_v57 }
 0x41b   : > { %v1516_v58 = vmax.f32 %v4960_v11, %v5061_v60  ;;  %v5096_v49 = vmax.f32 %v1637_v7, %v1685_v38 }
 0x41c   : > { %v1553_v36 = vsel %vm806_vm2, %v3797_v23, %v3798_v46  ;;  %v5090_v50 = vsel %vm920_vm9, %v3812_v20, %v3813_v30 }
 0x41d   : > { %v3816_v5 = vpop.permute.xlu1 %3815  ;;  %v5034_v21 = vpop.permute.xlu0 %3805  ;;  %v1569_v59 = vsel %vm457_vm5, %v1553_v36, -inf }
 0x41e   : > { %v3817_v25 = vunpack.i.l.bf16 %v3816_v5  ;;  %v3808_v42 = vunpack.i.h.bf16 %v5034_v21  ;;  %v3807_v37 = vunpack.i.l.bf16 %v5034_v21  ;;  %v3818_v32 = vunpack.i.h.bf16 %v3816_v5 }
 0x41f   : > { %v5092_v4 = vmax.f32 %v1513_v18, %v1569_v59 }
 0x420   : > { %v1558_v56 = vsel %vm806_vm2, %v3788_v48, %v3817_v25  ;;  %v1609_v44 = vsel %vm863_vm6, %v3807_v37, %v3808_v42 }
 0x421   : > { %v3831_v24 = vpop.permute.xlu1 %3830  ;;  %v3821_v35 = vpop.permute.xlu0 %3820  ;;  %v1574_v17 = vsel %vm458_vm7, %v1558_v56, -inf  ;;  %v5100_v11 = vsel %vm467_vm8, %v1609_v44, -inf }
 0x422   : > { %v3823_v45 = vunpack.i.h.bf16 %v3821_v35  ;;  %v3822_v26 = vunpack.i.l.bf16 %v3821_v35  ;;  %v3833_v62 = vunpack.i.h.bf16 %v3831_v24  ;;  %v3832_v8 = vunpack.i.l.bf16 %v3831_v24 }
 0x423   : > { %v1582_v35 = vmax.f32 %v1518_v9, %v1574_v17 }
 0x424   : > { %v1560_v15 = vsel %vm806_vm2, %v3822_v26, %v3823_v45  ;;  %v1559_v39 = vsel %vm806_vm2, %v3818_v32, %v3822_v26  ;;  %v1616_v23 = vsel %vm863_vm6, %v3832_v8, %v3833_v62 }
 0x425   : > { %v3836_v33 = vpop.permute.xlu1 %3835  ;;  %v3826_v53 = vpop.permute.xlu0 %3825  ;;  %v1576_v48 = vsel %vm458_vm7, %v1560_v15, -inf  ;;  %v1575_v16 = vsel %vm457_vm5, %v1559_v39, -inf }
 0x426   : > { %v3837_v52 = vunpack.i.l.bf16 %v3836_v33  ;;  %v3828_v61 = vunpack.i.h.bf16 %v3826_v53  ;;  %v3827_v28 = vunpack.i.l.bf16 %v3826_v53  ;;  %v1584_v22 = vmax.f32 %v1520_v55, %v1576_v48 }
 0x427   : > { %v3838_v18 = vunpack.i.h.bf16 %v3836_v33  ;;  %v1632_v55 = vsel %vm468_vm11, %v1616_v23, -inf  ;;  %v1583_v7 = vmax.f32 %v1519_v31, %v1575_v16 }
 0x428   : > { %v1554_v5 = vsel %vm806_vm2, %v3798_v46, %v3837_v52  ;;  %v1614_v12 = vsel %vm863_vm6, %v3793_v10, %v3827_v28  ;;  %v1615_v27 = vsel %vm863_vm6, %v3828_v61, %v3832_v8  ;;  %v1633_v46 = vmax.f32 %v5092_v4, %v5100_v11 }
 0x429   : > { %v3851_v6 = vpop.permute.xlu1 %3850  ;;  %v3841_v43 = vpop.permute.xlu0 %3840  ;;  %v1570_v60 = vsel %vm458_vm7, %v1554_v5, -inf  ;;  %v1630_v10 = vsel %vm468_vm11, %v1614_v12, -inf  ;;  %v1631_v37 = vsel %vm467_vm8, %v1615_v27, -inf  ;;  %v1640_v59 = vmax.f32 %v1584_v22, %v1632_v55 }
 0x42a   : > { %v3853_v29 = vunpack.i.h.bf16 %v3851_v6  ;;  %v3852_v36 = vunpack.i.l.bf16 %v3851_v6  ;;  %v3843_v25 = vunpack.i.h.bf16 %v3841_v43  ;;  %v3842_v24 = vunpack.i.l.bf16 %v3841_v43 }
 0x42b   : > { %v1578_v32 = vmax.f32 %v1514_v34, %v1570_v60  ;;  %v1638_v8 = vmax.f32 %v1582_v35, %v1630_v10  ;;  %v1639_v44 = vmax.f32 %v1583_v7, %v1631_v37 }
 0x42c   : > { %v1555_v47 = vsel %vm806_vm2, %v3838_v18, %v3842_v24  ;;  %v1556_v45 = vsel %vm806_vm2, %v3842_v24, %v3843_v25  ;;  %v1672_v38 = vsel %vm920_vm9, %v3852_v36, %v3853_v29 }
 0x42d   : > { %v3856_v9 = vpop.permute.xlu1 %3855  ;;  %v3846_v26 = vpop.permute.xlu0 %3845  ;;  %v1571_v15 = vsel %vm457_vm5, %v1555_v47, -inf  ;;  %v1572_v33 = vsel %vm458_vm7, %v1556_v45, -inf  ;;  %v1688_v61 = vsel %vm476_vm12, %v1672_v38, -inf  ;;  %v1681_v45 = vsel %vm475_vm10, %v5090_v50, -inf }
 0x42e   : > { %v3857_v20 = vunpack.i.l.bf16 %v3856_v9  ;;  %v3848_v56 = vunpack.i.h.bf16 %v3846_v26  ;;  %v3847_v62 = vunpack.i.l.bf16 %v3846_v26  ;;  %v3858_v53 = vunpack.i.h.bf16 %v3856_v9 }
 0x42f   : > { %v1579_v23 = vmax.f32 %v1515_v54, %v1571_v15  ;;  %v1580_v5 = vmax.f32 %v1516_v58, %v1572_v33  ;;  %v5150_v22 = vmax.f32 %v1640_v59, %v1688_v61  ;;  %v5176_v26 = vmax.f32 %v1633_v46, %v1681_v45 }
 0x430   : > { %v1610_v31 = vsel %vm863_vm6, %v3808_v42, %v3857_v20  ;;  %v1671_v52 = vsel %vm920_vm9, %v3848_v56, %v3852_v36  ;;  %v1670_v34 = vsel %vm920_vm9, %v3803_v3, %v3847_v62 }
 0x431   : > { %v3871_v39 = vpop.permute.xlu1 %3870  ;;  %v3861_v48 = vpop.permute.xlu0 %3860  ;;  %v1686_v21 = vsel %vm476_vm12, %v1670_v34, -inf  ;;  %v1687_v42 = vsel %vm475_vm10, %v1671_v52, -inf  ;;  %v1626_v40 = vsel %vm468_vm11, %v1610_v31, -inf }
 0x432   : > { %v3873_v28 = vunpack.i.h.bf16 %v3871_v39  ;;  %v3872_v4 = vunpack.i.l.bf16 %v3871_v39  ;;  %v3863_v17 = vunpack.i.h.bf16 %v3861_v48  ;;  %v3862_v11 = vunpack.i.l.bf16 %v3861_v48 }
 0x433   : > { %v5142_v6 = vmax.f32 %v1638_v8, %v1686_v21  ;;  %v5148_v16 = vmax.f32 %v1639_v44, %v1687_v42  ;;  %v1634_v55 = vmax.f32 %v1578_v32, %v1626_v40 }
 0x434   : > { %v1611_v3 = vsel %vm863_vm6, %v3858_v53, %v3862_v11  ;;  %v1612_v12 = vsel %vm863_vm6, %v3862_v11, %v3863_v17  ;;  %v1668_v27 = vsel %vm920_vm9, %v3872_v4, %v3873_v28 }
 0x435   : > { %v1627_v43 = vsel %vm467_vm8, %v1611_v3, -inf  ;;  %v1628_v54 = vsel %vm468_vm11, %v1612_v12, -inf  ;;  %v3866_v58 = vpop.permute.xlu0 %3865  ;;  %v3874_v36 = vpack.i.bf16 %v5142_v6, %v5096_v49  ;;  %v3884_v25 = vpack.i.bf16 %v5150_v22, %v5148_v16 }
 0x436   : > { %v3868_v29 = vunpack.i.h.bf16 %v3866_v58  ;;  %v3867_v18 = vunpack.i.l.bf16 %v3866_v58  ;;  %v1636_v24 = vmax.f32 %v1580_v5, %v1628_v54  ;;  %v1635_v10 = vmax.f32 %v1579_v23, %v1627_v43  ;;  %v4218_v58 = vld [vmem:[%s6358_s3] sm:$0xff]  }
 0x437   : > { %3875 = vrot.lane.b32.xlu0 %v3874_v36, %s4423_s15  ;;  %3885 = vrot.lane.b32.xlu1 %v3884_v25, %s4423_s15  ;;  %v1684_v47 = vsel %vm476_vm12, %v1668_v27, -inf }
 0x438   : > { %v1667_v35 = vsel %vm920_vm9, %v3868_v29, %v3872_v4  ;;  %v1666_v60 = vsel %vm920_vm9, %v3813_v30, %v3867_v18  ;;  %v5174_v9 = vmax.f32 %v1636_v24, %v1684_v47  ;;  %3409 = vmatmul.mubr.msk.bf16.vlgmr.msra.gmra.mxu1 %vm539_vm13, %v4218_v58 }
 0x439   : > { %v1683_v37 = vsel %vm475_vm10, %v1667_v35, -inf  ;;  %v1682_v57 = vsel %vm476_vm12, %v1666_v60, -inf  ;;  %606 = vmatprep.mubr.bf16.mxu1 %v4418_v0 }
 0x43a   : > { %v5172_v30 = vmax.f32 %v1635_v10, %v1683_v37  ;;  %v5178_v7 = vmax.f32 %v1634_v55, %v1682_v57 }
 0x43c   : > { %v3889_v38 = vpack.i.bf16 %v5174_v9, %v5172_v30  ;;  %v3879_v20 = vpack.i.bf16 %v5178_v7, %v5176_v26 }
 0x43e   : > { %3890 = vrot.lane.b32.xlu1 %v3889_v38, %s4423_s15  ;;  %3880 = vrot.lane.b32.xlu0 %v3879_v20, %s4423_s15 }
 0x440   : > { %3410 = vmatmul.mubr.msk.bf16.gmra.mxu1 %vm539_vm13, %v4219_v51  ;;  %v2976_v51 = vld [vmem:[%s6359_s4 + $0x18] sm:$0xff] }
 0x441   : > { %616 = vmatprep.mubr.bf16.mxu1 %v4418_v0 }
 0x4a9   : > { %v3876_v50 = vpop.permute.xlu0 %3875  ;;  %v3886_v15 = vpop.permute.xlu1 %3885 }
 0x4aa   : > { %v3878_v59 = vunpack.i.h.bf16 %v3876_v50  ;;  %v3877_v32 = vunpack.i.l.bf16 %v3876_v50  ;;  %v3887_v44 = vunpack.i.l.bf16 %v3886_v15  ;;  %v3888_v39 = vunpack.i.h.bf16 %v3886_v15 }
 0x4ac   : > { %v5187_v56 = vsel %vm539_vm13, %v3877_v32, %v3878_v59  ;;  %v1739_v46 = vsel %vm539_vm13, -inf, %v3877_v32  ;;  %v1743_v48 = vsel %vm539_vm13, %v3878_v59, -inf  ;;  %v5205_v61 = vsel %vm539_vm13, -inf, %v3887_v44 }
 0x4ad   : > { %v3899_v62 = vpack.i.bf16 %v5187_v56, %v1739_v46  ;;  %v1744_v4 = vsel %vm539_vm13, %v3888_v39, -inf  ;;  %v5210_v17 = vsel %vm539_vm13, %v3887_v44, %v3888_v39  ;;  %v3924_v11 = vpack.i.bf16 %v5205_v61, %v1743_v48 }
 0x4ae   : > { %v3929_v5 = vpack.i.bf16 %v1744_v4, %v5210_v17  ;;  %v1749_v10 = vmax.f32 %v5096_v49, %v1739_v46  ;;  %v1750_v39 = vmax.f32 %v5142_v6, %v5187_v56  ;;  %v1752_v48 = vmax.f32 %v5150_v22, %v5210_v17 }
 0x4af   : > { %3900 = vrot.lane.b32.xlu1 %v3899_v62, %s4424_s16  ;;  %3895 = vrot.lane.b32.xlu0 %v3899_v62, %s4425_s17 }
 0x4b0   : > { %v3881_v8 = vpop.permute.xlu0 %3880  ;;  %v3891_v28 = vpop.permute.xlu1 %3890 }
 0x4b1   : > { %v3883_v33 = vunpack.i.h.bf16 %v3881_v8  ;;  %v3882_v53 = vunpack.i.l.bf16 %v3881_v8  ;;  %v3892_v23 = vunpack.i.l.bf16 %v3891_v28  ;;  %v3893_v21 = vunpack.i.h.bf16 %v3891_v28 }
 0x4b3   : > { %v5194_v31 = vsel %vm539_vm13, %v3882_v53, %v3883_v33  ;;  %v5197_v52 = vsel %vm539_vm13, -inf, %v3882_v53  ;;  %3910 = vrot.lane.b32.xlu1 %v3899_v62, %s4426_s20  ;;  %v5218_v42 = vsel %vm539_vm13, -inf, %v3892_v23  ;;  %v1741_v40 = vsel %vm539_vm13, %v3883_v33, -inf }
 0x4b4   : > { %v3919_v34 = vpack.i.bf16 %v5194_v31, %v5197_v52  ;;  %v1742_v3 = vsel %vm539_vm13, %v3893_v21, -inf  ;;  %v5224_v12 = vsel %vm539_vm13, %v3892_v23, %v3893_v21  ;;  %v3944_v43 = vpack.i.bf16 %v5218_v42, %v1741_v40 }
 0x4b5   : > { %v3949_v54 = vpack.i.bf16 %v1742_v3, %v5224_v12  ;;  %v1747_v4 = vmax.f32 %v5172_v30, %v5218_v42  ;;  %v1746_v6 = vmax.f32 %v5178_v7, %v5194_v31  ;;  %v1748_v22 = vmax.f32 %v5174_v9, %v5224_v12 }
 0x4b6   : > { %3905 = vrot.lane.b32.xlu0 %v3919_v34, %s4425_s17 }
 0x4b7   : > { %3920 = vrot.lane.b32.xlu1 %v3919_v34, %s4426_s20 }
 0x4ba   : > { %3915 = vrot.lane.b32.xlu0 %v3919_v34, %s4424_s16  ;;  %v1751_v34 = vmax.f32 %v5148_v16, %v5205_v61 }
 0x4bb   : > { %3925 = vrot.lane.b32.xlu1 %v3924_v11, %s4425_s17 }
 0x4be   : > { %3930 = vrot.lane.b32.xlu0 %v3929_v5, %s4425_s17 }
 0x4bf   : > { %3940 = vrot.lane.b32.xlu1 %v3929_v5, %s4424_s16 }
 0x4c2   : > { %3935 = vrot.lane.b32.xlu0 %v3924_v11, %s4424_s16 }
 0x4c3   : > { %3945 = vrot.lane.b32.xlu1 %v3944_v43, %s4425_s17 }
 0x4c6   : > { %3950 = vrot.lane.b32.xlu0 %v3949_v54, %s4425_s17 }
 0x4c7   : > { %3960 = vrot.lane.b32.xlu1 %v3929_v5, %s4426_s20 }
 0x4ca   : > { %3955 = vrot.lane.b32.xlu0 %v3924_v11, %s4426_s20  ;;  %v1745_v11 = vmax.f32 %v5176_v26, %v5197_v52 }
 0x4cb   : > { %3965 = vrot.lane.b32.xlu1 %v3944_v43, %s4424_s16 }
 0x4ce   : > { %3970 = vrot.lane.b32.xlu0 %v3949_v54, %s4424_s16 }
 0x4cf   : > { %3980 = vrot.lane.b32.xlu1 %v3949_v54, %s4426_s20 }
 0x4d2   : > { %3975 = vrot.lane.b32.xlu0 %v3944_v43, %s4426_s20 }
 0x521   : > { %v3901_v27 = vpop.permute.xlu1 %3900  ;;  %v3896_v29 = vpop.permute.xlu0 %3895 }
 0x522   : > { %v3898_v36 = vunpack.i.h.bf16 %v3896_v29  ;;  %v3897_v25 = vunpack.i.l.bf16 %v3896_v29  ;;  %v3903_v37 = vunpack.i.h.bf16 %v3901_v27  ;;  %v3902_v47 = vunpack.i.l.bf16 %v3901_v27 }
 0x524   : > { %v1789_v60 = vsel %vm1041_vm14, %v3897_v25, %v3898_v36  ;;  %v1837_v59 = vsel %vm1090_vm15, %v3902_v47, %v3903_v37 }
 0x525   : > { %v5242_v18 = vpop.permute.xlu1 %3910  ;;  %v1805_v45 = vmax.f32 %v1749_v10, %v1789_v60 }
 0x526   : > { %v3913_v38 = vunpack.i.h.bf16 %v5242_v18  ;;  %v3912_v20 = vunpack.i.l.bf16 %v5242_v18 }
 0x527   : > { %v1853_v8 = vmax.f32 %v1805_v45, %v1837_v59 }
 0x528   : > { %v3906_v24 = vpop.permute.xlu0 %3905  ;;  %v1885_v49 = vsel %vm312_vm0, %v3912_v20, %v3913_v38 }
 0x529   : > { %v5244_v35 = vpop.permute.xlu1 %3920  ;;  %v3908_v32 = vunpack.i.h.bf16 %v3906_v24  ;;  %v3907_v62 = vunpack.i.l.bf16 %v3906_v24  ;;  %v5269_v21 = vmax.f32 %v1853_v8, %v1885_v49 }
 0x52a   : > { %v3923_v27 = vunpack.i.h.bf16 %v5244_v35  ;;  %v3922_v12 = vunpack.i.l.bf16 %v5244_v35 }
 0x52b   : > { %v1785_v23 = vsel %vm1041_vm14, %v3907_v62, %v3908_v32 }
 0x52c   : > { %v5248_v55 = vpop.permute.xlu0 %3915  ;;  %v5281_v40 = vmax.f32 %v1745_v11, %v1785_v23  ;;  %v1881_v30 = vsel %vm312_vm0, %v3922_v12, %v3923_v27 }
 0x52d   : > { %v3926_v57 = vpop.permute.xlu1 %3925  ;;  %v3918_v46 = vunpack.i.h.bf16 %v5248_v55  ;;  %v3917_v44 = vunpack.i.l.bf16 %v5248_v55 }
 0x52e   : > { %v3927_v5 = vunpack.i.l.bf16 %v3926_v57  ;;  %v3928_v56 = vunpack.i.h.bf16 %v3926_v57 }
 0x52f   : > { %v5279_v17 = vsel %vm1090_vm15, %v3917_v44, %v3918_v46 }
 0x530   : > { %v3931_v50 = vpop.permute.xlu0 %3930  ;;  %v1790_v7 = vsel %vm1041_vm14, %v3898_v36, %v3927_v5  ;;  %v1849_v29 = vmax.f32 %v5281_v40, %v5279_v17 }
 0x531   : > { %v3941_v15 = vpop.permute.xlu1 %3940  ;;  %v3933_v33 = vunpack.i.h.bf16 %v3931_v50  ;;  %v3932_v53 = vunpack.i.l.bf16 %v3931_v50  ;;  %v1806_v20 = vmax.f32 %v1750_v39, %v1790_v7 }
 0x532   : > { %v3943_v3 = vunpack.i.h.bf16 %v3941_v15  ;;  %v3942_v43 = vunpack.i.l.bf16 %v3941_v15 }
 0x533   : > { %v1792_v16 = vsel %vm1041_vm14, %v3932_v53, %v3933_v33  ;;  %v1791_v9 = vsel %vm1041_vm14, %v3928_v56, %v3932_v53 }
 0x534   : > { %v3936_v28 = vpop.permute.xlu0 %3935  ;;  %v1808_v31 = vmax.f32 %v1752_v48, %v1792_v16  ;;  %v1840_v36 = vsel %vm1090_vm15, %v3942_v43, %v3943_v3  ;;  %v1807_v50 = vmax.f32 %v1751_v34, %v1791_v9 }
 0x535   : > { %v3946_v61 = vpop.permute.xlu1 %3945  ;;  %v3938_v26 = vunpack.i.h.bf16 %v3936_v28  ;;  %v3937_v52 = vunpack.i.l.bf16 %v3936_v28 }
 0x536   : > { %v3947_v54 = vunpack.i.l.bf16 %v3946_v61  ;;  %v1856_v8 = vmax.f32 %v1808_v31, %v1840_v36  ;;  %v3948_v49 = vunpack.i.h.bf16 %v3946_v61 }
 0x537   : > { %v1839_v10 = vsel %vm1090_vm15, %v3938_v26, %v3942_v43  ;;  %v1838_v47 = vsel %vm1090_vm15, %v3903_v37, %v3937_v52 }
 0x538   : > { %v3951_v58 = vpop.permute.xlu0 %3950  ;;  %v1786_v59 = vsel %vm1041_vm14, %v3908_v32, %v3947_v54  ;;  %v1854_v44 = vmax.f32 %v1806_v20, %v1838_v47  ;;  %v1855_v48 = vmax.f32 %v1807_v50, %v1839_v10 }
 0x539   : > { %v3961_v25 = vpop.permute.xlu1 %3960  ;;  %v3953_v24 = vunpack.i.h.bf16 %v3951_v58  ;;  %v3952_v60 = vunpack.i.l.bf16 %v3951_v58  ;;  %v1802_v11 = vmax.f32 %v1746_v6, %v1786_v59  ;;  %v5341_v59 = vmax.f32 %v1849_v29, %v1881_v30 }
 0x53a   : > { %v3963_v45 = vunpack.i.h.bf16 %v3961_v25  ;;  %v3962_v57 = vunpack.i.l.bf16 %v3961_v25 }
 0x53b   : > { %v1788_v28 = vsel %vm1041_vm14, %v3952_v60, %v3953_v24  ;;  %v1787_v5 = vsel %vm1041_vm14, %v3948_v49, %v3952_v60 }
 0x53c   : > { %v3956_v62 = vpop.permute.xlu0 %3955  ;;  %v1888_v15 = vsel %vm312_vm0, %v3962_v57, %v3963_v45  ;;  %v1804_v26 = vmax.f32 %v1748_v22, %v1788_v28  ;;  %v1803_v55 = vmax.f32 %v1747_v4, %v1787_v5 }
 0x53d   : > { %v3958_v33 = vunpack.i.h.bf16 %v3956_v62  ;;  %v3957_v53 = vunpack.i.l.bf16 %v3956_v62  ;;  %v3966_v37 = vpop.permute.xlu1 %3965  ;;  %v5299_v34 = vmax.f32 %v1856_v8, %v1888_v15 }
 0x53e   : > { %v3967_v23 = vunpack.i.l.bf16 %v3966_v37  ;;  %v3968_v52 = vunpack.i.h.bf16 %v3966_v37 }
 0x53f   : > { %v1887_v39 = vsel %vm312_vm0, %v3958_v33, %v3962_v57  ;;  %v1886_v32 = vsel %vm312_vm0, %v3913_v38, %v3957_v53 }
 0x540   : > { %v5302_v16 = vmax.f32 %v1854_v44, %v1886_v32  ;;  %v5304_v61 = vmax.f32 %v1855_v48, %v1887_v39  ;;  %v3971_v56 = vpop.permute.xlu0 %3970  ;;  %v1834_v43 = vsel %vm1090_vm15, %v3918_v46, %v3967_v23 }
 0x541   : > { %v3973_v3 = vunpack.i.h.bf16 %v3971_v56  ;;  %v3972_v6 = vunpack.i.l.bf16 %v3971_v56  ;;  %v3981_v18 = vpop.permute.xlu1 %3980  ;;  %v1850_v47 = vmax.f32 %v1802_v11, %v1834_v43 }
 0x542   : > { %v3984_v38 = vpack.i.bf16 %v5302_v16, %v5269_v21  ;;  %v3994_v54 = vpack.i.bf16 %v5299_v34, %v5304_v61  ;;  %v1925_v58 = vpack.c.bf16 %v5299_v34, %v5302_v16  ;;  %v3983_v7 = vunpack.i.h.bf16 %v3981_v18 }
 0x543   : > { %v3982_v9 = vunpack.i.l.bf16 %v3981_v18  ;;  %v1835_v22 = vsel %vm1090_vm15, %v3968_v52, %v3972_v6  ;;  %v1836_v31 = vsel %vm1090_vm15, %v3972_v6, %v3973_v3  ;;  %v1924_v24 = vpack.c.bf16 %v5304_v61, %v5269_v21 }
 0x544   : > { %v1852_v46 = vmax.f32 %v1804_v26, %v1836_v31  ;;  %v3976_v25 = vpop.permute.xlu0 %3975  ;;  %3985 = vrot.lane.b32.xlu0 %v3984_v38, %s4419_s11  ;;  %3995 = vrot.lane.b32.xlu1 %v3994_v54, %s4419_s11  ;;  %v1851_v45 = vmax.f32 %v1803_v55, %v1835_v22 }
 0x545   : > { %v3978_v60 = vunpack.i.h.bf16 %v3976_v25  ;;  %v3977_v10 = vunpack.i.l.bf16 %v3976_v25  ;;  %2002 = vmatprep.subr.bf16.mxu1 %v1925_v58  ;;  %v1884_v42 = vsel %vm312_vm0, %v3982_v9, %v3983_v7 }
 0x546   : > { %2003 = vmatpush1.bf16.msra.mxu1 %v1924_v24  ;;  %v5336_v50 = vmax.f32 %v1852_v46, %v1884_v42 }
 0x547   : > { %v1883_v4 = vsel %vm312_vm0, %v3978_v60, %v3982_v9  ;;  %v1882_v57 = vsel %vm312_vm0, %v3923_v27, %v3977_v10 }
 0x548   : > { %v5332_v20 = vmax.f32 %v1850_v47, %v1882_v57  ;;  %v5334_v36 = vmax.f32 %v1851_v45, %v1883_v4 }
 0x54a   : > { %v3999_v12 = vpack.i.bf16 %v5336_v50, %v5334_v36  ;;  %v3989_v62 = vpack.i.bf16 %v5332_v20, %v5341_v59  ;;  %v1923_v35 = vpack.c.bf16 %v5336_v50, %v5332_v20  ;;  %v1922_v27 = vpack.c.bf16 %v5334_v36, %v5341_v59 }
 0x54c   : > { %4000 = vrot.lane.b32.xlu1 %v3999_v12, %s4419_s11  ;;  %3990 = vrot.lane.b32.xlu0 %v3989_v62, %s4419_s11 }
 0x54d   : > { %2004 = vmatprep.subr.bf16.mxu1 %v1923_v35 }
 0x54e   : > { %2005 = vmatpush1.bf16.msra.mxu1 %v1922_v27 }
 0x5b6   : > { %v3986_v17 = vpop.permute.xlu0 %3985  ;;  %v3996_v49 = vpop.permute.xlu1 %3995 }
 0x5b7   : > { %v3988_v40 = vunpack.i.h.bf16 %v3986_v17  ;;  %v3987_v29 = vunpack.i.l.bf16 %v3986_v17  ;;  %v3997_v28 = vunpack.i.l.bf16 %v3996_v49  ;;  %v3998_v32 = vunpack.i.h.bf16 %v3996_v49 }
 0x5b9   : > { %v2225_v8 = vsel %vm733_vm1, %v3987_v29, %v3988_v40  ;;  %v2241_v15 = vsel %vm733_vm1, -inf, %v3987_v29  ;;  %v2245_v39 = vsel %vm733_vm1, %v3988_v40, -inf  ;;  %v2242_v5 = vsel %vm733_vm1, -inf, %v3997_v28 }
 0x5ba   : > { %v4009_v33 = vpack.i.bf16 %v2225_v8, %v2241_v15  ;;  %v4034_v26 = vpack.i.bf16 %v2242_v5, %v2245_v39  ;;  %v2246_v52 = vsel %vm733_vm1, %v3998_v32, -inf  ;;  %v2226_v3 = vsel %vm733_vm1, %v3997_v28, %v3998_v32 }
 0x5bb   : > { %v4049_v43 = vpack.i.bf16 %v2246_v52, %v2226_v3  ;;  %v2251_v60 = vsel %vm449_vm3, %v2241_v15, -inf  ;;  %v5402_v30 = vsel %vm450_vm4, %v2225_v8, -inf  ;;  %v5409_v12 = vsel %vm449_vm3, %v2242_v5, -inf }
 0x5bc   : > { %4010 = vrot.lane.b32.xlu1 %v4009_v33, %s4420_s12  ;;  %4005 = vrot.lane.b32.xlu0 %v4009_v33, %s4421_s13  ;;  %v2259_v42 = vmax.f32 %v5269_v21, %v2251_v60  ;;  %v2254_v21 = vsel %vm450_vm4, %v2226_v3, -inf }
 0x5bd   : > { %v2262_v32 = vmax.f32 %v5299_v34, %v2254_v21 }
 0x5be   : > { %v3991_v53 = vpop.permute.xlu0 %3990  ;;  %v4001_v56 = vpop.permute.xlu1 %4000 }
 0x5bf   : > { %v3993_v44 = vunpack.i.h.bf16 %v3991_v53  ;;  %v3992_v48 = vunpack.i.l.bf16 %v3991_v53  ;;  %v4002_v6 = vunpack.i.l.bf16 %v4001_v56  ;;  %v4003_v18 = vunpack.i.h.bf16 %v4001_v56 }
 0x5c0   : > { %4020 = vrot.lane.b32.xlu1 %v4009_v33, %s4422_s14  ;;  %v2261_v53 = vmax.f32 %v5304_v61, %v5409_v12 }
 0x5c1   : > { %v5359_v37 = vsel %vm733_vm1, %v3992_v48, %v3993_v44  ;;  %v5362_v11 = vsel %vm733_vm1, -inf, %v3992_v48  ;;  %v2240_v38 = vsel %vm733_vm1, -inf, %v4002_v6  ;;  %v2243_v54 = vsel %vm733_vm1, %v3993_v44, -inf }
 0x5c2   : > { %v4029_v23 = vpack.i.bf16 %v5359_v37, %v5362_v11  ;;  %v4054_v58 = vpack.i.bf16 %v2240_v38, %v2243_v54  ;;  %v2244_v7 = vsel %vm733_vm1, %v4003_v18, -inf  ;;  %v2224_v9 = vsel %vm733_vm1, %v4002_v6, %v4003_v18 }
 0x5c3   : > { %v4059_v22 = vpack.i.bf16 %v2244_v7, %v2224_v9  ;;  %v5421_v29 = vsel %vm449_vm3, %v2240_v38, -inf  ;;  %v5427_v33 = vsel %vm450_vm4, %v2224_v9, -inf  ;;  %v2247_v56 = vsel %vm449_vm3, %v5362_v11, -inf }
 0x5c4   : > { %4030 = vrot.lane.b32.xlu1 %v4029_v23, %s4422_s14  ;;  %4015 = vrot.lane.b32.xlu0 %v4029_v23, %s4421_s13  ;;  %v2257_v48 = vmax.f32 %v5334_v36, %v5421_v29  ;;  %v2258_v3 = vmax.f32 %v5336_v50, %v5427_v33  ;;  %v2248_v6 = vsel %vm450_vm4, %v5359_v37, -inf  ;;  %v2255_v60 = vmax.f32 %v5341_v59, %v2247_v56 }
 0x5c8   : > { %4035 = vrot.lane.b32.xlu1 %v4034_v26, %s4421_s13  ;;  %4025 = vrot.lane.b32.xlu0 %v4029_v23, %s4420_s12  ;;  %v2260_v23 = vmax.f32 %v5302_v16, %v5402_v30 }
 0x5cc   : > { %4050 = vrot.lane.b32.xlu1 %v4049_v43, %s4420_s12  ;;  %4040 = vrot.lane.b32.xlu0 %v4049_v43, %s4421_s13 }
 0x5d0   : > { %4055 = vrot.lane.b32.xlu1 %v4054_v58, %s4421_s13  ;;  %4045 = vrot.lane.b32.xlu0 %v4034_v26, %s4420_s12 }
 0x5d4   : > { %4070 = vrot.lane.b32.xlu1 %v4049_v43, %s4422_s14  ;;  %4060 = vrot.lane.b32.xlu0 %v4059_v22, %s4421_s13 }
 0x5d8   : > { %4075 = vrot.lane.b32.xlu1 %v4054_v58, %s4420_s12  ;;  %4065 = vrot.lane.b32.xlu0 %v4034_v26, %s4422_s14 }
 0x5dc   : > { %4090 = vrot.lane.b32.xlu1 %v4059_v22, %s4422_s14  ;;  %4080 = vrot.lane.b32.xlu0 %v4059_v22, %s4420_s12 }
 0x5e0   : > { %4085 = vrot.lane.b32.xlu0 %v4054_v58, %s4422_s14 }
 0x62e   : > { %v5389_v31 = vpop.permute.xlu1 %4010  ;;  %v4006_v55 = vpop.permute.xlu0 %4005 }
 0x62f   : > { %v4008_v25 = vunpack.i.h.bf16 %v4006_v55  ;;  %v4007_v24 = vunpack.i.l.bf16 %v4006_v55  ;;  %v4013_v4 = vunpack.i.h.bf16 %v5389_v31  ;;  %v4012_v57 = vunpack.i.l.bf16 %v5389_v31 }
 0x631   : > { %v2299_v45 = vsel %vm806_vm2, %v4007_v24, %v4008_v25  ;;  %v2355_v49 = vsel %vm863_vm6, %v4012_v57, %v4013_v4 }
 0x632   : > { %v5391_v46 = vpop.permute.xlu1 %4020  ;;  %v2315_v62 = vsel %vm457_vm5, %v2299_v45, -inf  ;;  %v2371_v16 = vsel %vm467_vm8, %v2355_v49, -inf }
 0x633   : > { %v4023_v35 = vunpack.i.h.bf16 %v5391_v46  ;;  %v4022_v27 = vunpack.i.l.bf16 %v5391_v46  ;;  %v2323_v44 = vmax.f32 %v2259_v42, %v2315_v62 }
 0x635   : > { %v2411_v28 = vsel %vm920_vm9, %v4022_v27, %v4023_v35  ;;  %v2379_v18 = vmax.f32 %v2323_v44, %v2371_v16 }
 0x636   : > { %v5395_v10 = vpop.permute.xlu1 %4030  ;;  %v5397_v47 = vpop.permute.xlu0 %4015  ;;  %v2427_v63 = vsel %vm475_vm10, %v2411_v28, -inf }
 0x637   : > { %v4018_v8 = vunpack.i.h.bf16 %v5397_v47  ;;  %v4017_v15 = vunpack.i.l.bf16 %v5397_v47  ;;  %v4033_v11 = vunpack.i.h.bf16 %v5395_v10  ;;  %v4032_v38 = vunpack.i.l.bf16 %v5395_v10 }
 0x638   : > { %v5462_v42 = vmax.f32 %v2379_v18, %v2427_v63 }
 0x639   : > { %v2295_v26 = vsel %vm806_vm2, %v4017_v15, %v4018_v8  ;;  %v5467_v57 = vsel %vm920_vm9, %v4032_v38, %v4033_v11 }
 0x63a   : > { %v4036_v17 = vpop.permute.xlu1 %4035  ;;  %v5415_v40 = vpop.permute.xlu0 %4025  ;;  %v2311_v54 = vsel %vm457_vm5, %v2295_v26, -inf }
 0x63b   : > { %v4037_v52 = vunpack.i.l.bf16 %v4036_v17  ;;  %v4028_v58 = vunpack.i.h.bf16 %v5415_v40  ;;  %v4027_v1 = vunpack.i.l.bf16 %v5415_v40  ;;  %v4038_v47 = vunpack.i.h.bf16 %v4036_v17 }
 0x63c   : > { %v5472_v27 = vmax.f32 %v2255_v60, %v2311_v54 }
 0x63d   : > { %v2300_v22 = vsel %vm806_vm2, %v4008_v25, %v4037_v52  ;;  %v2256_v25 = vmax.f32 %v5332_v20, %v2248_v6  ;;  %v2351_v17 = vsel %vm863_vm6, %v4027_v1, %v4028_v58 }
 0x63e   : > { %v4051_v39 = vpop.permute.xlu1 %4050  ;;  %v4041_v5 = vpop.permute.xlu0 %4040  ;;  %v2316_v59 = vsel %vm458_vm7, %v2300_v22, -inf  ;;  %v5484_v52 = vsel %vm467_vm8, %v2351_v17, -inf }
 0x63f   : > { %v4043_v43 = vunpack.i.h.bf16 %v4041_v5  ;;  %v4042_v34 = vunpack.i.l.bf16 %v4041_v5  ;;  %v4053_v31 = vunpack.i.h.bf16 %v4051_v39  ;;  %v4052_v55 = vunpack.i.l.bf16 %v4051_v39 }
 0x641   : > { %v2302_v37 = vsel %vm806_vm2, %v4042_v34, %v4043_v43  ;;  %v2301_v40 = vsel %vm806_vm2, %v4038_v47, %v4042_v34  ;;  %v2358_v49 = vsel %vm863_vm6, %v4052_v55, %v4053_v31  ;;  %v2324_v34 = vmax.f32 %v2260_v23, %v2316_v59 }
 0x642   : > { %v4056_v7 = vpop.permute.xlu1 %4055  ;;  %v4046_v9 = vpop.permute.xlu0 %4045  ;;  %v2318_v62 = vsel %vm458_vm7, %v2302_v37, -inf  ;;  %v2317_v6 = vsel %vm457_vm5, %v2301_v40, -inf  ;;  %v2375_v37 = vmax.f32 %v5472_v27, %v5484_v52 }
 0x643   : > { %v4057_v24 = vunpack.i.l.bf16 %v4056_v7  ;;  %v4048_v45 = vunpack.i.h.bf16 %v4046_v9  ;;  %v4047_v30 = vunpack.i.l.bf16 %v4046_v9  ;;  %v2326_v5 = vmax.f32 %v2262_v32, %v2318_v62 }
 0x644   : > { %v4058_v16 = vunpack.i.h.bf16 %v4056_v7  ;;  %v2325_v7 = vmax.f32 %v2261_v53, %v2317_v6 }
 0x645   : > { %v2296_v44 = vsel %vm806_vm2, %v4018_v8, %v4057_v24  ;;  %v2356_v28 = vsel %vm863_vm6, %v4013_v4, %v4047_v30  ;;  %v2357_v20 = vsel %vm863_vm6, %v4048_v45, %v4052_v55  ;;  %v2374_v8 = vsel %vm468_vm11, %v2358_v49, -inf }
 0x646   : > { %v4071_v21 = vpop.permute.xlu1 %4070  ;;  %v4061_v15 = vpop.permute.xlu0 %4060  ;;  %v2312_v4 = vsel %vm458_vm7, %v2296_v44, -inf  ;;  %v2372_v32 = vsel %vm468_vm11, %v2356_v28, -inf  ;;  %v2373_v38 = vsel %vm467_vm8, %v2357_v20, -inf  ;;  %v2382_v9 = vmax.f32 %v2326_v5, %v2374_v8 }
 0x647   : > { %v4073_v39 = vunpack.i.h.bf16 %v4071_v21  ;;  %v4072_v56 = vunpack.i.l.bf16 %v4071_v21  ;;  %v4063_v26 = vunpack.i.h.bf16 %v4061_v15  ;;  %v4062_v43 = vunpack.i.l.bf16 %v4061_v15 }
 0x648   : > { %v2320_v31 = vmax.f32 %v2256_v25, %v2312_v4  ;;  %v2380_v55 = vmax.f32 %v2324_v34, %v2372_v32  ;;  %v2381_v47 = vmax.f32 %v2325_v7, %v2373_v38  ;;  %v2423_v34 = vsel %vm475_vm10, %v5467_v57, -inf  ;;  %v4220_v57 = vld [vmem:[%s6358_s3 + $0x10] sm:$0xff]   ;;  %v4224_v38 = vld [vmem:[%s6358_s3 + $0x20] sm:$0xff]   ;;  %v4230_v7 = vld [vmem:[%s6358_s3 + $0x38] sm:$0xff]  }
 0x649   : > { %v2414_v54 = vsel %vm920_vm9, %v4072_v56, %v4073_v39  ;;  %v2297_v1 = vsel %vm806_vm2, %v4058_v16, %v4062_v43  ;;  %v2298_v23 = vsel %vm806_vm2, %v4062_v43, %v4063_v26  ;;  %v5565_v10 = vmax.f32 %v2375_v37, %v2423_v34  ;;  %3411 = vmatmul.mubr.msk.bf16.gmra.mxu1 %vm539_vm13, %v4220_v57  ;;  %v4228_v37 = vld [vmem:[%s6358_s3 + $0x30] sm:$0xff]  }
 0x64a   : > { %v4076_v18 = vpop.permute.xlu1 %4075  ;;  %v4066_v63 = vpop.permute.xlu0 %4065  ;;  %v2430_v45 = vsel %vm476_vm12, %v2414_v54, -inf  ;;  %v2313_v30 = vsel %vm457_vm5, %v2297_v1, -inf  ;;  %v2314_v62 = vsel %vm458_vm7, %v2298_v23, -inf  ;;  %626 = vmatprep.mubr.bf16.mxu1 %v4418_v0  ;;  %v4221_v54 = vld [vmem:[%s6358_s3 + $0x40] sm:$0xff]   ;;  %v4226_v1 = vld [vmem:[%s6358_s3 + $0x28] sm:$0xff]   ;;  %v2975_v57 = vld [vmem:[%s6359_s4 + $0x10] sm:$0xff] }
 0x64b   : > { %v4077_v22 = vunpack.i.l.bf16 %v4076_v18  ;;  %v4068_v24 = vunpack.i.h.bf16 %v4066_v63  ;;  %v4067_v60 = vunpack.i.l.bf16 %v4066_v63  ;;  %v4078_v17 = vunpack.i.h.bf16 %v4076_v18  ;;  %v4222_v63 = vld [vmem:[%s6358_s3 + $0x18] sm:$0xff]   ;;  %3441 = vmatmul.mubr.msk.bf16.vlgmr.msra.gmra.mxu0 %vm539_vm13, %v4221_v54  ;;  %v4223_v23 = vld [vmem:[%s6358_s3 + $0x48] sm:$0xff]  }
 0x64c   : > { %v5523_v44 = vmax.f32 %v2382_v9, %v2430_v45  ;;  %v2321_v46 = vmax.f32 %v2257_v48, %v2313_v30  ;;  %1290 = vmatprep.mubr.bf16.mxu0 %v4418_v0  ;;  %v4232_v9 = vld [vmem:[%s6358_s3 + $0x80] sm:$0xff]   ;;  %v2980_v54 = vld [vmem:[%s6359_s4 + $0x38] sm:$0xff] }
 0x64d   : > { %v2352_v61 = vsel %vm863_vm6, %v4028_v58, %v4077_v22  ;;  %v2413_v12 = vsel %vm920_vm9, %v4068_v24, %v4072_v56  ;;  %v2412_v53 = vsel %vm920_vm9, %v4023_v35, %v4067_v60  ;;  %v2322_v35 = vmax.f32 %v2258_v3, %v2314_v62  ;;  %v4234_v22 = vld [vmem:[%s6358_s3 + $0x88] sm:$0xff]   ;;  %v4227_v24 = vld [vmem:[%s6358_s3 + $0x58] sm:$0xff]   ;;  %v4229_v62 = vld [vmem:[%s6358_s3 + $0x60] sm:$0xff]  }
 0x64e   : > { %v4091_v27 = vpop.permute.xlu1 %4090  ;;  %v4081_v59 = vpop.permute.xlu0 %4080  ;;  %v2429_v40 = vsel %vm475_vm10, %v2413_v12, -inf  ;;  %v2428_v2 = vsel %vm476_vm12, %v2412_v53, -inf  ;;  %v2368_v28 = vsel %vm468_vm11, %v2352_v61, -inf  ;;  %v4238_v60 = vld [vmem:[%s6358_s3 + $0x98] sm:$0xff]   ;;  %v4240_v12 = vld [vmem:[%s6358_s3 + $0xa0] sm:$0xff]  }
 0x64f   : > { %v4093_v25 = vunpack.i.h.bf16 %v4091_v27  ;;  %v4092_v13 = vunpack.i.l.bf16 %v4091_v27  ;;  %v5519_v21 = vmax.f32 %v2380_v55, %v2428_v2  ;;  %v5521_v15 = vmax.f32 %v2381_v47, %v2429_v40  ;;  %v4236_v55 = vld [vmem:[%s6358_s3 + $0x90] sm:$0xff]  }
 0x650   : > { %v4083_v58 = vunpack.i.h.bf16 %v4081_v59  ;;  %v4082_v49 = vunpack.i.l.bf16 %v4081_v59  ;;  %v2376_v16 = vmax.f32 %v2320_v31, %v2368_v28  ;;  %v4225_v31 = vld [vmem:[%s6358_s3 + $0x50] sm:$0xff]   ;;  %v4242_v28 = vld [vmem:[%s6358_s3 + $0xa8] sm:$0xff]  }
 0x651   : > { %v2410_v5 = vsel %vm920_vm9, %v4092_v13, %v4093_v25  ;;  %v4094_v50 = vpack.i.bf16 %v5519_v21, %v5462_v42  ;;  %v4104_v6 = vpack.i.bf16 %v5523_v44, %v5521_v15  ;;  %3412 = vmatmul.mubr.msk.bf16.gmra.mxu1 %vm539_vm13, %v4222_v63  ;;  %v2978_v63 = vld [vmem:[%s6359_s4 + $0x28] sm:$0xff] }
 0x652   : > { %v4086_v39 = vpop.permute.xlu0 %4085  ;;  %v2353_v20 = vsel %vm863_vm6, %v4078_v17, %v4082_v49  ;;  %v2354_v56 = vsel %vm863_vm6, %v4082_v49, %v4083_v58  ;;  %v2426_v43 = vsel %vm476_vm12, %v2410_v5, -inf  ;;  %636 = vmatprep.mubr.bf16.mxu1 %v4418_v0  ;;  %v4231_v49 = vld [vmem:[%s6358_s3 + $0x68] sm:$0xff]  }
 0x653   : > { %v4088_v26 = vunpack.i.h.bf16 %v4086_v39  ;;  %v2369_v52 = vsel %vm467_vm8, %v2353_v20, -inf  ;;  %v2370_v36 = vsel %vm468_vm11, %v2354_v56, -inf  ;;  %v4087_v29 = vunpack.i.l.bf16 %v4086_v39  ;;  %4095 = vrot.lane.b32.xlu0 %v4094_v50, %s4423_s15  ;;  %4105 = vrot.lane.b32.xlu1 %v4104_v6, %s4423_s15  ;;  %v4233_v50 = vld [vmem:[%s6358_s3 + $0x70] sm:$0xff]  }
 0x654   : > { %v2377_v33 = vmax.f32 %v2321_v46, %v2369_v52  ;;  %v2378_v48 = vmax.f32 %v2322_v35, %v2370_v36  ;;  %3442 = vmatmul.mubr.msk.bf16.gmra.mxu0 %vm539_vm13, %v4223_v23  ;;  %v2982_v23 = vld [vmem:[%s6359_s4 + $0x48] sm:$0xff] }
 0x655   : > { %v2409_v3 = vsel %vm920_vm9, %v4088_v26, %v4092_v13  ;;  %v2408_v41 = vsel %vm920_vm9, %v4033_v11, %v4087_v29  ;;  %1300 = vmatprep.mubr.bf16.mxu0 %v4418_v0 }
 0x656   : > { %v2425_v14 = vsel %vm475_vm10, %v2409_v3, -inf  ;;  %v2424_v8 = vsel %vm476_vm12, %v2408_v41, -inf  ;;  %v5561_v32 = vmax.f32 %v2378_v48, %v2426_v43  ;;  %v4244_v48 = vld [vmem:[%s6358_s3 + $0xb0] sm:$0xff]   ;;  %v4235_v43 = vld [vmem:[%s6358_s3 + $0x78] sm:$0xff]  }
 0x657   : > { %v5558_v4 = vmax.f32 %v2377_v33, %v2425_v14  ;;  %v5563_v18 = vmax.f32 %v2376_v16, %v2424_v8  ;;  %v4246_v14 = vld [vmem:[%s6358_s3 + $0xb8] sm:$0xff]  }
 0x659   : > { %v4109_v11 = vpack.i.bf16 %v5561_v32, %v5558_v4  ;;  %v4099_v19 = vpack.i.bf16 %v5563_v18, %v5565_v10  ;;  %3413 = vmatmul.mubr.msk.bf16.gmra.mxu1 %vm539_vm13, %v4224_v38  ;;  %v2977_v38 = vld [vmem:[%s6359_s4 + $0x20] sm:$0xff] }
 0x65a   : > { %646 = vmatprep.mubr.bf16.mxu1 %v4418_v0 }
 0x65b   : > { %4110 = vrot.lane.b32.xlu1 %v4109_v11, %s4423_s15  ;;  %4100 = vrot.lane.b32.xlu0 %v4099_v19, %s4423_s15  ;;  %v2974_v11 = vld [vmem:[%s6359_s4 + $0x8] sm:$0xff]  ;;  %v2973_v19 = vld [vmem:[%s6359_s4] sm:$0xff] }
 0x65c   : > { %3443 = vmatmul.mubr.msk.bf16.gmra.mxu0 %vm539_vm13, %v4225_v31  ;;  %v2985_v31 = vld [vmem:[%s6359_s4 + $0x60] sm:$0xff] }
 0x65d   : > { %1310 = vmatprep.mubr.bf16.mxu0 %v4418_v0 }
 0x661   : > { %3414 = vmatmul.mubr.msk.bf16.gmra.mxu1 %vm539_vm13, %v4226_v1  ;;  %v2979_v1 = vld [vmem:[%s6359_s4 + $0x30] sm:$0xff] }
 0x662   : > { %656 = vmatprep.mubr.bf16.mxu1 %v4418_v0 }
 0x664   : > { %3444 = vmatmul.mubr.msk.bf16.gmra.mxu0 %vm539_vm13, %v4227_v24  ;;  %v2987_v24 = vld [vmem:[%s6359_s4 + $0x70] sm:$0xff] }
 0x665   : > { %1320 = vmatprep.mubr.bf16.mxu0 %v4418_v0 }
 0x669   : > { %3415 = vmatmul.mubr.msk.bf16.gmra.mxu1 %vm539_vm13, %v4228_v37  ;;  %v2981_v37 = vld [vmem:[%s6359_s4 + $0x40] sm:$0xff] }
 0x66a   : > { %666 = vmatprep.mubr.bf16.mxu1 %v4418_v0 }
 0x66c   : > { %3445 = vmatmul.mubr.msk.bf16.gmra.mxu0 %vm539_vm13, %v4229_v62 }
 0x66d   : > { %1330 = vmatprep.mubr.bf16.mxu0 %v4418_v0 }
 0x671   : > { %3416 = vmatmul.mubr.msk.bf16.gmra.mxu1 %vm539_vm13, %v4230_v7  ;;  %v2984_v7 = vld [vmem:[%s6359_s4 + $0x58] sm:$0xff] }
 0x672   : > { %2022 = vmatprep.mubr.bf16.mxu1 %v4418_v0 }
 0x674   : > { %3446 = vmatmul.mubr.msk.bf16.gmra.mxu0 %vm539_vm13, %v4231_v49 }
 0x675   : > { %1340 = vmatprep.mubr.bf16.mxu0 %v4418_v0 }
 0x679   : > { %3473 = vmatmul.mubr.msk.bf16.vlgmr.msra.gmra.mxu1 %vm539_vm13, %v4232_v9  ;;  %v2983_v9 = vld [vmem:[%s6359_s4 + $0x50] sm:$0xff] }
 0x67a   : > { %2032 = vmatprep.mubr.bf16.mxu1 %v4418_v0 }
 0x67c   : > { %3447 = vmatmul.mubr.msk.bf16.gmra.mxu0 %vm539_vm13, %v4233_v50 }
 0x67d   : > { %1350 = vmatprep.mubr.bf16.mxu0 %v4418_v0 }
 0x681   : > { %3474 = vmatmul.mubr.msk.bf16.gmra.mxu1 %vm539_vm13, %v4234_v22  ;;  %v2986_v22 = vld [vmem:[%s6359_s4 + $0x68] sm:$0xff] }
 0x682   : > { %2042 = vmatprep.mubr.bf16.mxu1 %v4418_v0 }
 0x684   : > { %3448 = vmatmul.mubr.msk.bf16.gmra.mxu0 %vm539_vm13, %v4235_v43 }
 0x685   : > { %2764 = vmatprep.mubr.bf16.mxu0 %v4418_v0 }
 0x689   : > { %3475 = vmatmul.mubr.msk.bf16.gmra.mxu1 %vm539_vm13, %v4236_v55  ;;  %v2988_v55 = vld [vmem:[%s6359_s4 + $0x78] sm:$0xff] }
 0x68a   : > { %2052 = vmatprep.mubr.bf16.mxu1 %v4418_v0 }
 0x691   : > { %3476 = vmatmul.mubr.msk.bf16.gmra.mxu1 %vm539_vm13, %v4238_v60  ;;  %v5789_v60 = vpop.f32.mrf.mxu1 }
 0x692   : > { %2062 = vmatprep.mubr.bf16.mxu1 %v4418_v0 }
 0x699   : > { %3477 = vmatmul.mubr.msk.bf16.gmra.mxu1 %vm539_vm13, %v4240_v12 }
 0x69a   : > { %2072 = vmatprep.mubr.bf16.mxu1 %v4418_v0 }
 0x6a1   : > { %3478 = vmatmul.mubr.msk.bf16.gmra.mxu1 %vm539_vm13, %v4242_v28 }
 0x6a2   : > { %2082 = vmatprep.mubr.bf16.mxu1 %v4418_v0 }
 0x6a9   : > { %3479 = vmatmul.mubr.msk.bf16.gmra.mxu1 %vm539_vm13, %v4244_v48 }
 0x6aa   : > { %2092 = vmatprep.mubr.bf16.mxu1 %v4418_v0 }
 0x6b1   : > { %3480 = vmatmul.mubr.msk.bf16.gmra.mxu1 %vm539_vm13, %v4246_v14 }
 0x6c5   : > { %v4096_v47 = vpop.permute.xlu0 %4095  ;;  %v4106_v53 = vpop.permute.xlu1 %4105 }
 0x6c6   : > { %v4098_v45 = vunpack.i.h.bf16 %v4096_v47  ;;  %v4097_v30 = vunpack.i.l.bf16 %v4096_v47  ;;  %v4108_v2 = vunpack.i.h.bf16 %v4106_v53  ;;  %v4107_v13 = vunpack.i.l.bf16 %v4106_v53  ;;  %v5791_v47 = vpop.f32.mrf.mxu1 }
 0x6c8   : > { %v2485_v27 = vsel %vm539_vm13, %v4098_v45, -inf  ;;  %v5653_v59 = vsel %vm539_vm13, %v4097_v30, %v4098_v45  ;;  %v2486_v39 = vsel %vm539_vm13, %v4108_v2, -inf  ;;  %v5679_v5 = vsel %vm539_vm13, %v4107_v13, %v4108_v2  ;;  %v5793_v45 = vpop.f32.mrf.mxu1 }
 0x6c9   : > { %v4119_v61 = vpack.i.bf16 %v2485_v27, %v5653_v59  ;;  %v4144_v56 = vpack.i.bf16 %v2486_v39, %v5679_v5  ;;  %v5688_v26 = vsel %vm539_vm13, -inf, %v4097_v30  ;;  %v5691_v52 = vsel %vm539_vm13, -inf, %v4107_v13 }
 0x6ca   : > { %v4159_v33 = vpack.i.bf16 %v5691_v52, %v5688_v26  ;;  %v5795_v30 = vpop.f32.mrf.mxu1  ;;  %v2492_v39 = vmax.f32 %v5519_v21, %v5653_v59  ;;  %v2491_v14 = vmax.f32 %v5462_v42, %v5688_v26  ;;  %v2493_v21 = vmax.f32 %v5521_v15, %v5691_v52 }
 0x6cb   : > { %4120 = vrot.lane.b32.xlu1 %v4119_v61, %s4424_s16  ;;  %4115 = vrot.lane.b32.xlu0 %v4119_v61, %s4425_s17 }
 0x6cc   : > { %v5797_v62 = vpop.f32.mrf.mxu1 }
 0x6cd   : > { %v4101_v25 = vpop.permute.xlu0 %4100  ;;  %v4111_v20 = vpop.permute.xlu1 %4110 }
 0x6ce   : > { %v4103_v17 = vunpack.i.h.bf16 %v4101_v25  ;;  %v4102_v40 = vunpack.i.l.bf16 %v4101_v25  ;;  %v4113_v36 = vunpack.i.h.bf16 %v4111_v20  ;;  %v4112_v29 = vunpack.i.l.bf16 %v4111_v20  ;;  %v5799_v27 = vpop.f32.mrf.mxu1 }
 0x6d0   : > { %v2483_v58 = vsel %vm539_vm13, %v4103_v17, -inf  ;;  %v5670_v46 = vsel %vm539_vm13, %v4102_v40, %v4103_v17  ;;  %v2484_v3 = vsel %vm539_vm13, %v4113_v36, -inf  ;;  %v5706_v6 = vsel %vm539_vm13, %v4112_v29, %v4113_v36  ;;  %v5803_v53 = vpop.f32.mrf.mxu1 }
 0x6d1   : > { %v4139_v35 = vpack.i.bf16 %v2483_v58, %v5670_v46  ;;  %v4164_v16 = vpack.i.bf16 %v2484_v3, %v5706_v6  ;;  %v5724_v41 = vsel %vm539_vm13, -inf, %v4112_v29  ;;  %v5727_v34 = vsel %vm539_vm13, -inf, %v4102_v40 }
 0x6d2   : > { %v4174_v8 = vpack.i.bf16 %v5724_v41, %v5727_v34  ;;  %v5809_v40 = vpop.f32.mrf.mxu1  ;;  %v2487_v42 = vmax.f32 %v5565_v10, %v5727_v34  ;;  %v2488_v15 = vmax.f32 %v5563_v18, %v5670_v46  ;;  %v2490_v52 = vmax.f32 %v5561_v32, %v5706_v6 }
 0x6d3   : > { %4140 = vrot.lane.b32.xlu1 %v4139_v35, %s4426_s20  ;;  %4125 = vrot.lane.b32.xlu0 %v4139_v35, %s4425_s17 }
 0x6d7   : > { %4145 = vrot.lane.b32.xlu1 %v4144_v56, %s4425_s17  ;;  %4130 = vrot.lane.b32.xlu0 %v4119_v61, %s4426_s20 }
 0x6db   : > { %4160 = vrot.lane.b32.xlu1 %v4159_v33, %s4424_s16  ;;  %4135 = vrot.lane.b32.xlu0 %v4139_v35, %s4424_s16 }
 0x6df   : > { %4165 = vrot.lane.b32.xlu1 %v4164_v16, %s4425_s17  ;;  %4150 = vrot.lane.b32.xlu0 %v4159_v33, %s4425_s17 }
 0x6e3   : > { %4170 = vrot.lane.b32.xlu1 %v4144_v56, %s4426_s20  ;;  %4155 = vrot.lane.b32.xlu0 %v4144_v56, %s4424_s16 }
 0x6e7   : > { %4180 = vrot.lane.b32.xlu1 %v4159_v33, %s4426_s20  ;;  %4175 = vrot.lane.b32.xlu0 %v4174_v8, %s4425_s17 }
 0x6eb   : > { %4185 = vrot.lane.b32.xlu1 %v4164_v16, %s4424_s16  ;;  %4190 = vrot.lane.b32.xlu0 %v4174_v8, %s4424_s16 }
 0x6ef   : > { %4200 = vrot.lane.b32.xlu1 %v4174_v8, %s4426_s20  ;;  %4195 = vrot.lane.b32.xlu0 %v4164_v16, %s4426_s20 }
 0x6f3   : > { %2996 = vperm.xlu1 %3543, %v2974_v11   ;;  %2991 = vperm.xlu0 %3542, %v2973_v19  }
 0x6f7   : > { %3006 = vperm.xlu1 %3543, %v2976_v51   ;;  %3001 = vperm.xlu0 %3542, %v2975_v57   ;;  %v2489_v51 = vmax.f32 %v5558_v4, %v5724_v41  ;;  %v2494_v57 = vmax.f32 %v5523_v44, %v5679_v5 }
 0x6fb   : > { %3016 = vperm.xlu1 %3543, %v2978_v63   ;;  %3011 = vperm.xlu0 %3542, %v2977_v38  }
 0x6ff   : > { %3026 = vperm.xlu1 %3543, %v2980_v54   ;;  %3021 = vperm.xlu0 %3542, %v2979_v1  }
 0x703   : > { %3036 = vperm.xlu1 %3543, %v2982_v23   ;;  %3031 = vperm.xlu0 %3542, %v2981_v37  }
 0x707   : > { %3046 = vperm.xlu1 %3543, %v2984_v7   ;;  %3041 = vperm.xlu0 %3542, %v2983_v9  }
 0x709   : > { %v5813_v35 = vpop.f32.mrf.mxu1 }
 0x70b   : > { %3056 = vperm.xlu1 %3543, %v2986_v22   ;;  %3051 = vperm.xlu0 %3542, %v2985_v31   ;;  %v5822_v33 = vpop.f32.mrf.mxu1 }
 0x70d   : > { %v5843_v54 = vpop.f32.mrf.mxu1 }
 0x70f   : > { %3066 = vperm.xlu1 %3543, %v2988_v55   ;;  %3061 = vperm.xlu0 %3542, %v2987_v24  }
 0x73d   : > { %v5801_v61 = vpop.permute.xlu1 %4120  ;;  %v4116_v12 = vpop.permute.xlu0 %4115 }
 0x73e   : > { %v4118_v2 = vunpack.i.h.bf16 %v4116_v12  ;;  %v4117_v13 = vunpack.i.l.bf16 %v4116_v12  ;;  %v4123_v36 = vunpack.i.h.bf16 %v5801_v61  ;;  %v4122_v29 = vunpack.i.l.bf16 %v5801_v61 }
 0x740   : > { %v2532_v28 = vsel %vm1041_vm14, %v4117_v13, %v4118_v2  ;;  %v2580_v26 = vsel %vm1090_vm15, %v4122_v29, %v4123_v36 }
 0x741   : > { %v2548_v50 = vmax.f32 %v2492_v39, %v2532_v28 }
 0x743   : > { %v2596_v23 = vmax.f32 %v2548_v50, %v2580_v26  ;;  %v5858_v50 = vpop.f32.mrf.mxu0 }
 0x745   : > { %v5805_v25 = vpop.permute.xlu1 %4140  ;;  %v5807_v17 = vpop.permute.xlu0 %4125 }
 0x746   : > { %v4128_v48 = vunpack.i.h.bf16 %v5807_v17  ;;  %v4127_v3 = vunpack.i.l.bf16 %v5807_v17 }
 0x748   : > { %v2528_v1 = vsel %vm1041_vm14, %v4127_v3, %v4128_v48 }
 0x749   : > { %v4146_v58 = vpop.permute.xlu1 %4145  ;;  %v5811_v49 = vpop.permute.xlu0 %4130 }
 0x74a   : > { %v4148_v16 = vunpack.i.h.bf16 %v4146_v58  ;;  %v4147_v43 = vunpack.i.l.bf16 %v4146_v58  ;;  %v4133_v59 = vunpack.i.h.bf16 %v5811_v49  ;;  %v4132_v8 = vunpack.i.l.bf16 %v5811_v49 }
 0x74c   : > { %v2534_v44 = vsel %vm1041_vm14, %v4147_v43, %v4148_v16  ;;  %v2628_v37 = vsel %vm312_vm0, %v4132_v8, %v4133_v59 }
 0x74d   : > { %v4161_v20 = vpop.permute.xlu1 %4160  ;;  %v5818_v56 = vpop.permute.xlu0 %4135  ;;  %v2550_v12 = vmax.f32 %v2494_v57, %v2534_v44  ;;  %v2644_v44 = vmax.f32 %v2596_v23, %v2628_v37 }
 0x74e   : > { %v4163_v7 = vunpack.i.h.bf16 %v4161_v20  ;;  %v4162_v9 = vunpack.i.l.bf16 %v4161_v20  ;;  %v4138_v2 = vunpack.i.h.bf16 %v5818_v56  ;;  %v4137_v58 = vunpack.i.l.bf16 %v5818_v56 }
 0x750   : > { %v2579_v48 = vsel %vm1090_vm15, %v4162_v9, %v4122_v29 }
 0x751   : > { %v4166_v11 = vpop.permute.xlu1 %4165  ;;  %v4151_v19 = vpop.permute.xlu0 %4150 }
 0x752   : > { %v4153_v63 = vunpack.i.h.bf16 %v4151_v19  ;;  %v4152_v38 = vunpack.i.l.bf16 %v4151_v19  ;;  %v4168_v28 = vunpack.i.h.bf16 %v4166_v11  ;;  %v4167_v39 = vunpack.i.l.bf16 %v4166_v11 }
 0x754   : > { %v2531_v5 = vsel %vm1041_vm14, %v4152_v38, %v4117_v13  ;;  %v2533_v18 = vsel %vm1041_vm14, %v4153_v63, %v4147_v43  ;;  %v5854_v13 = vpop.f32.mrf.mxu1  ;;  %v2530_v29 = vsel %vm1041_vm14, %v4167_v39, %v4168_v28 }
 0x755   : > { %v4171_v46 = vpop.permute.xlu1 %4170  ;;  %v4156_v22 = vpop.permute.xlu0 %4155  ;;  %v2547_v49 = vmax.f32 %v2491_v14, %v2531_v5  ;;  %v2549_v16 = vmax.f32 %v2493_v21, %v2533_v18 }
 0x756   : > { %v4173_v31 = vunpack.i.h.bf16 %v4171_v46  ;;  %v4172_v55 = vunpack.i.l.bf16 %v4171_v46  ;;  %v4158_v24 = vunpack.i.h.bf16 %v4156_v22  ;;  %v4157_v61 = vunpack.i.l.bf16 %v4156_v22  ;;  %v5868_v18 = vpop.f32.mrf.mxu0 }
 0x757   : > { %v2595_v11 = vmax.f32 %v2547_v49, %v2579_v48  ;;  %v2576_v46 = vsel %vm1090_vm15, %v4137_v58, %v4138_v2 }
 0x758   : > { %v2581_v20 = vsel %vm1090_vm15, %v4163_v7, %v4157_v61  ;;  %v2582_v36 = vsel %vm1090_vm15, %v4157_v61, %v4158_v24  ;;  %v2630_v43 = vsel %vm312_vm0, %v4172_v55, %v4173_v31  ;;  %v5862_v7 = vpop.f32.mrf.mxu1 }
 0x759   : > { %v2598_v59 = vmax.f32 %v2550_v12, %v2582_v36  ;;  %v4181_v19 = vpop.permute.xlu1 %4180  ;;  %v4176_v57 = vpop.permute.xlu0 %4175  ;;  %v2597_v26 = vmax.f32 %v2549_v16, %v2581_v20  ;;  %v2544_v20 = vmax.f32 %v2488_v15, %v2528_v1  ;;  %v4142_v16 = vunpack.i.l.bf16 %v5805_v25 }
 0x75a   : > { %v4183_v56 = vunpack.i.h.bf16 %v4181_v19  ;;  %v4182_v14 = vunpack.i.l.bf16 %v4181_v19  ;;  %v4178_v63 = vunpack.i.h.bf16 %v4176_v57  ;;  %v4177_v38 = vunpack.i.l.bf16 %v4176_v57  ;;  %v5875_v48 = vpop.f32.mrf.mxu1 }
 0x75b   : > { %v2646_v5 = vmax.f32 %v2598_v59, %v2630_v43  ;;  %v5881_v43 = vpop.f32.mrf.mxu0  ;;  %v2592_v59 = vmax.f32 %v2544_v20, %v2576_v46  ;;  %v2546_v19 = vmax.f32 %v2490_v52, %v2530_v29 }
 0x75c   : > { %v2627_v21 = vsel %vm312_vm0, %v4182_v14, %v4132_v8  ;;  %v2629_v9 = vsel %vm312_vm0, %v4183_v56, %v4172_v55  ;;  %v2529_v24 = vsel %vm1041_vm14, %v4178_v63, %v4167_v39  ;;  %v2527_v23 = vsel %vm1041_vm14, %v4177_v38, %v4127_v3  ;;  %v5892_v6 = vpop.f32.mrf.mxu1 }
 0x75d   : > { %v2643_v22 = vmax.f32 %v2595_v11, %v2627_v21  ;;  %v2645_v31 = vmax.f32 %v2597_v26, %v2629_v9  ;;  %v4186_v37 = vpop.permute.xlu1 %4185  ;;  %v4191_v61 = vpop.permute.xlu0 %4190  ;;  %v4143_v8 = vunpack.i.h.bf16 %v5805_v25  ;;  %v2667_v55 = vpack.c.bf16 %v2646_v5, %v2644_v44  ;;  %v4237_v21 = vld [vmem:[%s6358_s3 + $0xc0] sm:$0xff]  }
 0x75e   : > { %v4188_v12 = vunpack.i.h.bf16 %v4186_v37  ;;  %v4187_v2 = vunpack.i.l.bf16 %v4186_v37  ;;  %v4193_v49 = vunpack.i.h.bf16 %v4191_v61  ;;  %v4192_v28 = vunpack.i.l.bf16 %v4191_v61  ;;  %v5898_v44 = vpop.f32.mrf.mxu0  ;;  %v5900_v29 = vpop.f32.mrf.mxu1 }
 0x75f   : > { %v2666_v36 = vpack.c.bf16 %v2645_v31, %v2643_v22  ;;  %v2545_v15 = vmax.f32 %v2489_v51, %v2529_v24  ;;  %v2543_v25 = vmax.f32 %v2487_v42, %v2527_v23  ;;  %2744 = vmatprep.subr.bf16.mxu0 %v2667_v55  ;;  %v2624_v4 = vsel %vm312_vm0, %v4142_v16, %v4143_v8  ;;  %v4239_v23 = vld [vmem:[%s6358_s3 + $0xc8] sm:$0xff]  }
 0x760   : > { %v2578_v39 = vsel %vm1090_vm15, %v4187_v2, %v4188_v12  ;;  %v2577_v17 = vsel %vm1090_vm15, %v4193_v49, %v4187_v2  ;;  %v2575_v3 = vsel %vm1090_vm15, %v4192_v28, %v4137_v58  ;;  %v2640_v52 = vmax.f32 %v2592_v59, %v2624_v4  ;;  %v5905_v9 = vpop.f32.mrf.mxu0  ;;  %v5907_v22 = vpop.f32.mrf.mxu1  ;;  %v4241_v49 = vld [vmem:[%s6358_s3 + $0xd0] sm:$0xff]  }
 0x761   : > { %v4201_v1 = vpop.permute.xlu1 %4200  ;;  %v4196_v57 = vpop.permute.xlu0 %4195  ;;  %2745 = vmatpush1.bf16.msra.mxu0 %v2666_v36  ;;  %v2594_v38 = vmax.f32 %v2546_v19, %v2578_v39  ;;  %v2591_v26 = vmax.f32 %v2543_v25, %v2575_v3  ;;  %v2593_v32 = vmax.f32 %v2545_v15, %v2577_v17  ;;  %v4243_v39 = vld [vmem:[%s6358_s3 + $0xd8] sm:$0xff]  }
 0x762   : > { %v4203_v56 = vunpack.i.h.bf16 %v4201_v1  ;;  %v4202_v58 = vunpack.i.l.bf16 %v4201_v1  ;;  %v4198_v14 = vunpack.i.h.bf16 %v4196_v57  ;;  %v4197_v63 = vunpack.i.l.bf16 %v4196_v57  ;;  %v5910_v31 = vpop.f32.mrf.mxu0  ;;  %v5913_v24 = vpop.f32.mrf.mxu1  ;;  %v4245_v1 = vld [vmem:[%s6358_s3 + $0xe0] sm:$0xff]  }
 0x764   : > { %v2623_v41 = vsel %vm312_vm0, %v4202_v58, %v4142_v16  ;;  %v2625_v10 = vsel %vm312_vm0, %v4203_v56, %v4197_v63  ;;  %v2626_v34 = vsel %vm312_vm0, %v4197_v63, %v4198_v14  ;;  %v5918_v37 = vpop.f32.mrf.mxu0  ;;  %v5920_v61 = vpop.f32.mrf.mxu1 }
 0x765   : > { %v2639_v51 = vmax.f32 %v2591_v26, %v2623_v41  ;;  %v2641_v42 = vmax.f32 %v2593_v32, %v2625_v10  ;;  %v2642_v11 = vmax.f32 %v2594_v38, %v2626_v34  ;;  %v4247_v26 = vld [vmem:[%s6358_s3 + $0xe8] sm:$0xff]  }
 0x766   : > { %v5923_v12 = vpop.f32.mrf.mxu0  ;;  %v5926_v2 = vpop.f32.mrf.mxu1 }
 0x767   : > { %v2665_v5 = vpack.c.bf16 %v2642_v11, %v2640_v52  ;;  %v2664_v46 = vpack.c.bf16 %v2641_v42, %v2639_v51  ;;  %v4248_v42 = vld [vmem:[%s6358_s3 + $0xf0] sm:$0xff]  }
 0x768   : > { %v5931_v28 = vpop.f32.mrf.mxu0  ;;  %v5935_v20 = vpop.f32.mrf.mxu1 }
 0x769   : > { %2746 = vmatprep.subr.bf16.mxu0 %v2665_v5 }
 0x76a   : > { %2747 = vmatpush1.bf16.msra.mxu0 %v2664_v46  ;;  %v5933_v8 = vpop.f32.mrf.mxu0  ;;  %v5943_v16 = vpop.f32.mrf.mxu1 }
 0x76b   : > { %6361 = vst [vmem:[#allocation3_spill] sm:$0xff] %v5943_v16  ;;  %v1395_v16 = vadd.f32 %v5881_v43, %v5793_v45  ;;  %v1401_v45 = vadd.f32 %v5931_v28, %v5813_v35 }
 0x76c   : > { %v5938_v55 = vpop.f32.mrf.mxu0  ;;  %v5950_v3 = vpop.f32.mrf.mxu1 }
 0x76d   : > { %3505 = vmatmul.mubr.msk.bf16.vlgmr.msra.gmra.mxu0 %vm539_vm13, %v4237_v21  ;;  %6362 = vst [vmem:[#allocation4_spill] sm:$0xff] %v5950_v3  ;;  %v1393_v3 = vadd.f32 %v5858_v50, %v5789_v60  ;;  %v1399_v60 = vadd.f32 %v5918_v37, %v5803_v53 }
 0x76e   : > { %2774 = vmatprep.mubr.bf16.mxu0 %v4418_v0  ;;  %v5941_v36 = vpop.f32.mrf.mxu0  ;;  %v5958_v15 = vpop.f32.mrf.mxu1 }
 0x76f   : > { %6363 = vst [vmem:[#allocation5_spill] sm:$0xff] %v5958_v15  ;;  %v1404_v53 = vadd.f32 %v5941_v36, %v5854_v13 }
 0x770   : > { %v5948_v17 = vpop.f32.mrf.mxu0  ;;  %v5967_v56 = vpop.f32.mrf.mxu1 }
 0x771   : > { %6364 = vst [vmem:[#allocation6_spill] sm:$0xff] %v5967_v56 }
 0x772   : > { %v5952_v59 = vpop.f32.mrf.mxu0  ;;  %v5975_v63 = vpop.f32.mrf.mxu1 }
 0x773   : > { %6365 = vst [vmem:[#allocation7_spill] sm:$0xff] %v5975_v63 }
 0x774   : > { %v5955_v19 = vpop.f32.mrf.mxu0  ;;  %v5984_v4 = vpop.f32.mrf.mxu1 }
 0x775   : > { %3506 = vmatmul.mubr.msk.bf16.gmra.mxu0 %vm539_vm13, %v4239_v23  ;;  %6367 = vst [vmem:[#allocation9_spill] sm:$0xff] %v5984_v4 }
 0x776   : > { %2784 = vmatprep.mubr.bf16.mxu0 %v4418_v0  ;;  %v5960_v25 = vpop.f32.mrf.mxu0  ;;  %v5992_v34 = vpop.f32.mrf.mxu1 }
 0x777   : > { %6370 = vst [vmem:[#allocation12_spill] sm:$0xff] %v5992_v34 }
 0x778   : > { %v5965_v57 = vpop.f32.mrf.mxu0  ;;  %v6001_v11 = vpop.f32.mrf.mxu1 }
 0x779   : > { %6373 = vst [vmem:[#allocation15_spill] sm:$0xff] %v6001_v11 }
 0x77a   : > { %v5969_v58 = vpop.f32.mrf.mxu0  ;;  %v6009_v21 = vpop.f32.mrf.mxu1 }
 0x77b   : > { %6376 = vst [vmem:[#allocation18_spill] sm:$0xff] %v6009_v21 }
 0x77c   : > { %v5972_v14 = vpop.f32.mrf.mxu0 }
 0x77d   : > { %3507 = vmatmul.mubr.msk.bf16.gmra.mxu0 %vm539_vm13, %v4241_v49  ;;  %v4249_v49 = vld [vmem:[%s6358_s3 + $0xf8] sm:$0xff]  }
 0x77e   : > { %2794 = vmatprep.mubr.bf16.mxu0 %v4418_v0  ;;  %v5977_v38 = vpop.f32.mrf.mxu0 }
 0x780   : > { %v5982_v32 = vpop.f32.mrf.mxu0 }
 0x781   : > { %6366 = vst [vmem:[#allocation8_spill] sm:$0xff] %v5982_v32 }
 0x782   : > { %v5986_v41 = vpop.f32.mrf.mxu0 }
 0x783   : > { %6368 = vst [vmem:[#allocation10_spill] sm:$0xff] %v5986_v41  ;;  %v1394_v41 = vadd.f32 %v5868_v18, %v5791_v47  ;;  %v1400_v47 = vadd.f32 %v5923_v12, %v5809_v40 }
 0x784   : > { %v5989_v10 = vpop.f32.mrf.mxu0 }
 0x785   : > { %3508 = vmatmul.mubr.msk.bf16.gmra.mxu0 %vm539_vm13, %v4243_v39  ;;  %6369 = vst [vmem:[#allocation11_spill] sm:$0xff] %v5989_v10 }
 0x786   : > { %2804 = vmatprep.mubr.bf16.mxu0 %v4418_v0  ;;  %v5994_v51 = vpop.f32.mrf.mxu0 }
 0x787   : > { %6371 = vst [vmem:[#allocation13_spill] sm:$0xff] %v5994_v51 }
 0x788   : > { %v5999_v52 = vpop.f32.mrf.mxu0 }
 0x789   : > { %6372 = vst [vmem:[#allocation14_spill] sm:$0xff] %v5999_v52 }
 0x78a   : > { %v6003_v5 = vpop.f32.mrf.mxu0 }
 0x78b   : > { %6374 = vst [vmem:[#allocation16_spill] sm:$0xff] %v6003_v5 }
 0x78c   : > { %v6006_v46 = vpop.f32.mrf.mxu0 }
 0x78d   : > { %3509 = vmatmul.mubr.msk.bf16.gmra.mxu0 %vm539_vm13, %v4245_v1  ;;  %6375 = vst [vmem:[#allocation17_spill] sm:$0xff] %v6006_v46  ;;  %v6018_v1 = vpop.f32.mrf.mxu1 }
 0x78e   : > { %2814 = vmatprep.mubr.bf16.mxu0 %v4418_v0  ;;  %v6011_v23 = vpop.f32.mrf.mxu0  ;;  %6379 = vst [vmem:[#allocation21_spill] sm:$0xff] %v6018_v1 }
 0x78f   : > { %6377 = vst [vmem:[#allocation19_spill] sm:$0xff] %v6011_v23  ;;  %v674_v11 = vpop.f32.mrf.mxu1 }
 0x790   : > { %v6016_v39 = vpop.f32.mrf.mxu0 }
 0x791   : > { %6378 = vst [vmem:[#allocation20_spill] sm:$0xff] %v6016_v39  ;;  %v2024_v21 = vpop.f32.mrf.mxu1 }
 0x793   : > { %v2026_v23 = vpop.f32.mrf.mxu1 }
 0x794   : > { %v2136_v18 = vadd.f32 %v2026_v23, %v1394_v41  ;;  %v1409_v23 = vadd.f32 %v5965_v57, %v5907_v22 }
 0x795   : > { %3510 = vmatmul.mubr.msk.bf16.gmra.mxu0 %vm539_vm13, %v4247_v26  ;;  %v6020_v26 = vpop.f32.mrf.mxu0  ;;  %v2028_v46 = vpop.f32.mrf.mxu1 }
 0x796   : > { %2824 = vmatprep.mubr.bf16.mxu0 %v4418_v0  ;;  %6380 = vst [vmem:[#allocation22_spill] sm:$0xff] %v6020_v26  ;;  %v2137_v43 = vadd.f32 %v2028_v46, %v1395_v16  ;;  %v1405_v16 = vadd.f32 %v5948_v17, %v5862_v7 }
 0x797   : > { %v2030_v4 = vpop.f32.mrf.mxu1 }
 0x799   : > { %v2034_v5 = vpop.f32.mrf.mxu1 }
 0x79b   : > { %v2036_v63 = vpop.f32.mrf.mxu1 }
 0x79d   : > { %3511 = vmatmul.mubr.msk.bf16.gmra.mxu0 %vm539_vm13, %v4248_v42  ;;  %v6023_v42 = vpop.f32.mrf.mxu0  ;;  %v2038_v52 = vpop.f32.mrf.mxu1 }
 0x79e   : > { %2834 = vmatprep.mubr.bf16.mxu0 %v4418_v0  ;;  %6381 = vst [vmem:[#allocation23_spill] sm:$0xff] %v6023_v42 }
 0x79f   : > { %v1358_v0 = vpop.f32.mrf.mxu0  ;;  %v2040_v39 = vpop.f32.mrf.mxu1 }
 0x7a0   : > { %v6025_v34 = vadd.f32 %v1358_v0, %v674_v11 }
 0x7a1   : > { %v2044_v56 = vpop.f32.mrf.mxu1 }
 0x7a2   : > { %6382 = vst [vmem:[#allocation24_spill] sm:$0xff] %v6025_v34 }
 0x7a3   : > { %v2046_v1 = vpop.f32.mrf.mxu1 }
 0x7a5   : > { %3512 = vmatmul.mubr.msk.bf16.gmra.mxu0 %vm539_vm13, %v4249_v49  ;;  %v2048_v51 = vpop.f32.mrf.mxu1 }
 0x7a7   : > { %v2050_v26 = vpop.f32.mrf.mxu1 }
 0x7a9   : > { %v2054_v15 = vpop.f32.mrf.mxu1 }
 0x7ab   : > { %v2056_v49 = vpop.f32.mrf.mxu1 }
 0x7ad   : > { %v6027_v10 = vpop.f32.mrf.mxu1 }
 0x7af   : > { %v6029_v42 = vpop.f32.mrf.mxu1 }
 0x7b0   : > { %6383 = vst [vmem:[#allocation25_spill] sm:$0xff] %v6029_v42  ;;  %v1396_v42 = vadd.f32 %v5898_v44, %v5795_v30 }
 0x7b1   : > { %v6031_v11 = vpop.f32.mrf.mxu1 }
 0x7b2   : > { %6384 = vst [vmem:[#allocation26_spill] sm:$0xff] %v6031_v11  ;;  %v1397_v11 = vadd.f32 %v5905_v9, %v5797_v62  ;;  %v2992_v62 = vpop.permute.xlu0 %2991  ;;  %v1403_v9 = vadd.f32 %v5938_v55, %v5843_v54  ;;  %v2138_v40 = vadd.f32 %v2030_v4, %v1396_v42  ;;  %v6071_v54 = vadd.f32 %v2044_v56, %v1401_v45  ;;  %v2997_v4 = vpop.permute.xlu1 %2996 }
 0x7b3   : > { %v6033_v0 = vpop.f32.mrf.mxu1 }
 0x7b4   : > { %6385 = vst [vmem:[#allocation27_spill] sm:$0xff] %v6033_v0  ;;  %v2135_v0 = vadd.f32 %v2024_v21, %v1393_v3  ;;  %v2139_v37 = vadd.f32 %v2034_v5, %v1397_v11  ;;  %v1406_v3 = vadd.f32 %v5952_v59, %v5875_v48  ;;  %v6082_v17 = vadd.f32 %v2048_v51, %v1403_v9 }
 0x7b5   : > { %v6035_v34 = vpop.f32.mrf.mxu1  ;;  %v6084_v48 = vadd.f32 %v2050_v26, %v1404_v53  ;;  %v1408_v21 = vadd.f32 %v5960_v25, %v5900_v29  ;;  %v1410_v11 = vadd.f32 %v5969_v58, %v5913_v24  ;;  %v1411_v29 = vadd.f32 %v5972_v14, %v5920_v61 }
 0x7b6   : > { %6386 = vst [vmem:[#allocation28_spill] sm:$0xff] %v6035_v34  ;;  %v1398_v34 = vadd.f32 %v5910_v31, %v5799_v27  ;;  %v1402_v27 = vadd.f32 %v5933_v8, %v5822_v33  ;;  %v2141_v33 = vadd.f32 %v2038_v52, %v1399_v60  ;;  %v2142_v8 = vadd.f32 %v2040_v39, %v1400_v47  ;;  %v3002_v57 = vpop.permute.xlu0 %3001 }
 0x7b7   : > { %v6043_v32 = vpop.f32.mrf.mxu1  ;;  %v1412_v47 = vadd.f32 %v5977_v38, %v5926_v2  ;;  %v6388_v61 = vld [vmem:[#allocation25_spill] sm:$0xff] }
 0x7b8   : > { %v2140_v12 = vadd.f32 %v2036_v63, %v1398_v34  ;;  %v1407_v34 = vadd.f32 %v5955_v19, %v5892_v6  ;;  %v6080_v7 = vadd.f32 %v2046_v1, %v1402_v27  ;;  %v6093_v6 = vadd.f32 %v2054_v15, %v1405_v16  ;;  %v6392_v16 = vld [vmem:[#allocation3_spill] sm:$0xff] }
 0x7b9   : > { %v6057_v44 = vpop.f32.mrf.mxu1  ;;  %v6095_v19 = vadd.f32 %v2056_v49, %v1406_v3  ;;  %v6115_v14 = vadd.f32 %v6388_v61, %v1408_v21  ;;  %v6389_v9 = vld [vmem:[#allocation26_spill] sm:$0xff] }
 0x7ba   : > { %v6105_v22 = vadd.f32 %v6027_v10, %v1407_v34  ;;  %v6121_v2 = vadd.f32 %v6389_v9, %v1409_v23  ;;  %v6393_v3 = vld [vmem:[#allocation10_spill] sm:$0xff] }
 0x7bb   : > { %v6076_v63 = vpop.f32.mrf.mxu1 }
 0x7bd   : > { %v2078_v42 = vpop.f32.mrf.mxu1 }
 0x82d   : > { %v2766_v50 = vpop.f32.mrf.mxu0 }
 0x82e   : > { %v2877_v30 = vadd.f32 %v2766_v50, %v2135_v0  ;;  %v6387_v50 = vld [vmem:[#allocation8_spill] sm:$0xff] }
 0x82f   : > { %v2768_v31 = vpop.f32.mrf.mxu0  ;;  %v1413_v24 = vadd.f32 %v6387_v50, %v5935_v20  ;;  %v6390_v20 = vld [vmem:[#allocation27_spill] sm:$0xff] }
 0x830   : > { %v6065_v35 = vadd.f32 %v2992_v62, %v2877_v30  ;;  %v2878_v28 = vadd.f32 %v2768_v31, %v2136_v18  ;;  %v2080_v30 = vpop.f32.mrf.mxu1  ;;  %v6124_v53 = vadd.f32 %v6390_v20, %v1410_v11  ;;  %v6398_v11 = vld [vmem:[#allocation6_spill] sm:$0xff]  ;;  %v6403_v20 = vld [vmem:[#allocation17_spill] sm:$0xff] }
 0x831   : > { %v2770_v41 = vpop.f32.mrf.mxu0 }
 0x832   : > { %v3101_v13 = vsub.f32 0.0, %v6065_v35  ;;  %v6074_v55 = vadd.f32 %v2992_v62, %v2878_v28  ;;  %v2879_v36 = vadd.f32 %v2770_v41, %v2137_v43  ;;  %v3007_v62 = vpop.permute.xlu1 %3006  ;;  %v6394_v41 = vld [vmem:[#allocation4_spill] sm:$0xff]  ;;  %v2084_v23 = vpop.f32.mrf.mxu1 }
 0x833   : > { %v2772_v59 = vpop.f32.mrf.mxu0 }
 0x834   : > { %v3133_v56 = vmul.f32 1.442695, %v3101_v13  ;;  %v3102_v52 = vsub.f32 0.0, %v6074_v55  ;;  %v6087_v5 = vadd.f32 %v2997_v4, %v2879_v36  ;;  %v2880_v46 = vadd.f32 %v2772_v59, %v2138_v40  ;;  %v6391_v40 = vld [vmem:[#allocation28_spill] sm:$0xff]  ;;  %v6395_v13 = vld [vmem:[#allocation11_spill] sm:$0xff] }
 0x835   : > { %v2776_v51 = vpop.f32.mrf.mxu0  ;;  %v6127_v31 = vadd.f32 %v6391_v40, %v1411_v29  ;;  %v1415_v36 = vadd.f32 %v6395_v13, %v6394_v41  ;;  %v6137_v59 = vadd.f32 %v6043_v32, %v1412_v47  ;;  %v6399_v29 = vld [vmem:[#allocation14_spill] sm:$0xff]  ;;  %v6148_v32 = vadd.f32 %v6057_v44, %v1413_v24  ;;  %v6406_v13 = vld [vmem:[#allocation15_spill] sm:$0xff] }
 0x836   : > { %4282 = vpow2.f32 %v3133_v56  ;;  %v3135_v39 = vmul.f32 1.442695, %v3102_v52  ;;  %v3103_v1 = vsub.f32 0.0, %v6087_v5  ;;  %v6098_v26 = vadd.f32 %v2997_v4, %v2880_v46  ;;  %v3017_v9 = vpop.permute.xlu1 %3016 }
 0x837   : > { %v2881_v25 = vadd.f32 %v2776_v51, %v2139_v37  ;;  %v2778_v15 = vpop.f32.mrf.mxu0  ;;  %v6396_v51 = vld [vmem:[#allocation5_spill] sm:$0xff] }
 0x838   : > { %4284 = vpow2.f32 %v3135_v39  ;;  %v3137_v49 = vmul.f32 1.442695, %v3103_v1  ;;  %v3104_v0 = vsub.f32 0.0, %v6098_v26  ;;  %v2882_v60 = vadd.f32 %v2778_v15, %v2140_v12  ;;  %v6397_v39 = vld [vmem:[#allocation13_spill] sm:$0xff] }
 0x839   : > { %v6112_v58 = vadd.f32 %v3002_v57, %v2881_v25  ;;  %v2780_v10 = vpop.f32.mrf.mxu0  ;;  %v1416_v1 = vadd.f32 %v6397_v39, %v6396_v51  ;;  %v1417_v25 = vadd.f32 %v6399_v29, %v6398_v11 }
 0x83a   : > { %4286 = vpow2.f32 %v3137_v49  ;;  %v3139_v45 = vmul.f32 1.442695, %v3104_v0  ;;  %v6117_v18 = vadd.f32 %v3002_v57, %v2882_v60  ;;  %v2883_v43 = vadd.f32 %v2780_v10, %v2141_v33  ;;  %v6401_v60 = vld [vmem:[#allocation16_spill] sm:$0xff] }
 0x83b   : > { %v3105_v27 = vsub.f32 0.0, %v6112_v58  ;;  %v2782_v38 = vpop.f32.mrf.mxu0  ;;  %v1414_v33 = vadd.f32 %v6393_v3, %v6392_v16 }
 0x83c   : > { %4288 = vpow2.f32 %v3139_v45  ;;  %v3106_v37 = vsub.f32 0.0, %v6117_v18  ;;  %v6130_v12 = vadd.f32 %v3007_v62, %v2883_v43  ;;  %v2884_v28 = vadd.f32 %v2782_v38, %v2142_v8  ;;  %v3012_v8 = vpop.permute.xlu0 %3011  ;;  %v6402_v38 = vld [vmem:[#allocation9_spill] sm:$0xff] }
 0x83d   : > { %v3141_v4 = vmul.f32 1.442695, %v3105_v27  ;;  %v2786_v34 = vpop.f32.mrf.mxu0  ;;  %v6157_v10 = vadd.f32 %v6076_v63, %v1414_v33  ;;  %v6159_v45 = vadd.f32 %v2078_v42, %v1415_v36  ;;  %v1419_v40 = vadd.f32 %v6403_v20, %v6402_v38  ;;  %v6407_v36 = vld [vmem:[#allocation20_spill] sm:$0xff] }
 0x83e   : > { %v3143_v56 = vmul.f32 1.442695, %v3106_v37  ;;  %v3107_v52 = vsub.f32 0.0, %v6130_v12  ;;  %v6140_v46 = vadd.f32 %v3007_v62, %v2884_v28  ;;  %v2885_v21 = vadd.f32 %v2786_v34, %v6071_v54  ;;  %v6400_v54 = vld [vmem:[#allocation7_spill] sm:$0xff]  ;;  %v2086_v62 = vpop.f32.mrf.mxu1  ;;  %v6404_v37 = vld [vmem:[#allocation12_spill] sm:$0xff] }
 0x83f   : > { %4290 = vpow2.f32 %v3141_v4  ;;  %v2788_v15 = vpop.f32.mrf.mxu0  ;;  %v1418_v47 = vadd.f32 %v6401_v60, %v6400_v54  ;;  %v6169_v42 = vadd.f32 %v2080_v30, %v1416_v1  ;;  %v6175_v4 = vadd.f32 %v6407_v36, %v6406_v13 }
 0x840   : > { %4292 = vpow2.f32 %v3143_v56  ;;  %v3145_v57 = vmul.f32 1.442695, %v3107_v52  ;;  %v3108_v49 = vsub.f32 0.0, %v6140_v46  ;;  %v6151_v0 = vadd.f32 %v3012_v8, %v2885_v21  ;;  %v2088_v39 = vpop.f32.mrf.mxu1  ;;  %v3022_v11 = vpop.permute.xlu0 %3021 }
 0x841   : > { %v2886_v50 = vadd.f32 %v2788_v15, %v6080_v7  ;;  %v2790_v61 = vpop.f32.mrf.mxu0  ;;  %v6405_v7 = vld [vmem:[#allocation19_spill] sm:$0xff]  ;;  %v6179_v21 = vadd.f32 %v2084_v23, %v1417_v25 }
 0x842   : > { %4294 = vpow2.f32 %v3145_v57  ;;  %v3147_v44 = vmul.f32 1.442695, %v3108_v49  ;;  %v3109_v24 = vsub.f32 0.0, %v6151_v0  ;;  %v2887_v43 = vadd.f32 %v2790_v61, %v6082_v17 }
 0x843   : > { %v4283_v27 = vpop.eup %4282  ;;  %v1420_v28 = vadd.f32 %v6405_v7, %v6404_v37  ;;  %v6167_v16 = vadd.f32 %v3012_v8, %v2886_v50  ;;  %v2792_v63 = vpop.f32.mrf.mxu0  ;;  %v6185_v49 = vadd.f32 %v2086_v62, %v1418_v47  ;;  %v6191_v61 = vadd.f32 %v2088_v39, %v1419_v40  ;;  %v6411_v39 = vld [vmem:[#allocation23_spill] sm:$0xff] }
 0x844   : > { %v3197_v3 = vadd.f32 1.0, %v4283_v27  ;;  %4296 = vpow2.f32 %v3147_v44  ;;  %v3149_v33 = vmul.f32 1.442695, %v3109_v24  ;;  %v6171_v41 = vadd.f32 %v3017_v9, %v2887_v43  ;;  %v2090_v43 = vpop.f32.mrf.mxu1  ;;  %v3027_v62 = vpop.permute.xlu1 %3026  ;;  %v6408_v27 = vld [vmem:[#allocation18_spill] sm:$0xff] }
 0x845   : > { %v4285_v17 = vpop.eup %4284  ;;  %v3110_v34 = vsub.f32 0.0, %v6167_v16  ;;  %v2888_v56 = vadd.f32 %v2792_v63, %v6084_v48  ;;  %v2796_v52 = vpop.f32.mrf.mxu0  ;;  %v6203_v36 = vadd.f32 %v2090_v43, %v1420_v28 }
 0x846   : > { %4298 = vrcp.f32 %v3197_v3  ;;  %v3198_v30 = vadd.f32 1.0, %v4285_v17  ;;  %v3111_v8 = vsub.f32 0.0, %v6171_v41  ;;  %v2889_v51 = vadd.f32 %v2796_v52, %v6093_v6 }
 0x847   : > { %v4287_v1 = vpop.eup %4286  ;;  %4300 = vpow2.f32 %v3149_v33  ;;  %v3151_v29 = vmul.f32 1.442695, %v3110_v34  ;;  %v6183_v15 = vadd.f32 %v3017_v9, %v2888_v56  ;;  %v2798_v57 = vpop.f32.mrf.mxu0  ;;  %v6409_v9 = vld [vmem:[#allocation22_spill] sm:$0xff] }
 0x848   : > { %4302 = vrcp.f32 %v3198_v30  ;;  %v3199_v48 = vadd.f32 1.0, %v4287_v1  ;;  %v3153_v23 = vmul.f32 1.442695, %v3111_v8  ;;  %v6187_v25 = vadd.f32 %v3022_v11, %v2889_v51  ;;  %v2094_v30 = vpop.f32.mrf.mxu1  ;;  %v6410_v51 = vld [vmem:[#allocation21_spill] sm:$0xff] }
 0x849   : > { %v4289_v54 = vpop.eup %4288  ;;  %4304 = vpow2.f32 %v3151_v29  ;;  %v3112_v60 = vsub.f32 0.0, %v6183_v15  ;;  %v2890_v6 = vadd.f32 %v2798_v57, %v6095_v19  ;;  %v2800_v50 = vpop.f32.mrf.mxu0  ;;  %v1422_v38 = vadd.f32 %v6409_v9, %v6408_v27 }
 0x84a   : > { %4306 = vrcp.f32 %v3199_v48  ;;  %v3200_v44 = vadd.f32 1.0, %v4289_v54  ;;  %v3113_v24 = vsub.f32 0.0, %v6187_v25  ;;  %v2891_v47 = vadd.f32 %v2800_v50, %v6105_v22  ;;  %v3032_v57 = vpop.permute.xlu0 %3031  ;;  %v2096_v43 = vpop.f32.mrf.mxu1 }
 0x84b   : > { %4308 = vpow2.f32 %v3153_v23  ;;  %v3155_v20 = vmul.f32 1.442695, %v3112_v60  ;;  %v6197_v37 = vadd.f32 %v3022_v11, %v2890_v6  ;;  %v2802_v7 = vpop.f32.mrf.mxu0  ;;  %v3037_v27 = vpop.permute.xlu1 %3036 }
 0x84c   : > { %v4291_v19 = vpop.eup %4290  ;;  %4310 = vrcp.f32 %v3200_v44  ;;  %v3157_v40 = vmul.f32 1.442695, %v3113_v24  ;;  %v6199_v63 = vadd.f32 %v3027_v62, %v2891_v47  ;;  %v2892_v3 = vadd.f32 %v2802_v7, %v6115_v14 }
 0x84d   : > { %v4293_v33 = vpop.eup %4292  ;;  %v3201_v17 = vadd.f32 1.0, %v4291_v19  ;;  %4312 = vpow2.f32 %v3155_v20  ;;  %v3114_v22 = vsub.f32 0.0, %v6197_v37  ;;  %v2806_v13 = vpop.f32.mrf.mxu0  ;;  %v1423_v14 = vadd.f32 %v6411_v39, %v6410_v51 }
 0x84e   : > { %v3202_v34 = vadd.f32 1.0, %v4293_v33  ;;  %4314 = vpow2.f32 %v3157_v40  ;;  %v3115_v56 = vsub.f32 0.0, %v6199_v63  ;;  %v6206_v52 = vadd.f32 %v3027_v62, %v2892_v3 }
 0x84f   : > { %v4295_v8 = vpop.eup %4294  ;;  %4316 = vrcp.f32 %v3201_v17  ;;  %v3159_v1 = vmul.f32 1.442695, %v3114_v22  ;;  %v2893_v11 = vadd.f32 %v2806_v13, %v6121_v2  ;;  %v2808_v29 = vpop.f32.mrf.mxu0  ;;  %v6217_v44 = vadd.f32 %v2094_v30, %v6175_v4 }
 0x850   : > { %4318 = vrcp.f32 %v3202_v34  ;;  %v3203_v28 = vadd.f32 1.0, %v4295_v8  ;;  %v3161_v48 = vmul.f32 1.442695, %v3115_v56  ;;  %v3116_v23 = vsub.f32 0.0, %v6206_v52  ;;  %v2098_v8 = vpop.f32.mrf.mxu1 }
 0x851   : > { %v4297_v54 = vpop.eup %4296  ;;  %4320 = vpow2.f32 %v3159_v1  ;;  %v6213_v60 = vadd.f32 %v3032_v57, %v2893_v11  ;;  %v2894_v6 = vadd.f32 %v2808_v29, %v6124_v53  ;;  %v2810_v50 = vpop.f32.mrf.mxu0  ;;  %v6228_v20 = vadd.f32 %v2096_v43, %v1422_v38 }
 0x852   : > { %4322 = vrcp.f32 %v3203_v28  ;;  %v3204_v2 = vadd.f32 1.0, %v4297_v54  ;;  %v3163_v24 = vmul.f32 1.442695, %v3116_v23  ;;  %v2895_v47 = vadd.f32 %v2810_v50, %v6127_v31  ;;  %v3047_v43 = vpop.permute.xlu1 %3046 }
 0x853   : > { %v4299_v62 = vpop.eup %4298  ;;  %4324 = vpow2.f32 %v3161_v48  ;;  %v3117_v53 = vsub.f32 0.0, %v6213_v60  ;;  %v6226_v9 = vadd.f32 %v3032_v57, %v2894_v6  ;;  %v2812_v4 = vpop.f32.mrf.mxu0  ;;  %v6241_v1 = vadd.f32 %v2098_v8, %v1423_v14 }
 0x854   : > { %v4301_v7 = vpop.eup %4300  ;;  %v3261_v31 = vmul.f32 %v4299_v62, %v6065_v35  ;;  %4326 = vrcp.f32 %v3204_v2  ;;  %v6231_v19 = vadd.f32 %v3037_v27, %v2895_v47  ;;  %v2896_v40 = vadd.f32 %v2812_v4, %v6137_v59  ;;  %v3042_v57 = vpop.permute.xlu0 %3041 }
 0x855   : > { %v4303_v3 = vpop.eup %4302  ;;  %v3205_v33 = vadd.f32 1.0, %v4301_v7  ;;  %4328 = vpow2.f32 %v3163_v24  ;;  %v3165_v17 = vmul.f32 1.442695, %v3117_v53  ;;  %v3118_v22 = vsub.f32 0.0, %v6226_v9  ;;  %v2816_v13 = vpop.f32.mrf.mxu0 }
 0x856   : > { %v4305_v34 = vpop.eup %4304  ;;  %3293 = vst [vmem:[%s6223_s8] sm:$0xff] %v3261_v31  ;;  %v3262_v38 = vmul.f32 %v4303_v3, %v6074_v55  ;;  %v3119_v56 = vsub.f32 0.0, %v6231_v19  ;;  %v6238_v35 = vadd.f32 %v3037_v27, %v2896_v40  ;;  %v2897_v30 = vadd.f32 %v2816_v13, %v6148_v32 }
 0x857   : > { %v4307_v59 = vpop.eup %4306  ;;  %4330 = vrcp.f32 %v3205_v33  ;;  %v3206_v51 = vadd.f32 1.0, %v4305_v34  ;;  %v3167_v39 = vmul.f32 1.442695, %v3118_v22  ;;  %v2818_v11 = vpop.f32.mrf.mxu0 }
 0x858   : > { %v4309_v29 = vpop.eup %4308  ;;  %3294 = vst [vmem:[%s6223_s8 + $0x8] sm:$0xff] %v3262_v38  ;;  %v3263_v55 = vmul.f32 %v4307_v59, %v6087_v5  ;;  %4332 = vpow2.f32 %v3165_v17  ;;  %v3169_v28 = vmul.f32 1.442695, %v3119_v56  ;;  %v3120_v48 = vsub.f32 0.0, %v6238_v35 }
 0x859   : > { %v4311_v23 = vpop.eup %4310  ;;  %4334 = vrcp.f32 %v3206_v51  ;;  %v3207_v32 = vadd.f32 1.0, %v4309_v29  ;;  %v6246_v54 = vadd.f32 %v3042_v57, %v2897_v30  ;;  %v2898_v6 = vadd.f32 %v2818_v11, %v6157_v10  ;;  %v2820_v14 = vpop.f32.mrf.mxu0 }
 0x85a   : > { %v4313_v50 = vpop.eup %4312  ;;  %3295 = vst [vmem:[%s6223_s8 + $0x10] sm:$0xff] %v3263_v55  ;;  %v3264_v2 = vmul.f32 %v4311_v23, %v6098_v26  ;;  %4336 = vpow2.f32 %v3167_v39  ;;  %v3171_v24 = vmul.f32 1.442695, %v3120_v48  ;;  %v2899_v5 = vadd.f32 %v2820_v14, %v6159_v45  ;;  %v3052_v51 = vpop.permute.xlu0 %3051 }
 0x85b   : > { %v4315_v47 = vpop.eup %4314  ;;  %4338 = vrcp.f32 %v3207_v32  ;;  %v3208_v62 = vadd.f32 1.0, %v4313_v50  ;;  %v3121_v27 = vsub.f32 0.0, %v6246_v54  ;;  %v6253_v53 = vadd.f32 %v3042_v57, %v2898_v6  ;;  %v2822_v4 = vpop.f32.mrf.mxu0 }
 0x85c   : > { %v4317_v10 = vpop.eup %4316  ;;  %3296 = vst [vmem:[%s6223_s8 + $0x18] sm:$0xff] %v3264_v2  ;;  %v3209_v7 = vadd.f32 1.0, %v4315_v47  ;;  %4340 = vpow2.f32 %v3169_v28  ;;  %v6256_v31 = vadd.f32 %v3047_v43, %v2899_v5  ;;  %v2900_v26 = vadd.f32 %v2822_v4, %v6169_v42  ;;  %v2100_v55 = vpop.f32.mrf.mxu1 }
 0x85d   : > { %v4319_v40 = vpop.eup %4318  ;;  %v3265_v45 = vmul.f32 %v4317_v10, %v6112_v58  ;;  %4342 = vrcp.f32 %v3208_v62  ;;  %v3173_v3 = vmul.f32 1.442695, %v3121_v27  ;;  %v3122_v33 = vsub.f32 0.0, %v6253_v53  ;;  %v2826_v17 = vpop.f32.mrf.mxu0 }
 0x85e   : > { %v4321_v22 = vpop.eup %4320  ;;  %v3266_v13 = vmul.f32 %v4319_v40, %v6117_v18  ;;  %4344 = vrcp.f32 %v3209_v7  ;;  %v3123_v34 = vsub.f32 0.0, %v6256_v31  ;;  %v6263_v38 = vadd.f32 %v3047_v43, %v2900_v26  ;;  %v3057_v14 = vpop.permute.xlu1 %3056 }
 0x85f   : > { %v4323_v56 = vpop.eup %4322  ;;  %3297 = vst [vmem:[%s6223_s8 + $0x20] sm:$0xff] %v3265_v45  ;;  %v3210_v42 = vadd.f32 1.0, %v4321_v22  ;;  %4346 = vpow2.f32 %v3171_v24  ;;  %v3175_v30 = vmul.f32 1.442695, %v3122_v33  ;;  %v2901_v58 = vadd.f32 %v2826_v17, %v6179_v21  ;;  %v2828_v8 = vpop.f32.mrf.mxu0 }
 0x860   : > { %v4325_v59 = vpop.eup %4324  ;;  %3298 = vst [vmem:[%s6223_s8 + $0x28] sm:$0xff] %v3266_v13  ;;  %v3267_v39 = vmul.f32 %v4323_v56, %v6130_v12  ;;  %4348 = vpow2.f32 %v3173_v3  ;;  %v3177_v18 = vmul.f32 1.442695, %v3123_v34  ;;  %v3124_v11 = vsub.f32 0.0, %v6263_v38  ;;  %v3062_v34 = vpop.permute.xlu0 %3061 }
 0x861   : > { %v4327_v29 = vpop.eup %4326  ;;  %4350 = vrcp.f32 %v3210_v42  ;;  %v3211_v57 = vadd.f32 1.0, %v4325_v59  ;;  %v6270_v28 = vadd.f32 %v3052_v51, %v2901_v58  ;;  %v2902_v21 = vadd.f32 %v2828_v8, %v6185_v49  ;;  %v2830_v48 = vpop.f32.mrf.mxu0  ;;  %v6412_v49 = vld [vmem:[#allocation24_spill] sm:$0xff] }
 0x862   : > { %v4329_v23 = vpop.eup %4328  ;;  %3299 = vst [vmem:[%s6223_s8 + $0x30] sm:$0xff] %v3267_v39  ;;  %v3268_v32 = vmul.f32 %v4327_v29, %v6140_v46  ;;  %4352 = vpow2.f32 %v3175_v30  ;;  %v3179_v12 = vmul.f32 1.442695, %v3124_v11  ;;  %v2903_v6 = vadd.f32 %v2830_v48, %v6191_v61 }
 0x863   : > { %4354 = vrcp.f32 %v3211_v57  ;;  %v3212_v50 = vadd.f32 1.0, %v4329_v23  ;;  %v3125_v2 = vsub.f32 0.0, %v6270_v28  ;;  %v6277_v24 = vadd.f32 %v3052_v51, %v2902_v21  ;;  %v2832_v5 = vpop.f32.mrf.mxu0  ;;  %v3067_v57 = vpop.permute.xlu1 %3066 }
 0x864   : > { %v4331_v47 = vpop.eup %4330  ;;  %3300 = vst [vmem:[%s6223_s8 + $0x38] sm:$0xff] %v3268_v32  ;;  %v2166_v43 = vadd.f32 %v2100_v55, %v6412_v49  ;;  %4356 = vpow2.f32 %v3177_v18  ;;  %v6281_v62 = vadd.f32 %v3057_v14, %v2903_v6  ;;  %v2904_v46 = vadd.f32 %v2832_v5, %v6203_v36 }
 0x865   : > { %v4333_v27 = vpop.eup %4332  ;;  %v3269_v61 = vmul.f32 %v4331_v47, %v6151_v0  ;;  %4358 = vrcp.f32 %v3212_v50  ;;  %v3181_v4 = vmul.f32 1.442695, %v3125_v2  ;;  %v3126_v10 = vsub.f32 0.0, %v6277_v24  ;;  %v2836_v7 = vpop.f32.mrf.mxu0 }
 0x866   : > { %v4335_v26 = vpop.eup %4334  ;;  %v3213_v40 = vadd.f32 1.0, %v4333_v27  ;;  %4360 = vpow2.f32 %v3179_v12  ;;  %v3127_v45 = vsub.f32 0.0, %v6281_v62  ;;  %v6287_v3 = vadd.f32 %v3057_v14, %v2904_v46 }
 0x867   : > { %v4337_v33 = vpop.eup %4336  ;;  %3301 = vst [vmem:[%s6223_s8 + $0x40] sm:$0xff] %v3269_v61  ;;  %v3270_v36 = vmul.f32 %v4335_v26, %v6167_v16  ;;  %4362 = vpow2.f32 %v3181_v4  ;;  %v3183_v17 = vmul.f32 1.442695, %v3126_v10  ;;  %v2905_v0 = vadd.f32 %v2836_v7, %v6217_v44  ;;  %v2838_v22 = vpop.f32.mrf.mxu0 }
 0x868   : > { %v4339_v13 = vpop.eup %4338  ;;  %4364 = vrcp.f32 %v3213_v40  ;;  %v3214_v56 = vadd.f32 1.0, %v4337_v33  ;;  %v3185_v42 = vmul.f32 1.442695, %v3127_v45  ;;  %v3128_v30 = vsub.f32 0.0, %v6287_v3 }
 0x869   : > { %v4341_v58 = vpop.eup %4340  ;;  %3302 = vst [vmem:[%s6223_s8 + $0x48] sm:$0xff] %v3270_v36  ;;  %v3271_v8 = vmul.f32 %v4339_v13, %v6171_v41  ;;  %4366 = vpow2.f32 %v3183_v17  ;;  %v6295_v59 = vadd.f32 %v3062_v34, %v2905_v0  ;;  %v2906_v16 = vadd.f32 %v2838_v22, %v6228_v20  ;;  %v2840_v51 = vpop.f32.mrf.mxu0 }
 0x86a   : > { %v4343_v44 = vpop.eup %4342  ;;  %4368 = vrcp.f32 %v3214_v56  ;;  %v3215_v39 = vadd.f32 1.0, %v4341_v58  ;;  %v3187_v18 = vmul.f32 1.442695, %v3128_v30  ;;  %v2907_v11 = vadd.f32 %v2840_v51, %v6241_v1 }
 0x86b   : > { %v4345_v29 = vpop.eup %4344  ;;  %3303 = vst [vmem:[%s6223_s8 + $0x50] sm:$0xff] %v3271_v8  ;;  %v3272_v55 = vmul.f32 %v4343_v44, %v6183_v15  ;;  %4370 = vpow2.f32 %v3185_v42  ;;  %v3129_v41 = vsub.f32 0.0, %v6295_v59  ;;  %v6302_v21 = vadd.f32 %v3062_v34, %v2906_v16  ;;  %v2842_v20 = vpop.f32.mrf.mxu0 }
 0x86c   : > { %v4347_v48 = vpop.eup %4346  ;;  %v3273_v23 = vmul.f32 %v4345_v29, %v6187_v25  ;;  %4372 = vrcp.f32 %v3215_v39  ;;  %v6305_v32 = vadd.f32 %v3067_v57, %v2907_v11  ;;  %v2908_v12 = vadd.f32 %v2842_v20, %v2166_v43 }
 0x86d   : > { %v4349_v1 = vpop.eup %4348  ;;  %3304 = vst [vmem:[%s6223_s8 + $0x58] sm:$0xff] %v3272_v55  ;;  %v3216_v6 = vadd.f32 1.0, %v4347_v48  ;;  %4374 = vpow2.f32 %v3187_v18  ;;  %v3189_v14 = vmul.f32 1.442695, %v3129_v41  ;;  %v3130_v15 = vsub.f32 0.0, %v6302_v21 }
 0x86e   : > { %v4351_v50 = vpop.eup %4350  ;;  %3305 = vst [vmem:[%s6223_s8 + $0x60] sm:$0xff] %v3273_v23  ;;  %v3217_v2 = vadd.f32 1.0, %v4349_v1  ;;  %v3131_v5 = vsub.f32 0.0, %v6305_v32  ;;  %v6311_v47 = vadd.f32 %v3067_v57, %v2908_v12 }
 0x86f   : > { %v4353_v25 = vpop.eup %4352  ;;  %v3274_v49 = vmul.f32 %v4351_v50, %v6197_v37  ;;  %4376 = vrcp.f32 %v3216_v6  ;;  %v3191_v43 = vmul.f32 1.442695, %v3130_v15 }
 0x870   : > { %v4355_v46 = vpop.eup %4354  ;;  %4378 = vrcp.f32 %v3217_v2  ;;  %v3218_v27 = vadd.f32 1.0, %v4353_v25  ;;  %v3132_v61 = vsub.f32 0.0, %v6311_v47  ;;  %v3193_v7 = vmul.f32 1.442695, %v3131_v5 }
 0x871   : > { %v4357_v4 = vpop.eup %4356  ;;  %3306 = vst [vmem:[%s6223_s8 + $0x68] sm:$0xff] %v3274_v49  ;;  %v3275_v10 = vmul.f32 %v4355_v46, %v6199_v63  ;;  %4380 = vpow2.f32 %v3189_v14 }
 0x872   : > { %v4359_v26 = vpop.eup %4358  ;;  %4382 = vrcp.f32 %v3218_v27  ;;  %v3219_v40 = vadd.f32 1.0, %v4357_v4  ;;  %v3195_v17 = vmul.f32 1.442695, %v3132_v61 }
 0x873   : > { %v4361_v45 = vpop.eup %4360  ;;  %3307 = vst [vmem:[%s6223_s8 + $0x70] sm:$0xff] %v3275_v10  ;;  %v3276_v37 = vmul.f32 %v4359_v26, %v6206_v52  ;;  %4384 = vpow2.f32 %v3191_v43 }
 0x874   : > { %v4363_v33 = vpop.eup %4362  ;;  %4386 = vrcp.f32 %v3219_v40  ;;  %v3220_v36 = vadd.f32 1.0, %v4361_v45 }
 0x875   : > { %v4365_v0 = vpop.eup %4364  ;;  %3308 = vst [vmem:[%s6223_s8 + $0x78] sm:$0xff] %v3276_v37  ;;  %v3221_v22 = vadd.f32 1.0, %v4363_v33  ;;  %4388 = vpow2.f32 %v3193_v7 }
 0x876   : > { %v4367_v63 = vpop.eup %4366  ;;  %v3277_v13 = vmul.f32 %v4365_v0, %v6213_v60  ;;  %4390 = vrcp.f32 %v3220_v36 }
 0x877   : > { %v4369_v34 = vpop.eup %4368  ;;  %4392 = vrcp.f32 %v3221_v22  ;;  %v3222_v56 = vadd.f32 1.0, %v4367_v63 }
 0x878   : > { %v4371_v52 = vpop.eup %4370  ;;  %3309 = vst [vmem:[%s6223_s8 + $0x80] sm:$0xff] %v3277_v13  ;;  %v3278_v42 = vmul.f32 %v4369_v34, %v6226_v9  ;;  %4394 = vpow2.f32 %v3195_v17 }
 0x879   : > { %v4373_v30 = vpop.eup %4372  ;;  %4396 = vrcp.f32 %v3222_v56  ;;  %v3223_v58 = vadd.f32 1.0, %v4371_v52 }
 0x87a   : > { %v4375_v8 = vpop.eup %4374  ;;  %3310 = vst [vmem:[%s6223_s8 + $0x88] sm:$0xff] %v3278_v42  ;;  %v3279_v16 = vmul.f32 %v4373_v30, %v6231_v19 }
 0x87b   : > { %4398 = vrcp.f32 %v3223_v58  ;;  %v3224_v60 = vadd.f32 1.0, %v4375_v8 }
 0x87c   : > { %v4377_v51 = vpop.eup %4376  ;;  %3311 = vst [vmem:[%s6223_s8 + $0x90] sm:$0xff] %v3279_v16 }
 0x87d   : > { %v4379_v44 = vpop.eup %4378  ;;  %v3280_v39 = vmul.f32 %v4377_v51, %v6238_v35  ;;  %4400 = vrcp.f32 %v3224_v60 }
 0x87e   : > { %v4381_v9 = vpop.eup %4380  ;;  %v3281_v18 = vmul.f32 %v4379_v44, %v6246_v54 }
 0x87f   : > { %v4383_v11 = vpop.eup %4382  ;;  %3312 = vst [vmem:[%s6223_s8 + $0x98] sm:$0xff] %v3280_v39  ;;  %v3225_v29 = vadd.f32 1.0, %v4381_v9 }
 0x880   : > { %v4385_v57 = vpop.eup %4384  ;;  %3313 = vst [vmem:[%s6223_s8 + $0xa0] sm:$0xff] %v3281_v18  ;;  %v3282_v19 = vmul.f32 %v4383_v11, %v6253_v53 }
 0x881   : > { %v4387_v55 = vpop.eup %4386  ;;  %4402 = vrcp.f32 %v3225_v29  ;;  %v3226_v41 = vadd.f32 1.0, %v4385_v57 }
 0x882   : > { %v4389_v20 = vpop.eup %4388  ;;  %3314 = vst [vmem:[%s6223_s8 + $0xa8] sm:$0xff] %v3282_v19  ;;  %v3283_v35 = vmul.f32 %v4387_v55, %v6256_v31 }
 0x883   : > { %v4391_v48 = vpop.eup %4390  ;;  %4404 = vrcp.f32 %v3226_v41  ;;  %v3227_v54 = vadd.f32 1.0, %v4389_v20 }
 0x884   : > { %v4393_v23 = vpop.eup %4392  ;;  %3315 = vst [vmem:[%s6223_s8 + $0xb0] sm:$0xff] %v3283_v35  ;;  %v3284_v12 = vmul.f32 %v4391_v48, %v6263_v38 }
 0x885   : > { %v4395_v53 = vpop.eup %4394  ;;  %v3285_v1 = vmul.f32 %v4393_v23, %v6270_v28  ;;  %4406 = vrcp.f32 %v3227_v54 }
 0x886   : > { %v4397_v6 = vpop.eup %4396  ;;  %3316 = vst [vmem:[%s6223_s8 + $0xb8] sm:$0xff] %v3284_v12  ;;  %v3228_v14 = vadd.f32 1.0, %v4395_v53 }
 0x887   : > { %3317 = vst [vmem:[%s6223_s8 + $0xc0] sm:$0xff] %v3285_v1  ;;  %v3286_v31 = vmul.f32 %v4397_v6, %v6277_v24 }
 0x888   : > { %v4399_v15 = vpop.eup %4398  ;;  %4408 = vrcp.f32 %v3228_v14 }
 0x889   : > { %3318 = vst [vmem:[%s6223_s8 + $0xc8] sm:$0xff] %v3286_v31  ;;  %v3287_v50 = vmul.f32 %v4399_v15, %v6281_v62 }
 0x88a   : > { %v4401_v38 = vpop.eup %4400 }
 0x88b   : > { %3319 = vst [vmem:[%s6223_s8 + $0xd0] sm:$0xff] %v3287_v50  ;;  %v3288_v28 = vmul.f32 %v4401_v38, %v6287_v3 }
 0x88d   : > { %3320 = vst [vmem:[%s6223_s8 + $0xd8] sm:$0xff] %v3288_v28 }
 0x88e   : > { %v4403_v2 = vpop.eup %4402 }
 0x88f   : > { %v3289_v5 = vmul.f32 %v4403_v2, %v6295_v59 }
 0x890   : > { %v4405_v25 = vpop.eup %4404 }
 0x891   : > { %3321 = vst [vmem:[%s6223_s8 + $0xe0] sm:$0xff] %v3289_v5  ;;  %v3290_v49 = vmul.f32 %v4405_v25, %v6302_v21 }
 0x892   : > { %v4407_v24 = vpop.eup %4406 }
 0x893   : > { %3322 = vst [vmem:[%s6223_s8 + $0xe8] sm:$0xff] %v3290_v49  ;;  %v3291_v43 = vmul.f32 %v4407_v24, %v6305_v32 }
 0x895   : > { %v4409_v46 = vpop.eup %4408  ;;  %3323 = vst [vmem:[%s6223_s8 + $0xf0] sm:$0xff] %v3291_v43 }
 0x896   : > { %v3292_v62 = vmul.f32 %v4409_v46, %v6311_v47 }
 0x898   : > { %3324 = vst [vmem:[%s6223_s8 + $0xf8] sm:$0xff] %v3292_v62 }
 0x899 PF: > { %s15_s18 = sadd.s32 1, %s4416_s18  }
 0x89a   : > { %p12_p4 = scmp.ge.s32.totalorder %s15_s18, 4  }
 0x89c   :  { %14 = sbr.rel (!%p12_p4) target bundleno = 1 (0x1), region = 73 }

</bundles_post_ra>
